<compile_context>
chip_gen: v5e
topology: v5e:2x2
jax: 0.10.0
libtpu: 0.0.40
codegen_flags: <defaults>
</compile_context>

<pallas_src>
import functools

import jax
import jax.numpy as jnp
from jax.experimental import pallas as pl
from jax.experimental.pallas import tpu as pltpu

_NEG = -1e30  # f32-safe mask value
_VMEM_LIMIT = 48 * 1024 * 1024  # fits v7x (64 MiB physical) with headroom


def _round_up(x, m):
    return (x + m - 1) // m * m


def _pick_tile(n, cap=1024):
    for t in (1024, 512, 256, 128):
        if t <= cap and n % t == 0:
            return t
    return 128


# ----------------------------------------------------------------------------
# Kernel 1: fused projection   hext = x @ W_ext   (bf16 MXU, f32 accumulate)
# ----------------------------------------------------------------------------
def _project_kernel(x_ref, w_ref, out_ref, acc_ref):
    k = pl.program_id(1)

    @pl.when(k == 0)
    def _():
        acc_ref[...] = jnp.zeros_like(acc_ref)

    acc_ref[...] += jnp.dot(x_ref[...].astype(jnp.bfloat16), w_ref[...],
                            preferred_element_type=jnp.float32)

    @pl.when(k == pl.num_programs(1) - 1)
    def _():
        out_ref[...] = acc_ref[...].astype(out_ref.dtype)


def _project(x, w_ext):
    n_pad, f_in_pad = x.shape
    f_ext = w_ext.shape[1]
    tm = _pick_tile(n_pad, cap=512)
    tk = _pick_tile(f_in_pad, cap=512)
    return pl.pallas_call(
        _project_kernel,
        out_shape=jax.ShapeDtypeStruct((n_pad, f_ext), jnp.bfloat16),
        grid_spec=pltpu.PrefetchScalarGridSpec(
            num_scalar_prefetch=0,
            grid=(n_pad // tm, f_in_pad // tk),
            in_specs=[
                pl.BlockSpec((tm, tk), lambda i, k: (i, k)),
                pl.BlockSpec((tk, f_ext), lambda i, k: (k, 0)),
            ],
            out_specs=pl.BlockSpec((tm, f_ext), lambda i, k: (i, 0)),
            scratch_shapes=[pltpu.VMEM((tm, f_ext), jnp.float32)],
        ),
        compiler_params=pltpu.CompilerParams(
            dimension_semantics=("parallel", "arbitrary"),
            vmem_limit_bytes=_VMEM_LIMIT),
    )(x, w_ext)


# ----------------------------------------------------------------------------
# Kernel 2: masked-softmax attention + aggregation (online softmax over src),
#           with block-sparse tile skipping via scalar-prefetched flags.
# ----------------------------------------------------------------------------
def _attn_kernel(flags_ref, adj_ref, adst_ref, asrc_ref, h_ref, bias_ref,
                 out_ref, m_sc, l_sc, acc_sc, *, apply_relu):
    i = pl.program_id(0)
    j = pl.program_id(1)
    nj = pl.num_programs(1)

    @pl.when(j == 0)
    def _():
        m_sc[...] = jnp.full_like(m_sc, _NEG)
        l_sc[...] = jnp.zeros_like(l_sc)
        acc_sc[...] = jnp.zeros_like(acc_sc)

    # Skip all the elementwise / exp / matmul work for empty adjacency tiles.
    @pl.when(flags_ref[i * nj + j] != 0)
    def _():
        a_dst = adst_ref[...]                              # [TM, 1]  f32
        a_src = asrc_ref[...]                              # [1, TS]  f32
        e = a_dst + a_src                                  # [TM, TS]
        e = jnp.maximum(e, 0.2 * e)                        # LeakyReLU(0.2)
        e = jnp.where(adj_ref[...] != 0, e, _NEG)          # int8 compare, no cvt

        m_prev = m_sc[...]
        m_new = jnp.maximum(m_prev, jnp.max(e, axis=-1, keepdims=True))
        scale = jnp.exp(m_prev - m_new)                    # rescale old partials
        p = jnp.exp(e - m_new)                             # masked entries -> 0
        l_sc[...] = scale * l_sc[...] + jnp.sum(p, axis=-1, keepdims=True)
        acc_sc[...] = scale * acc_sc[...] + jnp.dot(
            p.astype(jnp.bfloat16), h_ref[...],
            preferred_element_type=jnp.float32)
        m_sc[...] = m_new

    @pl.when(j == nj - 1)
    def _():
        inv_l = pl.reciprocal(l_sc[...], approx=True)      # EUP, ~free
        out = acc_sc[...] * inv_l + bias_ref[...]
        if apply_relu:
            out = jnp.maximum(out, 0.0)
        out_ref[...] = out.astype(out_ref.dtype)


def _attention(flags, adj, a_dst, a_src, hext, bias, *, f_out_pad, tm, ts,
               apply_relu, out_dtype):
    n_pad = adj.shape[0]
    kernel = functools.partial(_attn_kernel, apply_relu=apply_relu)
    return pl.pallas_call(
        kernel,
        out_shape=jax.ShapeDtypeStruct((n_pad, f_out_pad), out_dtype),
        grid_spec=pltpu.PrefetchScalarGridSpec(
            num_scalar_prefetch=1,                           # per-tile nnz flags
            grid=(n_pad // tm, n_pad // ts),
            in_specs=[
                pl.BlockSpec((tm, ts), lambda i, j, fl: (i, j)),          # adj
                pl.BlockSpec((tm, 1), lambda i, j, fl: (i, 0)),           # a_dst
                pl.BlockSpec((1, ts), lambda i, j, fl: (0, j)),           # a_src
                pl.BlockSpec((ts, f_out_pad), lambda i, j, fl: (j, 0)),   # h rows
                pl.BlockSpec((1, f_out_pad), lambda i, j, fl: (0, 0)),    # bias
            ],
            out_specs=pl.BlockSpec((tm, f_out_pad), lambda i, j, fl: (i, 0)),
            scratch_shapes=[
                pltpu.VMEM((tm, 1), jnp.float32),          # running max
                pltpu.VMEM((tm, 1), jnp.float32),          # running sum
                pltpu.VMEM((tm, f_out_pad), jnp.float32),  # f32 accumulator
            ],
        ),
        compiler_params=pltpu.CompilerParams(
            dimension_semantics=("parallel", "arbitrary"),
            vmem_limit_bytes=_VMEM_LIMIT),
    )(flags, adj, a_dst, a_src, hext, bias)


# ----------------------------------------------------------------------------
# One GATConv layer = projection kernel + attention kernel
# ----------------------------------------------------------------------------
def gat_layer(x, adj, flags, w_ext, bias, *, f_out_pad, tm, ts, apply_relu,
              out_dtype):
    hext = _project(x, w_ext)                       # [N_pad, f_out_pad+128] bf16
    a_dst = hext[:, f_out_pad:f_out_pad + 1].astype(jnp.float32)       # [N_pad,1]
    a_src = hext[:, f_out_pad + 1:f_out_pad + 2].astype(jnp.float32)
    a_src = a_src.reshape(1, -1)                                        # [1,N_pad]
    # hext is passed whole; the attention BlockSpec only reads the first
    # f_out_pad (feature) columns, so no wrapper-side slice of the big array.
    return _attention(flags, adj, a_dst, a_src, hext, bias,
                      f_out_pad=f_out_pad, tm=tm, ts=ts,
                      apply_relu=apply_relu, out_dtype=out_dtype)


# ----------------------------------------------------------------------------
# Parameters, adjacency construction and the 3-layer forward (JAX glue)
# ----------------------------------------------------------------------------
def init_gatconv_params(key, f_in, f_out):
    k1, k2, k3 = jax.random.split(key, 3)
    scale = 1.0 / jnp.sqrt(jnp.float32(f_in))
    w = jax.random.normal(k1, (f_in, f_out), jnp.float32) * scale
    att_src = jax.random.normal(k2, (1, f_out), jnp.float32) * 0.1
    att_dst = jax.random.normal(k3, (1, f_out), jnp.float32) * 0.1
    bias = jnp.zeros((1, f_out), jnp.float32)
    return (w, att_src, att_dst, bias)


def init_gat_params(key, num_features, hidden_channels, num_classes):
    k1, k2, k3 = jax.random.split(key, 3)
    return {
        "conv1": init_gatconv_params(k1, num_features, hidden_channels),
        "conv2": init_gatconv_params(k2, hidden_channels, hidden_channels),
        "conv3": init_gatconv_params(k3, hidden_channels, num_classes),
    }


def _prepare_layer(layer_params, f_in_pad, f_out_pad):
    """Lane-padded bf16 extended weight [W | W@att_dst^T | W@att_src^T]."""
    w, att_src, att_dst, bias = layer_params
    f_in, f_out = w.shape
    w_pad = jnp.zeros((f_in_pad, f_out_pad), jnp.float32).at[:f_in, :f_out].set(w)
    # a_dst = h @ att_dst^T = x @ (W @ att_dst^T); same for a_src.
    w_att = jnp.concatenate([w @ att_dst.T, w @ att_src.T], axis=1)   # [f_in, 2]
    w_att_pad = jnp.zeros((f_in_pad, 128), jnp.float32).at[:f_in, :2].set(w_att)
    w_ext = jnp.concatenate([w_pad, w_att_pad], axis=1).astype(jnp.bfloat16)
    bias_pad = jnp.zeros((1, f_out_pad), jnp.float32).at[:, :f_out].set(bias)
    return w_ext, bias_pad


def edge_index_to_adj(edge_index, n_pad):
    src, dst = edge_index[0], edge_index[1]
    adj = jnp.zeros((n_pad, n_pad), jnp.int8)
    adj = adj.at[dst, src].set(1)                       # adj[dst, src] = 1
    # Self-loops on every (incl. padded) node so each softmax row is non-empty
    # (l > 0 in the epilogue's reciprocal).
    adj = jnp.maximum(adj, jnp.eye(n_pad, dtype=jnp.int8))
    return adj


def _tile_flags(adj, tm, ts):
    """Per-(dst-block, src-block) nonzero flags, flattened for SMEM prefetch."""
    n_pad = adj.shape[0]
    gi, gj = n_pad // tm, n_pad // ts
    nz = jnp.any(adj.reshape(gi, tm, gj, ts) != 0, axis=(1, 3))
    return nz.astype(jnp.int32).reshape(-1)


def gat_forward(x, edge_index, params):
    n, f_in = x.shape
    hidden = params["conv1"][0].shape[1]
    num_classes = params["conv3"][0].shape[1]

    n_pad = _round_up(n, 128)
    f_in_pad = _round_up(f_in, 128)
    hid_pad = _round_up(hidden, 128)
    cls_pad = _round_up(num_classes, 128)

    adj = edge_index_to_adj(edge_index, n_pad)
    x_pad = jnp.zeros((n_pad, f_in_pad), jnp.float32).at[:n, :f_in].set(x)

    # Attention tiling: large src tiles amortize grid-step overhead; dst tile
    # capped at n_pad//2 so the "parallel" axis has >=2 blocks (v7x megacore).
    tm = _pick_tile(n_pad, cap=max(128, n_pad // 2))
    ts = _pick_tile(n_pad, cap=1024)
    flags = _tile_flags(adj, tm, ts)

    w1, b1 = _prepare_layer(params["conv1"], f_in_pad, hid_pad)
    w2, b2 = _prepare_layer(params["conv2"], hid_pad, hid_pad)
    w3, b3 = _prepare_layer(params["conv3"], hid_pad, cls_pad)

    h = gat_layer(x_pad, adj, flags, w1, b1, f_out_pad=hid_pad, tm=tm, ts=ts,
                  apply_relu=True, out_dtype=jnp.bfloat16)
    # F.dropout(p=0.5, training=False) -> identity in eval mode
    h = gat_layer(h, adj, flags, w2, b2, f_out_pad=hid_pad, tm=tm, ts=ts,
                  apply_relu=True, out_dtype=jnp.bfloat16)
    out = gat_layer(h, adj, flags, w3, b3, f_out_pad=cls_pad, tm=tm, ts=ts,
                    apply_relu=False, out_dtype=jnp.float32)
    return out[:n, :num_classes]


if __name__ == "__main__":
    num_nodes = 16
    num_features = 8
    hidden_channels = 32
    num_classes = 4

    key = jax.random.PRNGKey(0)
    kx, kp, ke = jax.random.split(key, 3)

    # Node features.
    x = jax.random.normal(kx, (num_nodes, num_features), jnp.float32)

    # Deterministic edge_index: bidirectional ring + a few chords.
    idx = jnp.arange(num_nodes)
    ring_src = jnp.concatenate([idx, (idx + 1) % num_nodes])
    ring_dst = jnp.concatenate([(idx + 1) % num_nodes, idx])
    chord_src = jnp.array([0, 4, 8, 12], jnp.int32)
    chord_dst = jnp.array([8, 12, 0, 4], jnp.int32)
    edge_index = jnp.stack([
        jnp.concatenate([ring_src, chord_src]).astype(jnp.int32),
        jnp.concatenate([ring_dst, chord_dst]).astype(jnp.int32),
    ])  # [2, E]

    params = init_gat_params(kp, num_features, hidden_channels, num_classes)

    fwd = jax.jit(gat_forward)
    out = fwd(x, edge_index, params)
    out = jax.block_until_ready(out)
    assert out.shape == (num_nodes, num_classes)
    assert bool(jnp.all(jnp.isfinite(out)))
    print("KERNEL_OK")
</pallas_src>

<mosaic_0001>
module attributes {stable_mosaic.version = 11 : i64} {
  func.func @_project_kernel(%arg0: i32, %arg1: i32, %arg2: memref<128x128xf32, #tpu.memory_space<vmem>>, %arg3: memref<128x256xbf16, #tpu.memory_space<vmem>>, %arg4: memref<128x256xbf16, #tpu.memory_space<vmem>>, %arg5: memref<128x256xf32, #tpu.memory_space<vmem>>) attributes {dimension_semantics = [#tpu.dimension_semantics<parallel>, #tpu.dimension_semantics<arbitrary>], iteration_bounds = array<i64: 1, 1>, scalar_prefetch = 0 : i64, scratch_operands = 1 : i64, tpu.core_type = #tpu.core_type<tc>, window_params = [{transform_indices = @transform_0, window_bounds = array<i64: 128, 128>}, {transform_indices = @transform_1, window_bounds = array<i64: 128, 256>}, {transform_indices = @transform_2, window_bounds = array<i64: 128, 256>}]} {
    %c0_i32 = arith.constant 0 : i32
    %0 = arith.cmpi eq, %arg1, %c0_i32 : i32
    %1 = arith.extui %0 : i1 to i32
    %c0_i32_0 = arith.constant 0 : i32
    %2 = arith.cmpi ne, %1, %c0_i32_0 : i32
    scf.if %2 {
      %cst_10 = arith.constant 0.000000e+00 : f32
      %13 = vector.broadcast %cst_10 : f32 to vector<128x256xf32>
      %c0_11 = arith.constant 0 : index
      %c0_12 = arith.constant 0 : index
      %14 = vector.load %arg5[%c0_11, %c0_12] : memref<128x256xf32, #tpu.memory_space<vmem>>, vector<128x256xf32>
      tpu.vector_store %arg5[%c0_11, %c0_12], %13 {strides = array<i32>} : memref<128x256xf32, #tpu.memory_space<vmem>>, vector<128x256xf32>,
    } else {
    }
    %c0 = arith.constant 0 : index
    %c0_1 = arith.constant 0 : index
    %3 = vector.load %arg5[%c0, %c0_1] : memref<128x256xf32, #tpu.memory_space<vmem>>, vector<128x256xf32>
    %c0_2 = arith.constant 0 : index
    %c0_3 = arith.constant 0 : index
    %4 = vector.load %arg2[%c0_2, %c0_3] : memref<128x128xf32, #tpu.memory_space<vmem>>, vector<128x128xf32>
    %5 = arith.truncf %4 : vector<128x128xf32> to vector<128x128xbf16>
    %c0_4 = arith.constant 0 : index
    %c0_5 = arith.constant 0 : index
    %6 = vector.load %arg3[%c0_4, %c0_5] : memref<128x256xbf16, #tpu.memory_space<vmem>>, vector<128x256xbf16>
    %cst = arith.constant dense<0.000000e+00> : vector<128x256xf32>
    %7 = tpu.matmul %5, %6, %cst {dimension_numbers = #tpu.dot_dimension_numbers<[1], [0], [0], [1], [0, 0, 1, 1], [], []>} : vector<128x128xbf16>, vector<128x256xbf16>, vector<128x256xf32> -> vector<128x256xf32>
    %8 = arith.addf %3, %7 : vector<128x256xf32>
    %c0_6 = arith.constant 0 : index
    %c0_7 = arith.constant 0 : index
    %9 = vector.load %arg5[%c0_6, %c0_7] : memref<128x256xf32, #tpu.memory_space<vmem>>, vector<128x256xf32>
    tpu.vector_store %arg5[%c0_6, %c0_7], %8 {strides = array<i32>} : memref<128x256xf32, #tpu.memory_space<vmem>>, vector<128x256xf32>,
    %c0_i32_8 = arith.constant 0 : i32
    %10 = arith.cmpi eq, %arg1, %c0_i32_8 : i32
    %11 = arith.extui %10 : i1 to i32
    %c0_i32_9 = arith.constant 0 : i32
    %12 = arith.cmpi ne, %11, %c0_i32_9 : i32
    scf.if %12 {
      %c0_10 = arith.constant 0 : index
      %c0_11 = arith.constant 0 : index
      %13 = vector.load %arg5[%c0_10, %c0_11] : memref<128x256xf32, #tpu.memory_space<vmem>>, vector<128x256xf32>
      %14 = arith.truncf %13 : vector<128x256xf32> to vector<128x256xbf16>
      %c0_12 = arith.constant 0 : index
      %c0_13 = arith.constant 0 : index
      %15 = vector.load %arg4[%c0_12, %c0_13] : memref<128x256xbf16, #tpu.memory_space<vmem>>, vector<128x256xbf16>
      tpu.vector_store %arg4[%c0_12, %c0_13], %14 {strides = array<i32>} : memref<128x256xbf16, #tpu.memory_space<vmem>>, vector<128x256xbf16>,
    } else {
    }
    return
  }
  func.func @transform_0(%arg0: i32, %arg1: i32) -> (i32, i32) {
    %c0_i32 = arith.constant 0 : i32
    return %arg0, %arg1 : i32, i32
  }
  func.func @transform_1(%arg0: i32, %arg1: i32) -> (i32, i32) {
    %c0_i32 = arith.constant 0 : i32
    %c0_i32_0 = arith.constant 0 : i32
    return %arg1, %c0_i32 : i32, i32
  }
  func.func @transform_2(%arg0: i32, %arg1: i32) -> (i32, i32) {
    %c0_i32 = arith.constant 0 : i32
    %c0_i32_0 = arith.constant 0 : i32
    return %arg0, %c0_i32 : i32, i32
  }
}

module attributes {stable_mosaic.version = 11 : i64} {
  func.func @_attn_kernel(%arg0: i32, %arg1: i32, %arg2: memref<1xi32, #tpu.memory_space<smem>>, %arg3: memref<128x128xi8, #tpu.memory_space<vmem>>, %arg4: memref<128x1xf32, #tpu.memory_space<vmem>>, %arg5: memref<1x128xf32, #tpu.memory_space<vmem>>, %arg6: memref<128x128xbf16, #tpu.memory_space<vmem>>, %arg7: memref<1x128xf32, #tpu.memory_space<vmem>>, %arg8: memref<128x128xbf16, #tpu.memory_space<vmem>>, %arg9: memref<128x1xf32, #tpu.memory_space<vmem>>, %arg10: memref<128x1xf32, #tpu.memory_space<vmem>>, %arg11: memref<128x128xf32, #tpu.memory_space<vmem>>) attributes {dimension_semantics = [#tpu.dimension_semantics<parallel>, #tpu.dimension_semantics<arbitrary>], iteration_bounds = array<i64: 1, 1>, scalar_prefetch = 1 : i64, scratch_operands = 3 : i64, tpu.core_type = #tpu.core_type<tc>, window_params = [{transform_indices = @transform_0, window_bounds = array<i64: 128, 128>}, {transform_indices = @transform_1, window_bounds = array<i64: 128, 1>}, {transform_indices = @transform_2, window_bounds = array<i64: 1, 128>}, {transform_indices = @transform_3, window_bounds = array<i64: 128, 128>}, {pipeline_mode = #tpu.pipeline_mode<synchronous>, transform_indices = @transform_4, window_bounds = array<i64: 1, 128>}, {transform_indices = @transform_5, window_bounds = array<i64: 128, 128>}]} {
    %c0_i32 = arith.constant 0 : i32
    %0 = arith.cmpi eq, %arg1, %c0_i32 : i32
    %1 = arith.extui %0 : i1 to i32
    %c0_i32_0 = arith.constant 0 : i32
    %2 = arith.cmpi ne, %1, %c0_i32_0 : i32
    scf.if %2 {
      %cst = arith.constant -1.000000e+30 : f32
      %13 = vector.broadcast %cst : f32 to vector<128x1xf32>
      %c0 = arith.constant 0 : index
      %c0_5 = arith.constant 0 : index
      %14 = vector.load %arg9[%c0, %c0_5] : memref<128x1xf32, #tpu.memory_space<vmem>>, vector<128x1xf32>
      tpu.vector_store %arg9[%c0, %c0_5], %13 {strides = array<i32>} : memref<128x1xf32, #tpu.memory_space<vmem>>, vector<128x1xf32>,
      %cst_6 = arith.constant 0.000000e+00 : f32
      %15 = vector.broadcast %cst_6 : f32 to vector<128x1xf32>
      %c0_7 = arith.constant 0 : index
      %c0_8 = arith.constant 0 : index
      %16 = vector.load %arg10[%c0_7, %c0_8] : memref<128x1xf32, #tpu.memory_space<vmem>>, vector<128x1xf32>
      tpu.vector_store %arg10[%c0_7, %c0_8], %15 {strides = array<i32>} : memref<128x1xf32, #tpu.memory_space<vmem>>, vector<128x1xf32>,
      %cst_9 = arith.constant 0.000000e+00 : f32
      %17 = vector.broadcast %cst_9 : f32 to vector<128x128xf32>
      %c0_10 = arith.constant 0 : index
      %c0_11 = arith.constant 0 : index
      %18 = vector.load %arg11[%c0_10, %c0_11] : memref<128x128xf32, #tpu.memory_space<vmem>>, vector<128x128xf32>
      tpu.vector_store %arg11[%c0_10, %c0_11], %17 {strides = array<i32>} : memref<128x128xf32, #tpu.memory_space<vmem>>, vector<128x128xf32>,
    } else {
    }
    %c1_i32 = arith.constant 1 : i32
    %3 = arith.muli %arg0, %c1_i32 : i32
    %4 = arith.addi %3, %arg1 : i32
    %5 = arith.index_cast %4 : i32 to index
    %6 = memref.load %arg2[%5] : memref<1xi32, #tpu.memory_space<smem>>
    %c0_i32_1 = arith.constant 0 : i32
    %7 = arith.cmpi ne, %6, %c0_i32_1 : i32
    %8 = arith.extui %7 : i1 to i32
    %c0_i32_2 = arith.constant 0 : i32
    %9 = arith.cmpi ne, %8, %c0_i32_2 : i32
    scf.if %9 {
      %c0 = arith.constant 0 : index
      %c0_5 = arith.constant 0 : index
      %13 = vector.load %arg4[%c0, %c0_5] : memref<128x1xf32, #tpu.memory_space<vmem>>, vector<128x1xf32>
      %c0_6 = arith.constant 0 : index
      %c0_7 = arith.constant 0 : index
      %14 = vector.load %arg5[%c0_6, %c0_7] : memref<1x128xf32, #tpu.memory_space<vmem>>, vector<1x128xf32>
      %15 = vector.broadcast %13 : vector<128x1xf32> to vector<128x128xf32>
      %16 = vector.broadcast %14 : vector<1x128xf32> to vector<128x128xf32>
      %17 = arith.addf %15, %16 : vector<128x128xf32>
      %cst = arith.constant 2.000000e-01 : f32
      %18 = vector.broadcast %cst : f32 to vector<128x128xf32>
      %19 = arith.mulf %18, %17 : vector<128x128xf32>
      %20 = arith.maximumf %17, %19 : vector<128x128xf32>
      %c0_8 = arith.constant 0 : index
      %c0_9 = arith.constant 0 : index
      %21 = vector.load %arg3[%c0_8, %c0_9] : memref<128x128xi8, #tpu.memory_space<vmem>>, vector<128x128xi8>
      %c0_i8 = arith.constant 0 : i8
      %22 = vector.broadcast %c0_i8 : i8 to vector<128x128xi8>
      %23 = arith.cmpi ne, %21, %22 : vector<128x128xi8>
      %cst_10 = arith.constant -1.000000e+30 : f32
      %24 = vector.broadcast %cst_10 : f32 to vector<128x128xf32>
      %25 = arith.select %23, %20, %24 : vector<128x128xi1>, vector<128x128xf32>
      %c0_11 = arith.constant 0 : index
      %c0_12 = arith.constant 0 : index
      %26 = vector.load %arg9[%c0_11, %c0_12] : memref<128x1xf32, #tpu.memory_space<vmem>>, vector<128x1xf32>
      %cst_13 = arith.constant dense<0xFF800000> : vector<128xf32>
      %27 = vector.multi_reduction <maximumf>, %25, %cst_13 [1] : vector<128x128xf32> to vector<128xf32>
      %28 = vector.shape_cast %27 : vector<128xf32> to vector<128x1xf32>
      %29 = arith.maximumf %26, %28 : vector<128x1xf32>
      %30 = arith.subf %26, %29 : vector<128x1xf32>
      %31 = math.exp %30 : vector<128x1xf32>
      %32 = vector.broadcast %29 : vector<128x1xf32> to vector<128x128xf32>
      %33 = arith.subf %25, %32 : vector<128x128xf32>
      %34 = math.exp %33 : vector<128x128xf32>
      %c0_14 = arith.constant 0 : index
      %c0_15 = arith.constant 0 : index
      %35 = vector.load %arg10[%c0_14, %c0_15] : memref<128x1xf32, #tpu.memory_space<vmem>>, vector<128x1xf32>
      %36 = arith.mulf %31, %35 : vector<128x1xf32>
      %cst_16 = arith.constant dense<0.000000e+00> : vector<128xf32>
      %37 = vector.multi_reduction <add>, %34, %cst_16 [1] : vector<128x128xf32> to vector<128xf32>
      %38 = vector.shape_cast %37 : vector<128xf32> to vector<128x1xf32>
      %39 = arith.addf %36, %38 : vector<128x1xf32>
      %c0_17 = arith.constant 0 : index
      %c0_18 = arith.constant 0 : index
      %40 = vector.load %arg10[%c0_17, %c0_18] : memref<128x1xf32, #tpu.memory_space<vmem>>, vector<128x1xf32>
      tpu.vector_store %arg10[%c0_17, %c0_18], %39 {strides = array<i32>} : memref<128x1xf32, #tpu.memory_space<vmem>>, vector<128x1xf32>,
      %c0_19 = arith.constant 0 : index
      %c0_20 = arith.constant 0 : index
      %41 = vector.load %arg11[%c0_19, %c0_20] : memref<128x128xf32, #tpu.memory_space<vmem>>, vector<128x128xf32>
      %42 = vector.broadcast %31 : vector<128x1xf32> to vector<128x128xf32>
      %43 = arith.mulf %42, %41 : vector<128x128xf32>
      %44 = arith.truncf %34 : vector<128x128xf32> to vector<128x128xbf16>
      %c0_21 = arith.constant 0 : index
      %c0_22 = arith.constant 0 : index
      %45 = vector.load %arg6[%c0_21, %c0_22] : memref<128x128xbf16, #tpu.memory_space<vmem>>, vector<128x128xbf16>
      %cst_23 = arith.constant dense<0.000000e+00> : vector<128x128xf32>
      %46 = tpu.matmul %44, %45, %cst_23 {dimension_numbers = #tpu.dot_dimension_numbers<[1], [0], [0], [1], [0, 0, 1, 1], [], []>} : vector<128x128xbf16>, vector<128x128xbf16>, vector<128x128xf32> -> vector<128x128xf32>
      %47 = arith.addf %43, %46 : vector<128x128xf32>
      %c0_24 = arith.constant 0 : index
      %c0_25 = arith.constant 0 : index
      %48 = vector.load %arg11[%c0_24, %c0_25] : memref<128x128xf32, #tpu.memory_space<vmem>>, vector<128x128xf32>
      tpu.vector_store %arg11[%c0_24, %c0_25], %47 {strides = array<i32>} : memref<128x128xf32, #tpu.memory_space<vmem>>, vector<128x128xf32>,
      %c0_26 = arith.constant 0 : index
      %c0_27 = arith.constant 0 : index
      %49 = vector.load %arg9[%c0_26, %c0_27] : memref<128x1xf32, #tpu.memory_space<vmem>>, vector<128x1xf32>
      tpu.vector_store %arg9[%c0_26, %c0_27], %29 {strides = array<i32>} : memref<128x1xf32, #tpu.memory_space<vmem>>, vector<128x1xf32>,
    } else {
    }
    %c0_i32_3 = arith.constant 0 : i32
    %10 = arith.cmpi eq, %arg1, %c0_i32_3 : i32
    %11 = arith.extui %10 : i1 to i32
    %c0_i32_4 = arith.constant 0 : i32
    %12 = arith.cmpi ne, %11, %c0_i32_4 : i32
    scf.if %12 {
      %c0 = arith.constant 0 : index
      %c0_5 = arith.constant 0 : index
      %13 = vector.load %arg10[%c0, %c0_5] : memref<128x1xf32, #tpu.memory_space<vmem>>, vector<128x1xf32>
      %14 = tpu.reciprocal %13 {approx = true} : vector<128x1xf32> -> vector<128x1xf32>
      %c0_6 = arith.constant 0 : index
      %c0_7 = arith.constant 0 : index
      %15 = vector.load %arg11[%c0_6, %c0_7] : memref<128x128xf32, #tpu.memory_space<vmem>>, vector<128x128xf32>
      %16 = vector.broadcast %14 : vector<128x1xf32> to vector<128x128xf32>
      %17 = arith.mulf %15, %16 : vector<128x128xf32>
      %c0_8 = arith.constant 0 : index
      %c0_9 = arith.constant 0 : index
      %18 = vector.load %arg7[%c0_8, %c0_9] : memref<1x128xf32, #tpu.memory_space<vmem>>, vector<1x128xf32>
      %19 = vector.broadcast %18 : vector<1x128xf32> to vector<128x128xf32>
      %20 = arith.addf %17, %19 : vector<128x128xf32>
      %cst = arith.constant 0.000000e+00 : f32
      %21 = vector.broadcast %cst : f32 to vector<128x128xf32>
      %22 = arith.maximumf %20, %21 : vector<128x128xf32>
      %23 = arith.truncf %22 : vector<128x128xf32> to vector<128x128xbf16>
      %c0_10 = arith.constant 0 : index
      %c0_11 = arith.constant 0 : index
      %24 = vector.load %arg8[%c0_10, %c0_11] : memref<128x128xbf16, #tpu.memory_space<vmem>>, vector<128x128xbf16>
      tpu.vector_store %arg8[%c0_10, %c0_11], %23 {strides = array<i32>} : memref<128x128xbf16, #tpu.memory_space<vmem>>, vector<128x128xbf16>,
    } else {
    }
    return
  }
  func.func @transform_0(%arg0: i32, %arg1: i32, %arg2: memref<1xi32, #tpu.memory_space<smem>>) -> (i32, i32) {
    %c0_i32 = arith.constant 0 : i32
    return %arg0, %arg1 : i32, i32
  }
  func.func @transform_1(%arg0: i32, %arg1: i32, %arg2: memref<1xi32, #tpu.memory_space<smem>>) -> (i32, i32) {
    %c0_i32 = arith.constant 0 : i32
    %c0_i32_0 = arith.constant 0 : i32
    return %arg0, %c0_i32 : i32, i32
  }
  func.func @transform_2(%arg0: i32, %arg1: i32, %arg2: memref<1xi32, #tpu.memory_space<smem>>) -> (i32, i32) {
    %c0_i32 = arith.constant 0 : i32
    %c0_i32_0 = arith.constant 0 : i32
    return %c0_i32, %arg1 : i32, i32
  }
  func.func @transform_3(%arg0: i32, %arg1: i32, %arg2: memref<1xi32, #tpu.memory_space<smem>>) -> (i32, i32) {
    %c0_i32 = arith.constant 0 : i32
    %c0_i32_0 = arith.constant 0 : i32
    return %arg1, %c0_i32 : i32, i32
  }
  func.func @transform_4(%arg0: i32, %arg1: i32, %arg2: memref<1xi32, #tpu.memory_space<smem>>) -> (i32, i32) {
    %c0_i32 = arith.constant 0 : i32
    %c0_i32_0 = arith.constant 0 : i32
    %c0_i32_1 = arith.constant 0 : i32
    return %c0_i32, %c0_i32_0 : i32, i32
  }
  func.func @transform_5(%arg0: i32, %arg1: i32, %arg2: memref<1xi32, #tpu.memory_space<smem>>) -> (i32, i32) {
    %c0_i32 = arith.constant 0 : i32
    %c0_i32_0 = arith.constant 0 : i32
    return %arg0, %c0_i32 : i32, i32
  }
}

module attributes {stable_mosaic.version = 11 : i64} {
  func.func @_project_kernel(%arg0: i32, %arg1: i32, %arg2: memref<128x128xbf16, #tpu.memory_space<vmem>>, %arg3: memref<128x256xbf16, #tpu.memory_space<vmem>>, %arg4: memref<128x256xbf16, #tpu.memory_space<vmem>>, %arg5: memref<128x256xf32, #tpu.memory_space<vmem>>) attributes {dimension_semantics = [#tpu.dimension_semantics<parallel>, #tpu.dimension_semantics<arbitrary>], iteration_bounds = array<i64: 1, 1>, scalar_prefetch = 0 : i64, scratch_operands = 1 : i64, tpu.core_type = #tpu.core_type<tc>, window_params = [{transform_indices = @transform_0, window_bounds = array<i64: 128, 128>}, {transform_indices = @transform_1, window_bounds = array<i64: 128, 256>}, {transform_indices = @transform_2, window_bounds = array<i64: 128, 256>}]} {
    %c0_i32 = arith.constant 0 : i32
    %0 = arith.cmpi eq, %arg1, %c0_i32 : i32
    %1 = arith.extui %0 : i1 to i32
    %c0_i32_0 = arith.constant 0 : i32
    %2 = arith.cmpi ne, %1, %c0_i32_0 : i32
    scf.if %2 {
      %cst_10 = arith.constant 0.000000e+00 : f32
      %12 = vector.broadcast %cst_10 : f32 to vector<128x256xf32>
      %c0_11 = arith.constant 0 : index
      %c0_12 = arith.constant 0 : index
      %13 = vector.load %arg5[%c0_11, %c0_12] : memref<128x256xf32, #tpu.memory_space<vmem>>, vector<128x256xf32>
      tpu.vector_store %arg5[%c0_11, %c0_12], %12 {strides = array<i32>} : memref<128x256xf32, #tpu.memory_space<vmem>>, vector<128x256xf32>,
    } else {
    }
    %c0 = arith.constant 0 : index
    %c0_1 = arith.constant 0 : index
    %3 = vector.load %arg5[%c0, %c0_1] : memref<128x256xf32, #tpu.memory_space<vmem>>, vector<128x256xf32>
    %c0_2 = arith.constant 0 : index
    %c0_3 = arith.constant 0 : index
    %4 = vector.load %arg2[%c0_2, %c0_3] : memref<128x128xbf16, #tpu.memory_space<vmem>>, vector<128x128xbf16>
    %c0_4 = arith.constant 0 : index
    %c0_5 = arith.constant 0 : index
    %5 = vector.load %arg3[%c0_4, %c0_5] : memref<128x256xbf16, #tpu.memory_space<vmem>>, vector<128x256xbf16>
    %cst = arith.constant dense<0.000000e+00> : vector<128x256xf32>
    %6 = tpu.matmul %4, %5, %cst {dimension_numbers = #tpu.dot_dimension_numbers<[1], [0], [0], [1], [0, 0, 1, 1], [], []>} : vector<128x128xbf16>, vector<128x256xbf16>, vector<128x256xf32> -> vector<128x256xf32>
    %7 = arith.addf %3, %6 : vector<128x256xf32>
    %c0_6 = arith.constant 0 : index
    %c0_7 = arith.constant 0 : index
    %8 = vector.load %arg5[%c0_6, %c0_7] : memref<128x256xf32, #tpu.memory_space<vmem>>, vector<128x256xf32>
    tpu.vector_store %arg5[%c0_6, %c0_7], %7 {strides = array<i32>} : memref<128x256xf32, #tpu.memory_space<vmem>>, vector<128x256xf32>,
    %c0_i32_8 = arith.constant 0 : i32
    %9 = arith.cmpi eq, %arg1, %c0_i32_8 : i32
    %10 = arith.extui %9 : i1 to i32
    %c0_i32_9 = arith.constant 0 : i32
    %11 = arith.cmpi ne, %10, %c0_i32_9 : i32
    scf.if %11 {
      %c0_10 = arith.constant 0 : index
      %c0_11 = arith.constant 0 : index
      %12 = vector.load %arg5[%c0_10, %c0_11] : memref<128x256xf32, #tpu.memory_space<vmem>>, vector<128x256xf32>
      %13 = arith.truncf %12 : vector<128x256xf32> to vector<128x256xbf16>
      %c0_12 = arith.constant 0 : index
      %c0_13 = arith.constant 0 : index
      %14 = vector.load %arg4[%c0_12, %c0_13] : memref<128x256xbf16, #tpu.memory_space<vmem>>, vector<128x256xbf16>
      tpu.vector_store %arg4[%c0_12, %c0_13], %13 {strides = array<i32>} : memref<128x256xbf16, #tpu.memory_space<vmem>>, vector<128x256xbf16>,
    } else {
    }
    return
  }
  func.func @transform_0(%arg0: i32, %arg1: i32) -> (i32, i32) {
    %c0_i32 = arith.constant 0 : i32
    return %arg0, %arg1 : i32, i32
  }
  func.func @transform_1(%arg0: i32, %arg1: i32) -> (i32, i32) {
    %c0_i32 = arith.constant 0 : i32
    %c0_i32_0 = arith.constant 0 : i32
    return %arg1, %c0_i32 : i32, i32
  }
  func.func @transform_2(%arg0: i32, %arg1: i32) -> (i32, i32) {
    %c0_i32 = arith.constant 0 : i32
    %c0_i32_0 = arith.constant 0 : i32
    return %arg0, %c0_i32 : i32, i32
  }
}

module attributes {stable_mosaic.version = 11 : i64} {
  func.func @_attn_kernel(%arg0: i32, %arg1: i32, %arg2: memref<1xi32, #tpu.memory_space<smem>>, %arg3: memref<128x128xi8, #tpu.memory_space<vmem>>, %arg4: memref<128x1xf32, #tpu.memory_space<vmem>>, %arg5: memref<1x128xf32, #tpu.memory_space<vmem>>, %arg6: memref<128x128xbf16, #tpu.memory_space<vmem>>, %arg7: memref<1x128xf32, #tpu.memory_space<vmem>>, %arg8: memref<128x128xf32, #tpu.memory_space<vmem>>, %arg9: memref<128x1xf32, #tpu.memory_space<vmem>>, %arg10: memref<128x1xf32, #tpu.memory_space<vmem>>, %arg11: memref<128x128xf32, #tpu.memory_space<vmem>>) attributes {dimension_semantics = [#tpu.dimension_semantics<parallel>, #tpu.dimension_semantics<arbitrary>], iteration_bounds = array<i64: 1, 1>, scalar_prefetch = 1 : i64, scratch_operands = 3 : i64, tpu.core_type = #tpu.core_type<tc>, window_params = [{transform_indices = @transform_0, window_bounds = array<i64: 128, 128>}, {transform_indices = @transform_1, window_bounds = array<i64: 128, 1>}, {transform_indices = @transform_2, window_bounds = array<i64: 1, 128>}, {transform_indices = @transform_3, window_bounds = array<i64: 128, 128>}, {pipeline_mode = #tpu.pipeline_mode<synchronous>, transform_indices = @transform_4, window_bounds = array<i64: 1, 128>}, {transform_indices = @transform_5, window_bounds = array<i64: 128, 128>}]} {
    %c0_i32 = arith.constant 0 : i32
    %0 = arith.cmpi eq, %arg1, %c0_i32 : i32
    %1 = arith.extui %0 : i1 to i32
    %c0_i32_0 = arith.constant 0 : i32
    %2 = arith.cmpi ne, %1, %c0_i32_0 : i32
    scf.if %2 {
      %cst = arith.constant -1.000000e+30 : f32
      %13 = vector.broadcast %cst : f32 to vector<128x1xf32>
      %c0 = arith.constant 0 : index
      %c0_5 = arith.constant 0 : index
      %14 = vector.load %arg9[%c0, %c0_5] : memref<128x1xf32, #tpu.memory_space<vmem>>, vector<128x1xf32>
      tpu.vector_store %arg9[%c0, %c0_5], %13 {strides = array<i32>} : memref<128x1xf32, #tpu.memory_space<vmem>>, vector<128x1xf32>,
      %cst_6 = arith.constant 0.000000e+00 : f32
      %15 = vector.broadcast %cst_6 : f32 to vector<128x1xf32>
      %c0_7 = arith.constant 0 : index
      %c0_8 = arith.constant 0 : index
      %16 = vector.load %arg10[%c0_7, %c0_8] : memref<128x1xf32, #tpu.memory_space<vmem>>, vector<128x1xf32>
      tpu.vector_store %arg10[%c0_7, %c0_8], %15 {strides = array<i32>} : memref<128x1xf32, #tpu.memory_space<vmem>>, vector<128x1xf32>,
      %cst_9 = arith.constant 0.000000e+00 : f32
      %17 = vector.broadcast %cst_9 : f32 to vector<128x128xf32>
      %c0_10 = arith.constant 0 : index
      %c0_11 = arith.constant 0 : index
      %18 = vector.load %arg11[%c0_10, %c0_11] : memref<128x128xf32, #tpu.memory_space<vmem>>, vector<128x128xf32>
      tpu.vector_store %arg11[%c0_10, %c0_11], %17 {strides = array<i32>} : memref<128x128xf32, #tpu.memory_space<vmem>>, vector<128x128xf32>,
    } else {
    }
    %c1_i32 = arith.constant 1 : i32
    %3 = arith.muli %arg0, %c1_i32 : i32
    %4 = arith.addi %3, %arg1 : i32
    %5 = arith.index_cast %4 : i32 to index
    %6 = memref.load %arg2[%5] : memref<1xi32, #tpu.memory_space<smem>>
    %c0_i32_1 = arith.constant 0 : i32
    %7 = arith.cmpi ne, %6, %c0_i32_1 : i32
    %8 = arith.extui %7 : i1 to i32
    %c0_i32_2 = arith.constant 0 : i32
    %9 = arith.cmpi ne, %8, %c0_i32_2 : i32
    scf.if %9 {
      %c0 = arith.constant 0 : index
      %c0_5 = arith.constant 0 : index
      %13 = vector.load %arg4[%c0, %c0_5] : memref<128x1xf32, #tpu.memory_space<vmem>>, vector<128x1xf32>
      %c0_6 = arith.constant 0 : index
      %c0_7 = arith.constant 0 : index
      %14 = vector.load %arg5[%c0_6, %c0_7] : memref<1x128xf32, #tpu.memory_space<vmem>>, vector<1x128xf32>
      %15 = vector.broadcast %13 : vector<128x1xf32> to vector<128x128xf32>
      %16 = vector.broadcast %14 : vector<1x128xf32> to vector<128x128xf32>
      %17 = arith.addf %15, %16 : vector<128x128xf32>
      %cst = arith.constant 2.000000e-01 : f32
      %18 = vector.broadcast %cst : f32 to vector<128x128xf32>
      %19 = arith.mulf %18, %17 : vector<128x128xf32>
      %20 = arith.maximumf %17, %19 : vector<128x128xf32>
      %c0_8 = arith.constant 0 : index
      %c0_9 = arith.constant 0 : index
      %21 = vector.load %arg3[%c0_8, %c0_9] : memref<128x128xi8, #tpu.memory_space<vmem>>, vector<128x128xi8>
      %c0_i8 = arith.constant 0 : i8
      %22 = vector.broadcast %c0_i8 : i8 to vector<128x128xi8>
      %23 = arith.cmpi ne, %21, %22 : vector<128x128xi8>
      %cst_10 = arith.constant -1.000000e+30 : f32
      %24 = vector.broadcast %cst_10 : f32 to vector<128x128xf32>
      %25 = arith.select %23, %20, %24 : vector<128x128xi1>, vector<128x128xf32>
      %c0_11 = arith.constant 0 : index
      %c0_12 = arith.constant 0 : index
      %26 = vector.load %arg9[%c0_11, %c0_12] : memref<128x1xf32, #tpu.memory_space<vmem>>, vector<128x1xf32>
      %cst_13 = arith.constant dense<0xFF800000> : vector<128xf32>
      %27 = vector.multi_reduction <maximumf>, %25, %cst_13 [1] : vector<128x128xf32> to vector<128xf32>
      %28 = vector.shape_cast %27 : vector<128xf32> to vector<128x1xf32>
      %29 = arith.maximumf %26, %28 : vector<128x1xf32>
      %30 = arith.subf %26, %29 : vector<128x1xf32>
      %31 = math.exp %30 : vector<128x1xf32>
      %32 = vector.broadcast %29 : vector<128x1xf32> to vector<128x128xf32>
      %33 = arith.subf %25, %32 : vector<128x128xf32>
      %34 = math.exp %33 : vector<128x128xf32>
      %c0_14 = arith.constant 0 : index
      %c0_15 = arith.constant 0 : index
      %35 = vector.load %arg10[%c0_14, %c0_15] : memref<128x1xf32, #tpu.memory_space<vmem>>, vector<128x1xf32>
      %36 = arith.mulf %31, %35 : vector<128x1xf32>
      %cst_16 = arith.constant dense<0.000000e+00> : vector<128xf32>
      %37 = vector.multi_reduction <add>, %34, %cst_16 [1] : vector<128x128xf32> to vector<128xf32>
      %38 = vector.shape_cast %37 : vector<128xf32> to vector<128x1xf32>
      %39 = arith.addf %36, %38 : vector<128x1xf32>
      %c0_17 = arith.constant 0 : index
      %c0_18 = arith.constant 0 : index
      %40 = vector.load %arg10[%c0_17, %c0_18] : memref<128x1xf32, #tpu.memory_space<vmem>>, vector<128x1xf32>
      tpu.vector_store %arg10[%c0_17, %c0_18], %39 {strides = array<i32>} : memref<128x1xf32, #tpu.memory_space<vmem>>, vector<128x1xf32>,
      %c0_19 = arith.constant 0 : index
      %c0_20 = arith.constant 0 : index
      %41 = vector.load %arg11[%c0_19, %c0_20] : memref<128x128xf32, #tpu.memory_space<vmem>>, vector<128x128xf32>
      %42 = vector.broadcast %31 : vector<128x1xf32> to vector<128x128xf32>
      %43 = arith.mulf %42, %41 : vector<128x128xf32>
      %44 = arith.truncf %34 : vector<128x128xf32> to vector<128x128xbf16>
      %c0_21 = arith.constant 0 : index
      %c0_22 = arith.constant 0 : index
      %45 = vector.load %arg6[%c0_21, %c0_22] : memref<128x128xbf16, #tpu.memory_space<vmem>>, vector<128x128xbf16>
      %cst_23 = arith.constant dense<0.000000e+00> : vector<128x128xf32>
      %46 = tpu.matmul %44, %45, %cst_23 {dimension_numbers = #tpu.dot_dimension_numbers<[1], [0], [0], [1], [0, 0, 1, 1], [], []>} : vector<128x128xbf16>, vector<128x128xbf16>, vector<128x128xf32> -> vector<128x128xf32>
      %47 = arith.addf %43, %46 : vector<128x128xf32>
      %c0_24 = arith.constant 0 : index
      %c0_25 = arith.constant 0 : index
      %48 = vector.load %arg11[%c0_24, %c0_25] : memref<128x128xf32, #tpu.memory_space<vmem>>, vector<128x128xf32>
      tpu.vector_store %arg11[%c0_24, %c0_25], %47 {strides = array<i32>} : memref<128x128xf32, #tpu.memory_space<vmem>>, vector<128x128xf32>,
      %c0_26 = arith.constant 0 : index
      %c0_27 = arith.constant 0 : index
      %49 = vector.load %arg9[%c0_26, %c0_27] : memref<128x1xf32, #tpu.memory_space<vmem>>, vector<128x1xf32>
      tpu.vector_store %arg9[%c0_26, %c0_27], %29 {strides = array<i32>} : memref<128x1xf32, #tpu.memory_space<vmem>>, vector<128x1xf32>,
    } else {
    }
    %c0_i32_3 = arith.constant 0 : i32
    %10 = arith.cmpi eq, %arg1, %c0_i32_3 : i32
    %11 = arith.extui %10 : i1 to i32
    %c0_i32_4 = arith.constant 0 : i32
    %12 = arith.cmpi ne, %11, %c0_i32_4 : i32
    scf.if %12 {
      %c0 = arith.constant 0 : index
      %c0_5 = arith.constant 0 : index
      %13 = vector.load %arg10[%c0, %c0_5] : memref<128x1xf32, #tpu.memory_space<vmem>>, vector<128x1xf32>
      %14 = tpu.reciprocal %13 {approx = true} : vector<128x1xf32> -> vector<128x1xf32>
      %c0_6 = arith.constant 0 : index
      %c0_7 = arith.constant 0 : index
      %15 = vector.load %arg11[%c0_6, %c0_7] : memref<128x128xf32, #tpu.memory_space<vmem>>, vector<128x128xf32>
      %16 = vector.broadcast %14 : vector<128x1xf32> to vector<128x128xf32>
      %17 = arith.mulf %15, %16 : vector<128x128xf32>
      %c0_8 = arith.constant 0 : index
      %c0_9 = arith.constant 0 : index
      %18 = vector.load %arg7[%c0_8, %c0_9] : memref<1x128xf32, #tpu.memory_space<vmem>>, vector<1x128xf32>
      %19 = vector.broadcast %18 : vector<1x128xf32> to vector<128x128xf32>
      %20 = arith.addf %17, %19 : vector<128x128xf32>
      %c0_10 = arith.constant 0 : index
      %c0_11 = arith.constant 0 : index
      %21 = vector.load %arg8[%c0_10, %c0_11] : memref<128x128xf32, #tpu.memory_space<vmem>>, vector<128x128xf32>
      tpu.vector_store %arg8[%c0_10, %c0_11], %20 {strides = array<i32>} : memref<128x128xf32, #tpu.memory_space<vmem>>, vector<128x128xf32>,
    } else {
    }
    return
  }
  func.func @transform_0(%arg0: i32, %arg1: i32, %arg2: memref<1xi32, #tpu.memory_space<smem>>) -> (i32, i32) {
    %c0_i32 = arith.constant 0 : i32
    return %arg0, %arg1 : i32, i32
  }
  func.func @transform_1(%arg0: i32, %arg1: i32, %arg2: memref<1xi32, #tpu.memory_space<smem>>) -> (i32, i32) {
    %c0_i32 = arith.constant 0 : i32
    %c0_i32_0 = arith.constant 0 : i32
    return %arg0, %c0_i32 : i32, i32
  }
  func.func @transform_2(%arg0: i32, %arg1: i32, %arg2: memref<1xi32, #tpu.memory_space<smem>>) -> (i32, i32) {
    %c0_i32 = arith.constant 0 : i32
    %c0_i32_0 = arith.constant 0 : i32
    return %c0_i32, %arg1 : i32, i32
  }
  func.func @transform_3(%arg0: i32, %arg1: i32, %arg2: memref<1xi32, #tpu.memory_space<smem>>) -> (i32, i32) {
    %c0_i32 = arith.constant 0 : i32
    %c0_i32_0 = arith.constant 0 : i32
    return %arg1, %c0_i32 : i32, i32
  }
  func.func @transform_4(%arg0: i32, %arg1: i32, %arg2: memref<1xi32, #tpu.memory_space<smem>>) -> (i32, i32) {
    %c0_i32 = arith.constant 0 : i32
    %c0_i32_0 = arith.constant 0 : i32
    %c0_i32_1 = arith.constant 0 : i32
    return %c0_i32, %c0_i32_0 : i32, i32
  }
  func.func @transform_5(%arg0: i32, %arg1: i32, %arg2: memref<1xi32, #tpu.memory_space<smem>>) -> (i32, i32) {
    %c0_i32 = arith.constant 0 : i32
    %c0_i32_0 = arith.constant 0 : i32
    return %arg0, %c0_i32 : i32, i32
  }
}

</mosaic_0001>

<bundles_post_ra>
// kernel: gat_forward.6
= control target key start
LH: loop header
LB: loop body
LE: loop exit
PB: predicated region body
PF: predicated region fallthrough
CT: control target
= control target key end

     0   :  { %s735_s1 = inlined_call_operand.vmem [shape: bf16[128,256], index: 1, kind: input, shape index: {}]   ;;  %s736_s0 = inlined_call_operand.vmem [shape: f32[128,128], index: 0, kind: input, shape index: {}]   ;;  %s737_s2 = inlined_call_operand.vmem [shape: bf16[128,256], index: 2, kind: output, shape index: {}]  }
   0x1   :  { %v490_v0 = vld [vmem:[%s735_s1 + $0x70] sm:$0xf]  ;;  %v511_v1 = vld [vmem:[%s735_s1 + $0x74] sm:$0xf0]  ;;  %v510_v2 = vld [vmem:[%s735_s1 + $0x74] sm:$0xf] }
   0x2   :  { %v491_v3 = vor.u32 %v511_v1, %v490_v0  ;;  %v492_v4 = vld [vmem:[%s735_s1 + $0x78] sm:$0xf0]  ;;  %v482_v5 = vld [vmem:[%s735_s1 + $0x60] sm:$0xf]  ;;  %v509_v6 = vld [vmem:[%s735_s1 + $0x64] sm:$0xf0] }
   0x3   :  { %v495_v7 = vor.u32 %v510_v2, %v492_v4  ;;  %v508_v8 = vld [vmem:[%s735_s1 + $0x64] sm:$0xf]  ;;  %v484_v9 = vld [vmem:[%s735_s1 + $0x68] sm:$0xf0]  ;;  %v483_v10 = vor.u32 %v509_v6, %v482_v5  ;;  %v474_v12 = vld [vmem:[%s735_s1 + $0x50] sm:$0xf] }
   0x4   :  { %199 = vmatpush.bf16.msra.mxu0 %v491_v3  ;;  %512 = vmatpush.bf16.msra.mxu2 %v491_v3  ;;  %v487_v11 = vor.u32 %v508_v8, %v484_v9  ;;  %v507_v13 = vld [vmem:[%s735_s1 + $0x54] sm:$0xf0]  ;;  %v506_v14 = vld [vmem:[%s735_s1 + $0x54] sm:$0xf]  ;;  %v476_v15 = vld [vmem:[%s735_s1 + $0x58] sm:$0xf0] }
   0x5   :  { %248 = vmatpush.bf16.msra.mxu1 %v495_v7  ;;  %520 = vmatpush.bf16.msra.mxu3 %v495_v7  ;;  %v475_v16 = vor.u32 %v507_v13, %v474_v12  ;;  %v479_v17 = vor.u32 %v506_v14, %v476_v15  ;;  %v466_v18 = vld [vmem:[%s735_s1 + $0x40] sm:$0xf]  ;;  %v505_v19 = vld [vmem:[%s735_s1 + $0x44] sm:$0xf0]  ;;  %v504_v20 = vld [vmem:[%s735_s1 + $0x44] sm:$0xf] }
   0x6   :  { %v468_v21 = vld [vmem:[%s735_s1 + $0x48] sm:$0xf0]  ;;  %v467_v22 = vor.u32 %v505_v19, %v466_v18  ;;  %v458_v24 = vld [vmem:[%s735_s1 + $0x30] sm:$0xf]  ;;  %v503_v25 = vld [vmem:[%s735_s1 + $0x34] sm:$0xf0] }
   0x7   :  { %v471_v23 = vor.u32 %v504_v20, %v468_v21  ;;  %v502_v26 = vld [vmem:[%s735_s1 + $0x34] sm:$0xf]  ;;  %v460_v27 = vld [vmem:[%s735_s1 + $0x38] sm:$0xf0]  ;;  %v459_v28 = vor.u32 %v503_v25, %v458_v24  ;;  %v450_v30 = vld [vmem:[%s735_s1 + $0x20] sm:$0xf] }
   0x8   :  { %200 = vmatpush.bf16.msra.mxu0 %v483_v10  ;;  %513 = vmatpush.bf16.msra.mxu2 %v483_v10  ;;  %v463_v29 = vor.u32 %v502_v26, %v460_v27  ;;  %v501_v31 = vld [vmem:[%s735_s1 + $0x24] sm:$0xf0]  ;;  %v500_v32 = vld [vmem:[%s735_s1 + $0x24] sm:$0xf]  ;;  %v452_v33 = vld [vmem:[%s735_s1 + $0x28] sm:$0xf0] }
   0x9   :  { %249 = vmatpush.bf16.msra.mxu1 %v487_v11  ;;  %521 = vmatpush.bf16.msra.mxu3 %v487_v11  ;;  %v451_v34 = vor.u32 %v501_v31, %v450_v30  ;;  %v455_v35 = vor.u32 %v500_v32, %v452_v33  ;;  %v442_v36 = vld [vmem:[%s735_s1 + $0x10] sm:$0xf]  ;;  %v499_v37 = vld [vmem:[%s735_s1 + $0x14] sm:$0xf0]  ;;  %v498_v38 = vld [vmem:[%s735_s1 + $0x14] sm:$0xf] }
   0xa   :  { %v444_v39 = vld [vmem:[%s735_s1 + $0x18] sm:$0xf0]  ;;  %v443_v40 = vor.u32 %v499_v37, %v442_v36  ;;  %v434_v42 = vld [vmem:[%s735_s1] sm:$0xf]  ;;  %v497_v43 = vld [vmem:[%s735_s1 + $0x4] sm:$0xf0] }
   0xb   :  { %v447_v41 = vor.u32 %v498_v38, %v444_v39  ;;  %v496_v44 = vld [vmem:[%s735_s1 + $0x4] sm:$0xf]  ;;  %v436_v45 = vld [vmem:[%s735_s1 + $0x8] sm:$0xf0]  ;;  %v435_v47 = vor.u32 %v497_v43, %v434_v42  ;;  %v81_v54 = vld [vmem:[%s736_s0 + $0x10] sm:$0xff] }
   0xc   :  { %201 = vmatpush.bf16.msra.mxu0 %v475_v16  ;;  %514 = vmatpush.bf16.msra.mxu2 %v475_v16  ;;  %v79_v46 = vld [vmem:[%s736_s0] sm:$0xff]  ;;  %v80_v48 = vld [vmem:[%s736_s0 + $0x8] sm:$0xff]  ;;  %v439_v51 = vor.u32 %v496_v44, %v436_v45  ;;  %v82_v55 = vld [vmem:[%s736_s0 + $0x18] sm:$0xff] }
   0xd   :  { %250 = vmatpush.bf16.msra.mxu1 %v479_v17  ;;  %522 = vmatpush.bf16.msra.mxu3 %v479_v17  ;;  %v87_v49 = vld [vmem:[%s736_s0 + $0x40] sm:$0xff]  ;;  %v88_v50 = vld [vmem:[%s736_s0 + $0x48] sm:$0xff]  ;;  %v95_v52 = vpack.c.bf16 %v80_v48, %v79_v46  ;;  %v89_v56 = vld [vmem:[%s736_s0 + $0x50] sm:$0xff]  ;;  %v96_v58 = vpack.c.bf16 %v82_v55, %v81_v54 }
   0xe   :  { %v99_v53 = vpack.c.bf16 %v88_v50, %v87_v49  ;;  %v90_v57 = vld [vmem:[%s736_s0 + $0x58] sm:$0xff]  ;;  %v83_v60 = vld [vmem:[%s736_s0 + $0x20] sm:$0xff]  ;;  %v84_v61 = vld [vmem:[%s736_s0 + $0x28] sm:$0xff] }
   0xf   :  { %v100_v59 = vpack.c.bf16 %v90_v57, %v89_v56  ;;  %v91_v62 = vld [vmem:[%s736_s0 + $0x60] sm:$0xff]  ;;  %v92_v63 = vld [vmem:[%s736_s0 + $0x68] sm:$0xff]  ;;  %v97_v0 = vpack.c.bf16 %v84_v61, %v83_v60  ;;  %v85_v2 = vld [vmem:[%s736_s0 + $0x30] sm:$0xff] }
  0x10   :  { %202 = vmatpush.bf16.msra.mxu0 %v467_v22  ;;  %515 = vmatpush.bf16.msra.mxu2 %v467_v22  ;;  %v101_v1 = vpack.c.bf16 %v92_v63, %v91_v62  ;;  %v86_v3 = vld [vmem:[%s736_s0 + $0x38] sm:$0xff]  ;;  %v93_v4 = vld [vmem:[%s736_s0 + $0x70] sm:$0xff] }
  0x11   :  { %251 = vmatpush.bf16.msra.mxu1 %v471_v23  ;;  %523 = vmatpush.bf16.msra.mxu3 %v471_v23  ;;  %v94_v5 = vld [vmem:[%s736_s0 + $0x78] sm:$0xff]  ;;  %v98_v6 = vpack.c.bf16 %v86_v3, %v85_v2 }
  0x12   :  { %v102_v7 = vpack.c.bf16 %v94_v5, %v93_v4 }
  0x14   :  { %203 = vmatpush.bf16.msra.mxu0 %v459_v28  ;;  %516 = vmatpush.bf16.msra.mxu2 %v459_v28 }
  0x15   :  { %252 = vmatpush.bf16.msra.mxu1 %v463_v29  ;;  %524 = vmatpush.bf16.msra.mxu3 %v463_v29 }
  0x18   :  { %204 = vmatpush.bf16.msra.mxu0 %v451_v34  ;;  %517 = vmatpush.bf16.msra.mxu2 %v451_v34 }
  0x19   :  { %253 = vmatpush.bf16.msra.mxu1 %v455_v35  ;;  %525 = vmatpush.bf16.msra.mxu3 %v455_v35 }
  0x1c   :  { %205 = vmatpush.bf16.msra.mxu0 %v443_v40  ;;  %518 = vmatpush.bf16.msra.mxu2 %v443_v40 }
  0x1d   :  { %254 = vmatpush.bf16.msra.mxu1 %v447_v41  ;;  %526 = vmatpush.bf16.msra.mxu3 %v447_v41 }
  0x20   :  { %206 = vmatpush.bf16.msra.mxu0 %v435_v47  ;;  %519 = vmatpush.bf16.msra.mxu2 %v435_v47 }
  0x21   :  { %255 = vmatpush.bf16.msra.mxu1 %v439_v51  ;;  %527 = vmatpush.bf16.msra.mxu3 %v439_v51 }
  0x23   :  { %207 = vmatmul.bf16.vlgmr.msra.gmra.mxu0 %v95_v52  ;;  %227 = vmatmul.bf16.vlgmr.msra.gmra.mxu2 %v99_v53 }
  0x24   :  { %256 = vmatmul.bf16.vlgmr.msra.gmra.mxu1 %v95_v52  ;;  %276 = vmatmul.bf16.vlgmr.msra.gmra.mxu3 %v99_v53 }
  0x33   :  { %212 = vmatmul.bf16.gmra.mxu0 %v96_v58  ;;  %232 = vmatmul.bf16.gmra.mxu2 %v100_v59 }
  0x34   :  { %261 = vmatmul.bf16.gmra.mxu1 %v96_v58  ;;  %281 = vmatmul.bf16.gmra.mxu3 %v100_v59 }
  0x43   :  { %217 = vmatmul.bf16.gmra.mxu0 %v97_v0  ;;  %237 = vmatmul.bf16.gmra.mxu2 %v101_v1 }
  0x44   :  { %266 = vmatmul.bf16.gmra.mxu1 %v97_v0  ;;  %286 = vmatmul.bf16.gmra.mxu3 %v101_v1 }
  0x53   :  { %222 = vmatmul.bf16.gmra.mxu0 %v98_v6  ;;  %242 = vmatmul.bf16.gmra.mxu2 %v102_v7 }
  0x54   :  { %271 = vmatmul.bf16.gmra.mxu1 %v98_v6  ;;  %291 = vmatmul.bf16.gmra.mxu3 %v102_v7 }
  0xa0   :  { %v208_v8 = vpop.f32.mrf.mxu0 }
  0xa1   :  { %v257_v9 = vpop.f32.mrf.mxu1 }
  0xa2   :  { %v396_v10 = vpack.c.bf16 %v257_v9, %v208_v8 }
  0xa4   :  { %412 = vst [vmem:[%s737_s2] sm:$0xff] %v396_v10 }
  0xa6   :  { %v228_v11 = vpop.f32.mrf.mxu2 }
  0xa7   :  { %v277_v12 = vpop.f32.mrf.mxu3 }
  0xa8   :  { %v404_v13 = vpack.c.bf16 %v277_v12, %v228_v11  ;;  %v210_v14 = vpop.f32.mrf.mxu0 }
  0xa9   :  { %v259_v15 = vpop.f32.mrf.mxu1 }
  0xaa   :  { %420 = vst [vmem:[%s737_s2 + $0x40] sm:$0xff] %v404_v13  ;;  %v397_v16 = vpack.c.bf16 %v259_v15, %v210_v14 }
  0xac   :  { %413 = vst [vmem:[%s737_s2 + $0x8] sm:$0xff] %v397_v16 }
  0xae   :  { %v230_v17 = vpop.f32.mrf.mxu2 }
  0xaf   :  { %v279_v18 = vpop.f32.mrf.mxu3 }
  0xb0   :  { %v405_v19 = vpack.c.bf16 %v279_v18, %v230_v17  ;;  %v213_v20 = vpop.f32.mrf.mxu0 }
  0xb1   :  { %v262_v21 = vpop.f32.mrf.mxu1 }
  0xb2   :  { %421 = vst [vmem:[%s737_s2 + $0x48] sm:$0xff] %v405_v19  ;;  %v398_v22 = vpack.c.bf16 %v262_v21, %v213_v20 }
  0xb4   :  { %414 = vst [vmem:[%s737_s2 + $0x10] sm:$0xff] %v398_v22 }
  0xb6   :  { %v233_v23 = vpop.f32.mrf.mxu2 }
  0xb7   :  { %v282_v24 = vpop.f32.mrf.mxu3 }
  0xb8   :  { %v406_v25 = vpack.c.bf16 %v282_v24, %v233_v23  ;;  %v215_v26 = vpop.f32.mrf.mxu0 }
  0xb9   :  { %v264_v27 = vpop.f32.mrf.mxu1 }
  0xba   :  { %422 = vst [vmem:[%s737_s2 + $0x50] sm:$0xff] %v406_v25  ;;  %v399_v28 = vpack.c.bf16 %v264_v27, %v215_v26 }
  0xbc   :  { %415 = vst [vmem:[%s737_s2 + $0x18] sm:$0xff] %v399_v28 }
  0xbe   :  { %v235_v29 = vpop.f32.mrf.mxu2 }
  0xbf   :  { %v284_v30 = vpop.f32.mrf.mxu3 }
  0xc0   :  { %v407_v31 = vpack.c.bf16 %v284_v30, %v235_v29  ;;  %v218_v32 = vpop.f32.mrf.mxu0 }
  0xc1   :  { %v267_v33 = vpop.f32.mrf.mxu1 }
  0xc2   :  { %423 = vst [vmem:[%s737_s2 + $0x58] sm:$0xff] %v407_v31  ;;  %v400_v34 = vpack.c.bf16 %v267_v33, %v218_v32 }
  0xc4   :  { %416 = vst [vmem:[%s737_s2 + $0x20] sm:$0xff] %v400_v34 }
  0xc6   :  { %v238_v35 = vpop.f32.mrf.mxu2 }
  0xc7   :  { %v287_v36 = vpop.f32.mrf.mxu3 }
  0xc8   :  { %v408_v37 = vpack.c.bf16 %v287_v36, %v238_v35  ;;  %v220_v38 = vpop.f32.mrf.mxu0 }
  0xc9   :  { %v269_v39 = vpop.f32.mrf.mxu1 }
  0xca   :  { %424 = vst [vmem:[%s737_s2 + $0x60] sm:$0xff] %v408_v37  ;;  %v401_v40 = vpack.c.bf16 %v269_v39, %v220_v38 }
  0xcc   :  { %417 = vst [vmem:[%s737_s2 + $0x28] sm:$0xff] %v401_v40 }
  0xce   :  { %v240_v41 = vpop.f32.mrf.mxu2 }
  0xcf   :  { %v289_v42 = vpop.f32.mrf.mxu3 }
  0xd0   :  { %v409_v43 = vpack.c.bf16 %v289_v42, %v240_v41  ;;  %v223_v44 = vpop.f32.mrf.mxu0 }
  0xd1   :  { %v272_v45 = vpop.f32.mrf.mxu1 }
  0xd2   :  { %425 = vst [vmem:[%s737_s2 + $0x68] sm:$0xff] %v409_v43  ;;  %v402_v46 = vpack.c.bf16 %v272_v45, %v223_v44 }
  0xd4   :  { %418 = vst [vmem:[%s737_s2 + $0x30] sm:$0xff] %v402_v46 }
  0xd6   :  { %v243_v47 = vpop.f32.mrf.mxu2 }
  0xd7   :  { %v292_v48 = vpop.f32.mrf.mxu3 }
  0xd8   :  { %v410_v49 = vpack.c.bf16 %v292_v48, %v243_v47  ;;  %v225_v50 = vpop.f32.mrf.mxu0 }
  0xd9   :  { %v274_v51 = vpop.f32.mrf.mxu1 }
  0xda   :  { %426 = vst [vmem:[%s737_s2 + $0x70] sm:$0xff] %v410_v49  ;;  %v403_v52 = vpack.c.bf16 %v274_v51, %v225_v50 }
  0xdc   :  { %419 = vst [vmem:[%s737_s2 + $0x38] sm:$0xff] %v403_v52 }
  0xde   :  { %v245_v53 = vpop.f32.mrf.mxu2 }
  0xdf   :  { %v294_v54 = vpop.f32.mrf.mxu3 }
  0xe0   :  { %v411_v55 = vpack.c.bf16 %v294_v54, %v245_v53 }
  0xe2   :  { %427 = vst [vmem:[%s737_s2 + $0x78] sm:$0xff] %v411_v55 }

// kernel: gat_forward.8
= control target key start
LH: loop header
LB: loop body
LE: loop exit
PB: predicated region body
PF: predicated region fallthrough
CT: control target
= control target key end

     0   :  { %s791_s1 = inlined_call_operand.vmem [shape: bf16[128,256], index: 1, kind: input, shape index: {}]   ;;  %s792_s0 = inlined_call_operand.vmem [shape: bf16[128,128], index: 0, kind: input, shape index: {}]   ;;  %s793_s2 = inlined_call_operand.vmem [shape: bf16[128,256], index: 2, kind: output, shape index: {}]  }
   0x1   :  { %v562_v0 = vld [vmem:[%s791_s1 + $0x70] sm:$0xf]  ;;  %v591_v1 = vld [vmem:[%s791_s1 + $0x74] sm:$0xf0]  ;;  %v590_v2 = vld [vmem:[%s791_s1 + $0x74] sm:$0xf] }
   0x2   :  { %v563_v3 = vor.u32 %v591_v1, %v562_v0  ;;  %v564_v4 = vld [vmem:[%s791_s1 + $0x78] sm:$0xf0]  ;;  %v554_v5 = vld [vmem:[%s791_s1 + $0x60] sm:$0xf]  ;;  %v589_v6 = vld [vmem:[%s791_s1 + $0x64] sm:$0xf0] }
   0x3   :  { %v567_v7 = vor.u32 %v590_v2, %v564_v4  ;;  %v588_v8 = vld [vmem:[%s791_s1 + $0x64] sm:$0xf]  ;;  %v556_v9 = vld [vmem:[%s791_s1 + $0x68] sm:$0xf0]  ;;  %v555_v10 = vor.u32 %v589_v6, %v554_v5  ;;  %v546_v12 = vld [vmem:[%s791_s1 + $0x50] sm:$0xf] }
   0x4   :  { %239 = vmatpush.bf16.msra.mxu0 %v563_v3  ;;  %592 = vmatpush.bf16.msra.mxu2 %v563_v3  ;;  %v559_v11 = vor.u32 %v588_v8, %v556_v9  ;;  %v587_v13 = vld [vmem:[%s791_s1 + $0x54] sm:$0xf0]  ;;  %v586_v14 = vld [vmem:[%s791_s1 + $0x54] sm:$0xf]  ;;  %v548_v15 = vld [vmem:[%s791_s1 + $0x58] sm:$0xf0] }
   0x5   :  { %288 = vmatpush.bf16.msra.mxu1 %v567_v7  ;;  %600 = vmatpush.bf16.msra.mxu3 %v567_v7  ;;  %v547_v16 = vor.u32 %v587_v13, %v546_v12  ;;  %v551_v17 = vor.u32 %v586_v14, %v548_v15  ;;  %v538_v18 = vld [vmem:[%s791_s1 + $0x40] sm:$0xf]  ;;  %v585_v19 = vld [vmem:[%s791_s1 + $0x44] sm:$0xf0]  ;;  %v584_v20 = vld [vmem:[%s791_s1 + $0x44] sm:$0xf] }
   0x6   :  { %v540_v21 = vld [vmem:[%s791_s1 + $0x48] sm:$0xf0]  ;;  %v539_v22 = vor.u32 %v585_v19, %v538_v18  ;;  %v530_v24 = vld [vmem:[%s791_s1 + $0x30] sm:$0xf]  ;;  %v583_v25 = vld [vmem:[%s791_s1 + $0x34] sm:$0xf0] }
   0x7   :  { %v543_v23 = vor.u32 %v584_v20, %v540_v21  ;;  %v582_v26 = vld [vmem:[%s791_s1 + $0x34] sm:$0xf]  ;;  %v532_v27 = vld [vmem:[%s791_s1 + $0x38] sm:$0xf0]  ;;  %v531_v28 = vor.u32 %v583_v25, %v530_v24  ;;  %v522_v30 = vld [vmem:[%s791_s1 + $0x20] sm:$0xf] }
   0x8   :  { %240 = vmatpush.bf16.msra.mxu0 %v555_v10  ;;  %593 = vmatpush.bf16.msra.mxu2 %v555_v10  ;;  %v535_v29 = vor.u32 %v582_v26, %v532_v27  ;;  %v581_v31 = vld [vmem:[%s791_s1 + $0x24] sm:$0xf0]  ;;  %v580_v32 = vld [vmem:[%s791_s1 + $0x24] sm:$0xf]  ;;  %v524_v33 = vld [vmem:[%s791_s1 + $0x28] sm:$0xf0] }
   0x9   :  { %289 = vmatpush.bf16.msra.mxu1 %v559_v11  ;;  %601 = vmatpush.bf16.msra.mxu3 %v559_v11  ;;  %v523_v34 = vor.u32 %v581_v31, %v522_v30  ;;  %v527_v35 = vor.u32 %v580_v32, %v524_v33  ;;  %v514_v36 = vld [vmem:[%s791_s1 + $0x10] sm:$0xf]  ;;  %v579_v37 = vld [vmem:[%s791_s1 + $0x14] sm:$0xf0]  ;;  %v578_v38 = vld [vmem:[%s791_s1 + $0x14] sm:$0xf] }
   0xa   :  { %v516_v39 = vld [vmem:[%s791_s1 + $0x18] sm:$0xf0]  ;;  %v515_v40 = vor.u32 %v579_v37, %v514_v36  ;;  %v506_v42 = vld [vmem:[%s791_s1] sm:$0xf]  ;;  %v577_v43 = vld [vmem:[%s791_s1 + $0x4] sm:$0xf0] }
   0xb   :  { %v519_v41 = vor.u32 %v578_v38, %v516_v39  ;;  %v576_v44 = vld [vmem:[%s791_s1 + $0x4] sm:$0xf]  ;;  %v508_v45 = vld [vmem:[%s791_s1 + $0x8] sm:$0xf0]  ;;  %v507_v46 = vor.u32 %v577_v43, %v506_v42  ;;  %v570_v52 = vld [vmem:[%s792_s0 + $0x10] sm:$0xff] }
   0xc   :  { %241 = vmatpush.bf16.msra.mxu0 %v547_v16  ;;  %594 = vmatpush.bf16.msra.mxu2 %v547_v16  ;;  %v511_v47 = vor.u32 %v576_v44, %v508_v45  ;;  %v568_v48 = vld [vmem:[%s792_s0] sm:$0xff]  ;;  %v569_v50 = vld [vmem:[%s792_s0 + $0x8] sm:$0xff]  ;;  %v574_v53 = vld [vmem:[%s792_s0 + $0x30] sm:$0xff] }
   0xd   :  { %290 = vmatpush.bf16.msra.mxu1 %v551_v17  ;;  %602 = vmatpush.bf16.msra.mxu3 %v551_v17  ;;  %v572_v49 = vld [vmem:[%s792_s0 + $0x20] sm:$0xff]  ;;  %v573_v51 = vld [vmem:[%s792_s0 + $0x28] sm:$0xff]  ;;  %v571_v54 = vld [vmem:[%s792_s0 + $0x18] sm:$0xff] }
   0xe   :  { %v575_v55 = vld [vmem:[%s792_s0 + $0x38] sm:$0xff] }
  0x10   :  { %242 = vmatpush.bf16.msra.mxu0 %v539_v22  ;;  %595 = vmatpush.bf16.msra.mxu2 %v539_v22 }
  0x11   :  { %291 = vmatpush.bf16.msra.mxu1 %v543_v23  ;;  %603 = vmatpush.bf16.msra.mxu3 %v543_v23 }
  0x14   :  { %243 = vmatpush.bf16.msra.mxu0 %v531_v28  ;;  %596 = vmatpush.bf16.msra.mxu2 %v531_v28 }
  0x15   :  { %292 = vmatpush.bf16.msra.mxu1 %v535_v29  ;;  %604 = vmatpush.bf16.msra.mxu3 %v535_v29 }
  0x18   :  { %244 = vmatpush.bf16.msra.mxu0 %v523_v34  ;;  %597 = vmatpush.bf16.msra.mxu2 %v523_v34 }
  0x19   :  { %293 = vmatpush.bf16.msra.mxu1 %v527_v35  ;;  %605 = vmatpush.bf16.msra.mxu3 %v527_v35 }
  0x1c   :  { %245 = vmatpush.bf16.msra.mxu0 %v515_v40  ;;  %598 = vmatpush.bf16.msra.mxu2 %v515_v40 }
  0x1d   :  { %294 = vmatpush.bf16.msra.mxu1 %v519_v41  ;;  %606 = vmatpush.bf16.msra.mxu3 %v519_v41 }
  0x20   :  { %246 = vmatpush.bf16.msra.mxu0 %v507_v46  ;;  %599 = vmatpush.bf16.msra.mxu2 %v507_v46 }
  0x21   :  { %295 = vmatpush.bf16.msra.mxu1 %v511_v47  ;;  %607 = vmatpush.bf16.msra.mxu3 %v511_v47 }
  0x23   :  { %247 = vmatmul.bf16.vlgmr.msra.gmra.mxu0 %v568_v48  ;;  %267 = vmatmul.bf16.vlgmr.msra.gmra.mxu2 %v572_v49 }
  0x24   :  { %296 = vmatmul.bf16.vlgmr.msra.gmra.mxu1 %v568_v48  ;;  %316 = vmatmul.bf16.vlgmr.msra.gmra.mxu3 %v572_v49 }
  0x33   :  { %252 = vmatmul.bf16.gmra.mxu0 %v569_v50  ;;  %272 = vmatmul.bf16.gmra.mxu2 %v573_v51 }
  0x34   :  { %301 = vmatmul.bf16.gmra.mxu1 %v569_v50  ;;  %321 = vmatmul.bf16.gmra.mxu3 %v573_v51 }
  0x43   :  { %257 = vmatmul.bf16.gmra.mxu0 %v570_v52  ;;  %277 = vmatmul.bf16.gmra.mxu2 %v574_v53 }
  0x44   :  { %306 = vmatmul.bf16.gmra.mxu1 %v570_v52  ;;  %326 = vmatmul.bf16.gmra.mxu3 %v574_v53 }
  0x53   :  { %262 = vmatmul.bf16.gmra.mxu0 %v571_v54  ;;  %282 = vmatmul.bf16.gmra.mxu2 %v575_v55 }
  0x54   :  { %311 = vmatmul.bf16.gmra.mxu1 %v571_v54  ;;  %331 = vmatmul.bf16.gmra.mxu3 %v575_v55 }
  0xa0   :  { %v248_v56 = vpop.f32.mrf.mxu0 }
  0xa1   :  { %v297_v57 = vpop.f32.mrf.mxu1 }
  0xa2   :  { %v436_v58 = vpack.c.bf16 %v297_v57, %v248_v56 }
  0xa4   :  { %452 = vst [vmem:[%s793_s2] sm:$0xff] %v436_v58 }
  0xa6   :  { %v268_v59 = vpop.f32.mrf.mxu2 }
  0xa7   :  { %v317_v60 = vpop.f32.mrf.mxu3 }
  0xa8   :  { %v444_v61 = vpack.c.bf16 %v317_v60, %v268_v59  ;;  %v250_v62 = vpop.f32.mrf.mxu0 }
  0xa9   :  { %v299_v63 = vpop.f32.mrf.mxu1 }
  0xaa   :  { %460 = vst [vmem:[%s793_s2 + $0x40] sm:$0xff] %v444_v61  ;;  %v437_v0 = vpack.c.bf16 %v299_v63, %v250_v62 }
  0xac   :  { %453 = vst [vmem:[%s793_s2 + $0x8] sm:$0xff] %v437_v0 }
  0xae   :  { %v270_v1 = vpop.f32.mrf.mxu2 }
  0xaf   :  { %v319_v2 = vpop.f32.mrf.mxu3 }
  0xb0   :  { %v445_v3 = vpack.c.bf16 %v319_v2, %v270_v1  ;;  %v253_v4 = vpop.f32.mrf.mxu0 }
  0xb1   :  { %v302_v5 = vpop.f32.mrf.mxu1 }
  0xb2   :  { %461 = vst [vmem:[%s793_s2 + $0x48] sm:$0xff] %v445_v3  ;;  %v438_v6 = vpack.c.bf16 %v302_v5, %v253_v4 }
  0xb4   :  { %454 = vst [vmem:[%s793_s2 + $0x10] sm:$0xff] %v438_v6 }
  0xb6   :  { %v273_v7 = vpop.f32.mrf.mxu2 }
  0xb7   :  { %v322_v8 = vpop.f32.mrf.mxu3 }
  0xb8   :  { %v446_v9 = vpack.c.bf16 %v322_v8, %v273_v7  ;;  %v255_v10 = vpop.f32.mrf.mxu0 }
  0xb9   :  { %v304_v11 = vpop.f32.mrf.mxu1 }
  0xba   :  { %462 = vst [vmem:[%s793_s2 + $0x50] sm:$0xff] %v446_v9  ;;  %v439_v12 = vpack.c.bf16 %v304_v11, %v255_v10 }
  0xbc   :  { %455 = vst [vmem:[%s793_s2 + $0x18] sm:$0xff] %v439_v12 }
  0xbe   :  { %v275_v13 = vpop.f32.mrf.mxu2 }
  0xbf   :  { %v324_v14 = vpop.f32.mrf.mxu3 }
  0xc0   :  { %v447_v15 = vpack.c.bf16 %v324_v14, %v275_v13  ;;  %v258_v16 = vpop.f32.mrf.mxu0 }
  0xc1   :  { %v307_v17 = vpop.f32.mrf.mxu1 }
  0xc2   :  { %463 = vst [vmem:[%s793_s2 + $0x58] sm:$0xff] %v447_v15  ;;  %v440_v18 = vpack.c.bf16 %v307_v17, %v258_v16 }
  0xc4   :  { %456 = vst [vmem:[%s793_s2 + $0x20] sm:$0xff] %v440_v18 }
  0xc6   :  { %v278_v19 = vpop.f32.mrf.mxu2 }
  0xc7   :  { %v327_v20 = vpop.f32.mrf.mxu3 }
  0xc8   :  { %v448_v21 = vpack.c.bf16 %v327_v20, %v278_v19  ;;  %v260_v22 = vpop.f32.mrf.mxu0 }
  0xc9   :  { %v309_v23 = vpop.f32.mrf.mxu1 }
  0xca   :  { %464 = vst [vmem:[%s793_s2 + $0x60] sm:$0xff] %v448_v21  ;;  %v441_v24 = vpack.c.bf16 %v309_v23, %v260_v22 }
  0xcc   :  { %457 = vst [vmem:[%s793_s2 + $0x28] sm:$0xff] %v441_v24 }
  0xce   :  { %v280_v25 = vpop.f32.mrf.mxu2 }
  0xcf   :  { %v329_v26 = vpop.f32.mrf.mxu3 }
  0xd0   :  { %v449_v27 = vpack.c.bf16 %v329_v26, %v280_v25  ;;  %v263_v28 = vpop.f32.mrf.mxu0 }
  0xd1   :  { %v312_v29 = vpop.f32.mrf.mxu1 }
  0xd2   :  { %465 = vst [vmem:[%s793_s2 + $0x68] sm:$0xff] %v449_v27  ;;  %v442_v30 = vpack.c.bf16 %v312_v29, %v263_v28 }
  0xd4   :  { %458 = vst [vmem:[%s793_s2 + $0x30] sm:$0xff] %v442_v30 }
  0xd6   :  { %v283_v31 = vpop.f32.mrf.mxu2 }
  0xd7   :  { %v332_v32 = vpop.f32.mrf.mxu3 }
  0xd8   :  { %v450_v33 = vpack.c.bf16 %v332_v32, %v283_v31  ;;  %v265_v34 = vpop.f32.mrf.mxu0 }
  0xd9   :  { %v314_v35 = vpop.f32.mrf.mxu1 }
  0xda   :  { %466 = vst [vmem:[%s793_s2 + $0x70] sm:$0xff] %v450_v33  ;;  %v443_v36 = vpack.c.bf16 %v314_v35, %v265_v34 }
  0xdc   :  { %459 = vst [vmem:[%s793_s2 + $0x38] sm:$0xff] %v443_v36 }
  0xde   :  { %v285_v37 = vpop.f32.mrf.mxu2 }
  0xdf   :  { %v334_v38 = vpop.f32.mrf.mxu3 }
  0xe0   :  { %v451_v39 = vpack.c.bf16 %v334_v38, %v285_v37 }
  0xe2   :  { %467 = vst [vmem:[%s793_s2 + $0x78] sm:$0xff] %v451_v39 }

// kernel: gat_forward.7
= control target key start
LH: loop header
LB: loop body
LE: loop exit
PB: predicated region body
PF: predicated region fallthrough
CT: control target
= control target key end

     0   :  { %vm131_vm0 = vcmask 7168   ;;  %v1535_v16 = vmov -1e+30   ;;  %v1536_v17 = vmov 0.0   ;;  %s2174_s0 = inlined_call_operand.<no memory space> [shape: s32[1], index: 0, kind: input, shape index: {}]   ;;  %s2175_s1 = inlined_call_operand.vmem [shape: s8[128,128], index: 1, kind: input, shape index: {}]   ;;  %s2176_s2 = inlined_call_operand.vmem [shape: f32[128,1], index: 2, kind: input, shape index: {}]   ;;  %s2177_s3 = inlined_call_operand.vmem [shape: f32[1,128], index: 3, kind: input, shape index: {}]   ;;  %s2178_s4 = inlined_call_operand.vmem [shape: bf16[128,256], index: 4, kind: input, shape index: {}]   ;;  %s2179_s5 = inlined_call_operand.vmem [shape: f32[1,128], index: 5, kind: input, shape index: {}]   ;;  %s2180_s6 = inlined_call_operand.vmem [shape: bf16[128,128], index: 6, kind: output, shape index: {}]  }
   0x1   :  { %v36_v0 = vld [vmem:[%s2178_s4] sm:$0xf]  ;;  %v38_v1 = vld [vmem:[%s2178_s4 + $0x8] sm:$0xf]  ;;  %v40_v2 = vld [vmem:[%s2178_s4 + $0x10] sm:$0xf] }
   0x2   :  { %37 = vst [vmem:[#allocation7] sm:$0xf] %v36_v0  ;;  %v42_v3 = vld [vmem:[%s2178_s4 + $0x18] sm:$0xf]  ;;  %v44_v4 = vld [vmem:[%s2178_s4 + $0x20] sm:$0xf] }
   0x3   :  { %39 = vst [vmem:[#allocation7 + $0x4] sm:$0xf] %v38_v1  ;;  %v46_v5 = vld [vmem:[%s2178_s4 + $0x28] sm:$0xf]  ;;  %v48_v6 = vld [vmem:[%s2178_s4 + $0x30] sm:$0xf] }
   0x4   :  { %41 = vst [vmem:[#allocation7 + $0x8] sm:$0xf] %v40_v2  ;;  %v50_v7 = vld [vmem:[%s2178_s4 + $0x38] sm:$0xf]  ;;  %v52_v8 = vld [vmem:[%s2178_s4 + $0x40] sm:$0xf] }
   0x5   :  { %43 = vst [vmem:[#allocation7 + $0xc] sm:$0xf] %v42_v3  ;;  %v54_v9 = vld [vmem:[%s2178_s4 + $0x48] sm:$0xf]  ;;  %v56_v10 = vld [vmem:[%s2178_s4 + $0x50] sm:$0xf] }
   0x6   :  { %45 = vst [vmem:[#allocation7 + $0x10] sm:$0xf] %v44_v4  ;;  %v58_v11 = vld [vmem:[%s2178_s4 + $0x58] sm:$0xf]  ;;  %v60_v12 = vld [vmem:[%s2178_s4 + $0x60] sm:$0xf] }
   0x7   :  { %47 = vst [vmem:[#allocation7 + $0x14] sm:$0xf] %v46_v5  ;;  %v62_v13 = vld [vmem:[%s2178_s4 + $0x68] sm:$0xf]  ;;  %v64_v14 = vld [vmem:[%s2178_s4 + $0x70] sm:$0xf] }
   0x8   :  { %49 = vst [vmem:[#allocation7 + $0x18] sm:$0xf] %v48_v6  ;;  %v66_v15 = vld [vmem:[%s2178_s4 + $0x78] sm:$0xf]  ;;  %p1315_p0 = scmp.eq.s32.totalorder %s2174_s0, 0 }
   0x9   :  { %51 = vst [vmem:[#allocation7 + $0x1c] sm:$0xf] %v50_v7 }
   0xa   :  { %53 = vst [vmem:[#allocation7 + $0x20] sm:$0xf] %v52_v8 }
   0xb   :  { %55 = vst [vmem:[#allocation7 + $0x24] sm:$0xf] %v54_v9 }
   0xc   :  { %57 = vst [vmem:[#allocation7 + $0x28] sm:$0xf] %v56_v10 }
   0xd   :  { %59 = vst [vmem:[#allocation7 + $0x2c] sm:$0xf] %v58_v11 }
   0xe   :  { %61 = vst [vmem:[#allocation7 + $0x30] sm:$0xf] %v60_v12 }
   0xf   :  { %63 = vst [vmem:[#allocation7 + $0x34] sm:$0xf] %v62_v13 }
  0x10   :  { %65 = vst [vmem:[#allocation7 + $0x38] sm:$0xf] %v64_v14 }
  0x11   :  { %67 = vst [vmem:[#allocation7 + $0x3c] sm:$0xf] %v66_v15 }
  0x12   :  { %132 = vst.msk [vmem:[#allocation2] sm:$0xff] %vm131_vm0, %v1535_v16 }
  0x13   :  { %133 = vst.msk [vmem:[#allocation2 + $0x8] sm:$0xff] %vm131_vm0, %v1535_v16 }
  0x14   :  { %134 = vst.msk [vmem:[#allocation2 + $0x10] sm:$0xff] %vm131_vm0, %v1535_v16 }
  0x15   :  { %135 = vst.msk [vmem:[#allocation2 + $0x18] sm:$0xff] %vm131_vm0, %v1535_v16 }
  0x16   :  { %136 = vst.msk [vmem:[#allocation2 + $0x20] sm:$0xff] %vm131_vm0, %v1535_v16 }
  0x17   :  { %137 = vst.msk [vmem:[#allocation2 + $0x28] sm:$0xff] %vm131_vm0, %v1535_v16 }
  0x18   :  { %138 = vst.msk [vmem:[#allocation2 + $0x30] sm:$0xff] %vm131_vm0, %v1535_v16 }
  0x19   :  { %139 = vst.msk [vmem:[#allocation2 + $0x38] sm:$0xff] %vm131_vm0, %v1535_v16 }
  0x1a   :  { %140 = vst.msk [vmem:[#allocation2 + $0x40] sm:$0xff] %vm131_vm0, %v1535_v16 }
  0x1b   :  { %141 = vst.msk [vmem:[#allocation2 + $0x48] sm:$0xff] %vm131_vm0, %v1535_v16 }
  0x1c   :  { %142 = vst.msk [vmem:[#allocation2 + $0x50] sm:$0xff] %vm131_vm0, %v1535_v16 }
  0x1d   :  { %143 = vst.msk [vmem:[#allocation2 + $0x58] sm:$0xff] %vm131_vm0, %v1535_v16 }
  0x1e   :  { %144 = vst.msk [vmem:[#allocation2 + $0x60] sm:$0xff] %vm131_vm0, %v1535_v16 }
  0x1f   :  { %145 = vst.msk [vmem:[#allocation2 + $0x68] sm:$0xff] %vm131_vm0, %v1535_v16 }
  0x20   :  { %146 = vst.msk [vmem:[#allocation2 + $0x70] sm:$0xff] %vm131_vm0, %v1535_v16 }
  0x21   :  { %147 = vst.msk [vmem:[#allocation2 + $0x78] sm:$0xff] %vm131_vm0, %v1535_v16 }
  0x22   :  { %148 = vst.msk [vmem:[#allocation3] sm:$0xff] %vm131_vm0, %v1536_v17 }
  0x23   :  { %149 = vst.msk [vmem:[#allocation3 + $0x8] sm:$0xff] %vm131_vm0, %v1536_v17 }
  0x24   :  { %150 = vst.msk [vmem:[#allocation3 + $0x10] sm:$0xff] %vm131_vm0, %v1536_v17 }
  0x25   :  { %151 = vst.msk [vmem:[#allocation3 + $0x18] sm:$0xff] %vm131_vm0, %v1536_v17 }
  0x26   :  { %152 = vst.msk [vmem:[#allocation3 + $0x20] sm:$0xff] %vm131_vm0, %v1536_v17 }
  0x27   :  { %153 = vst.msk [vmem:[#allocation3 + $0x28] sm:$0xff] %vm131_vm0, %v1536_v17 }
  0x28   :  { %154 = vst.msk [vmem:[#allocation3 + $0x30] sm:$0xff] %vm131_vm0, %v1536_v17 }
  0x29   :  { %155 = vst.msk [vmem:[#allocation3 + $0x38] sm:$0xff] %vm131_vm0, %v1536_v17 }
  0x2a   :  { %156 = vst.msk [vmem:[#allocation3 + $0x40] sm:$0xff] %vm131_vm0, %v1536_v17 }
  0x2b   :  { %157 = vst.msk [vmem:[#allocation3 + $0x48] sm:$0xff] %vm131_vm0, %v1536_v17 }
  0x2c   :  { %158 = vst.msk [vmem:[#allocation3 + $0x50] sm:$0xff] %vm131_vm0, %v1536_v17 }
  0x2d   :  { %159 = vst.msk [vmem:[#allocation3 + $0x58] sm:$0xff] %vm131_vm0, %v1536_v17 }
  0x2e   :  { %160 = vst.msk [vmem:[#allocation3 + $0x60] sm:$0xff] %vm131_vm0, %v1536_v17 }
  0x2f   :  { %161 = vst.msk [vmem:[#allocation3 + $0x68] sm:$0xff] %vm131_vm0, %v1536_v17 }
  0x30   :  { %162 = vst.msk [vmem:[#allocation3 + $0x70] sm:$0xff] %vm131_vm0, %v1536_v17 }
  0x31   :  { %163 = vst.msk [vmem:[#allocation3 + $0x78] sm:$0xff] %vm131_vm0, %v1536_v17 }
  0x32   :  { %164 = vst [vmem:[#allocation4 + $0x30] sm:$0xff] %v1536_v17 }
  0x33   :  { %165 = vst [vmem:[#allocation4] sm:$0xff] %v1536_v17 }
  0x34   :  { %166 = vst [vmem:[#allocation4 + $0x58] sm:$0xff] %v1536_v17 }
  0x35   :  { %167 = vst [vmem:[#allocation4 + $0x18] sm:$0xff] %v1536_v17 }
  0x36   :  { %168 = vst [vmem:[#allocation4 + $0x50] sm:$0xff] %v1536_v17 }
  0x37   :  { %169 = vst [vmem:[#allocation4 + $0x68] sm:$0xff] %v1536_v17 }
  0x38   :  { %170 = vst [vmem:[#allocation4 + $0x8] sm:$0xff] %v1536_v17 }
  0x39   :  { %171 = vst [vmem:[#allocation4 + $0x48] sm:$0xff] %v1536_v17 }
  0x3a   :  { %172 = vst [vmem:[#allocation4 + $0x40] sm:$0xff] %v1536_v17 }
  0x3b   :  { %173 = vst [vmem:[#allocation4 + $0x20] sm:$0xff] %v1536_v17 }
  0x3c   :  { %174 = vst [vmem:[#allocation4 + $0x10] sm:$0xff] %v1536_v17 }
  0x3d   :  { %175 = vst [vmem:[#allocation4 + $0x38] sm:$0xff] %v1536_v17  ;;  %185 = sbr.rel (%p1315_p0) target bundleno = 629 (0x275), region = 70 }
  0x3e   :  { %176 = vst [vmem:[#allocation4 + $0x60] sm:$0xff] %v1536_v17 }
  0x3f   :  { %177 = vst [vmem:[#allocation4 + $0x70] sm:$0xff] %v1536_v17 }
  0x40   :  { %178 = vst [vmem:[#allocation4 + $0x78] sm:$0xff] %v1536_v17 }
  0x41   :  { %179 = vst [vmem:[#allocation4 + $0x28] sm:$0xff] %v1536_v17 }
  0x42   :  { %v188_v18 = vld [vmem:[%s2176_s2 + $0x10] sm:$0xff]  ;;  %v186_v19 = vld [vmem:[%s2176_s2] sm:$0xff]  ;;  %v1537_v20 = vmov 0   ;;  %v189_v22 = vld [vmem:[%s2176_s2 + $0x18] sm:$0xff] }
  0x43   :  { %1432 = vset.pattern.permute.xlu1 %v1537_v20  ;;  %1431 = vset.pattern.permute.xlu0 %v1537_v20  ;;  %v190_v21 = vld [vmem:[%s2176_s2 + $0x20] sm:$0xff]  ;;  %v187_v23 = vld [vmem:[%s2176_s2 + $0x8] sm:$0xff]  ;;  %v193_v25 = vld [vmem:[%s2176_s2 + $0x38] sm:$0xff] }
  0x44   :  { %215 = vperm.xlu1 %1432, %v188_v18   ;;  %205 = vperm.xlu0 %1431, %v186_v19   ;;  %v191_v24 = vld [vmem:[%s2176_s2 + $0x28] sm:$0xff]  ;;  %v192_v26 = vld [vmem:[%s2176_s2 + $0x30] sm:$0xff]  ;;  %v194_v27 = vld [vmem:[%s2176_s2 + $0x40] sm:$0xff] }
  0x45   :  { %1433 = vset.pattern.permute.xlu2 %v1537_v20  ;;  %v196_v28 = vld [vmem:[%s2176_s2 + $0x50] sm:$0xff]  ;;  %v195_v29 = vld [vmem:[%s2176_s2 + $0x48] sm:$0xff]  ;;  %v197_v30 = vld [vmem:[%s2176_s2 + $0x58] sm:$0xff] }
  0x46   :  { %225 = vperm.xlu2 %1433, %v190_v21   ;;  %v199_v31 = vld [vmem:[%s2176_s2 + $0x68] sm:$0xff]  ;;  %v198_v32 = vld [vmem:[%s2176_s2 + $0x60] sm:$0xff]  ;;  %v200_v33 = vld [vmem:[%s2176_s2 + $0x70] sm:$0xff] }
  0x47   :  { %v201_v34 = vld [vmem:[%s2176_s2 + $0x78] sm:$0xff]  ;;  %v334_v35 = vld [vmem:[%s2175_s1] sm:$0xff]  ;;  %v335_v37 = vld [vmem:[%s2175_s1 + $0x8] sm:$0xff] }
  0x48   :  { %vm338_vm1 = vnez %v334_v35  ;;  %vm339_vm2 = vnez %v335_v37  ;;  %v1724_v54 = vld [vmem:[%s2177_s3] ss:$0 sm:$0xff]  ;;  %v336_v58 = vld [vmem:[%s2175_s1 + $0x10] sm:$0xff]  ;;  %v337_v17 = vld [vmem:[%s2175_s1 + $0x18] sm:$0xff] }
  0x49   :  { %v342_v36 = vsel %vm338_vm1, 16843009, %v1537_v20  ;;  %v1716_v40 = vsel %vm339_vm2, 16843009, %v1537_v20  ;;  %vm340_vm7 = vnez %v336_v58  ;;  %vm341_vm11 = vnez %v337_v17 }
  0x4a   :  { %v348_v38 = vunpack.c.2.s8 %v342_v36  ;;  %v346_v39 = vunpack.c.0.s8 %v342_v36  ;;  %v350_v43 = vunpack.c.0.s8 %v1716_v40  ;;  %v347_v46 = vunpack.c.1.s8 %v342_v36 }
  0x4b   :  { %v349_v48 = vunpack.c.3.s8 %v342_v36  ;;  %v353_v56 = vunpack.c.3.s8 %v1716_v40  ;;  %v352_v57 = vunpack.c.2.s8 %v1716_v40  ;;  %v1741_v12 = vsel %vm340_vm7, 16843009, %v1537_v20 }
  0x4c   :  { %220 = vperm.xlu1 %1432, %v189_v22   ;;  %210 = vperm.xlu0 %1431, %v187_v23   ;;  %v366_v41 = vpack.c.b16 %v348_v38, %v348_v38  ;;  %v362_v42 = vpack.c.b16 %v346_v39, %v346_v39  ;;  %v370_v47 = vpack.c.b16 %v350_v43, %v350_v43  ;;  %v351_v16 = vunpack.c.1.s8 %v1716_v40 }
  0x4d   :  { %v364_v49 = vpack.c.b16 %v347_v46, %v347_v46  ;;  %v368_v53 = vpack.c.b16 %v349_v48, %v349_v48  ;;  %v376_v5 = vpack.c.b16 %v353_v56, %v353_v56  ;;  %v374_v6 = vpack.c.b16 %v352_v57, %v352_v57 }
  0x4e   :  { %230 = vperm.xlu2 %1433, %v191_v24   ;;  %v367_v44 = vpack.c.b8 %v366_v41, %v366_v41  ;;  %v363_v45 = vpack.c.b8 %v362_v42, %v362_v42  ;;  %v371_v50 = vpack.c.b8 %v370_v47, %v370_v47  ;;  %v356_v21 = vunpack.c.2.s8 %v1741_v12 }
  0x4f   :  { %v365_v55 = vpack.c.b8 %v364_v49, %v364_v49  ;;  %v369_v1 = vpack.c.b8 %v368_v53, %v368_v53  ;;  %v377_v18 = vpack.c.b8 %v376_v5, %v376_v5  ;;  %v375_v19 = vpack.c.b8 %v374_v6, %v374_v6 }
  0x50   :  { %vm396_vm3 = vnez %v367_v44  ;;  %vm394_vm4 = vnez %v363_v45  ;;  %vm398_vm5 = vnez %v371_v50  ;;  %v355_v22 = vunpack.c.1.s8 %v1741_v12 }
  0x51   :  { %v412_v51 = vsel %vm396_vm3, 16843009, %v1537_v20  ;;  %v410_v52 = vsel %vm394_vm4, 16843009, %v1537_v20  ;;  %vm395_vm6 = vnez %v365_v55  ;;  %v414_v4 = vsel %vm398_vm5, 16843009, %v1537_v20 }
  0x52   :  { %v428_v60 = vunpack.c.0.s8 %v412_v51  ;;  %v426_v61 = vunpack.c.0.s8 %v410_v52  ;;  %v411_v10 = vsel %vm395_vm6, 16843009, %v1537_v20  ;;  %vm1736_vm10 = vnez %v369_v1 }
  0x53   :  { %v430_v15 = vunpack.c.0.s8 %v414_v4  ;;  %vm401_vm13 = vnez %v377_v18  ;;  %vm400_vm14 = vnez %v375_v19  ;;  %v1761_v37 = vsel %vm341_vm11, 16843009, %v1537_v20 }
  0x54   :  { %240 = vperm.xlu1 %1432, %v193_v25   ;;  %235 = vperm.xlu0 %1431, %v192_v26   ;;  %vm444_vm8 = vcmp.ne.s32.totalorder %v428_v60, 0  ;;  %vm442_vm9 = vcmp.ne.s32.totalorder %v426_v61, 0  ;;  %v354_v40 = vunpack.c.0.s8 %v1741_v12  ;;  %v417_v42 = vsel %vm401_vm13, 16843009, %v1537_v20 }
  0x55   :  { %vm446_vm12 = vcmp.ne.s32.totalorder %v430_v15, 0  ;;  %v416_v43 = vsel %vm400_vm14, 16843009, %v1537_v20  ;;  %v359_v47 = vunpack.c.1.s8 %v1761_v37  ;;  %v358_v48 = vunpack.c.0.s8 %v1761_v37 }
  0x56   :  { %245 = vperm.xlu2 %1433, %v194_v27   ;;  %v433_v53 = vunpack.c.0.s8 %v417_v42  ;;  %v432_v56 = vunpack.c.0.s8 %v416_v43  ;;  %v378_v57 = vpack.c.b16 %v354_v40, %v354_v40 }
  0x57   :  { %v388_v61 = vpack.c.b16 %v359_v47, %v359_v47 }
  0x58   :  { %vm449_vm5 = vcmp.ne.s32.totalorder %v433_v53, 0  ;;  %vm448_vm6 = vcmp.ne.s32.totalorder %v432_v56, 0  ;;  %v379_v5 = vpack.c.b8 %v378_v57, %v378_v57 }
  0x59   :  { %v389_v11 = vpack.c.b8 %v388_v61, %v388_v61 }
  0x5a   :  { %vm402_vm7 = vnez %v379_v5 }
  0x5c   :  { %255 = vperm.xlu1 %1432, %v196_v28   ;;  %250 = vperm.xlu0 %1431, %v195_v29   ;;  %v427_v28 = vunpack.c.0.s8 %v411_v10 }
  0x5e   :  { %260 = vperm.xlu2 %1433, %v197_v30   ;;  %v413_v30 = vsel %vm1736_vm10, 16843009, %v1537_v20  ;;  %vm443_vm15 = vcmp.ne.s32.totalorder %v427_v28, 0 }
  0x5f   :  { %v429_v39 = vunpack.c.0.s8 %v413_v30 }
  0x61   :  { %vm1774_vm1 = vcmp.ne.s32.totalorder %v429_v39, 0 }
  0x64   :  { %270 = vperm.xlu1 %1432, %v199_v31   ;;  %265 = vperm.xlu0 %1431, %v198_v32   ;;  %v372_v31 = vpack.c.b16 %v351_v16, %v351_v16 }
  0x66   :  { %275 = vperm.xlu2 %1433, %v200_v33   ;;  %v382_v33 = vpack.c.b16 %v356_v21, %v356_v21  ;;  %v373_v44 = vpack.c.b8 %v372_v31, %v372_v31 }
  0x68   :  { %v383_v45 = vpack.c.b8 %v382_v33, %v382_v33  ;;  %vm399_vm2 = vnez %v373_v44  ;;  %v418_v33 = vsel %vm402_vm7, 16843009, %v1537_v20  ;;  %v360_v44 = vunpack.c.2.s8 %v1761_v37 }
  0x69   :  { %v415_v4 = vsel %vm399_vm2, 16843009, %v1537_v20 }
  0x6a   :  { %vm404_vm3 = vnez %v383_v45  ;;  %v431_v21 = vunpack.c.0.s8 %v415_v4  ;;  %v390_v57 = vpack.c.b16 %v360_v44, %v360_v44 }
  0x6c   :  { %280 = vperm.xlu0 %1431, %v201_v34   ;;  %v380_v34 = vpack.c.b16 %v355_v22, %v355_v22  ;;  %vm447_vm11 = vcmp.ne.s32.totalorder %v431_v21, 0 }
  0x6e   :  { %v381_v46 = vpack.c.b8 %v380_v34, %v380_v34 }
  0x70   :  { %vm403_vm4 = vnez %v381_v46 }
  0xa0   :  { %v226_v59 = vpop.permute.xlu2 %225 }
  0xa1   :  { %v290_v62 = vadd.f32 %v1724_v54, %v226_v59 }
  0xa3   :  { %v306_v9 = vmul.f32 0.2, %v290_v62 }
  0xa5   :  { %v322_v27 = vmax.f32 %v290_v62, %v306_v9  ;;  %v386_v62 = vpack.c.b16 %v358_v48, %v358_v48  ;;  %v419_v9 = vsel %vm403_vm4, 16843009, %v1537_v20  ;;  %v434_v48 = vunpack.c.0.s8 %v418_v33  ;;  %v1857_v33 = vld [vmem:[#allocation2 + $0x8] sm:$0xff] }
  0xa6   :  { %v435_v22 = vunpack.c.0.s8 %v419_v9 }
  0xa7   :  { %v1763_v38 = vsel %vm446_vm12, %v322_v27, -1e+30 }
  0xa8   :  { %v231_v32 = vpop.permute.xlu2 %230  ;;  %vm451_vm12 = vcmp.ne.s32.totalorder %v435_v22, 0 }
  0xa9   :  { %v291_v58 = vadd.f32 %v1724_v54, %v231_v32 }
  0xab   :  { %v307_v10 = vmul.f32 0.2, %v291_v58 }
  0xad   :  { %v323_v32 = vmax.f32 %v291_v58, %v307_v10 }
  0xaf   :  { %v1806_v46 = vsel %vm447_vm11, %v323_v32, -1e+30  ;;  %v1855_v32 = vld [vmem:[#allocation2 + $0x20] sm:$0xff] }
  0xb6   :  { %v216_v63 = vpop.permute.xlu1 %215  ;;  %v206_v0 = vpop.permute.xlu0 %205 }
  0xb7   :  { %v288_v2 = vadd.f32 %v1724_v54, %v216_v63  ;;  %v286_v3 = vadd.f32 %v1724_v54, %v206_v0 }
  0xb9   :  { %v304_v7 = vmul.f32 0.2, %v288_v2  ;;  %v302_v8 = vmul.f32 0.2, %v286_v3 }
  0xbb   :  { %v320_v13 = vmax.f32 %v288_v2, %v304_v7  ;;  %v318_v14 = vmax.f32 %v286_v3, %v302_v8  ;;  %v357_v2 = vunpack.c.3.s8 %v1741_v12  ;;  %v246_v3 = vpop.permute.xlu2 %245  ;;  %v420_v8 = vsel %vm404_vm3, 16843009, %v1537_v20 }
  0xbc   :  { %v436_v19 = vunpack.c.0.s8 %v420_v8  ;;  %v294_v28 = vadd.f32 %v1724_v54, %v246_v3 }
  0xbd   :  { %v1749_v23 = vsel %vm444_vm8, %v320_v13, -1e+30  ;;  %v1751_v24 = vsel %vm442_vm9, %v318_v14, -1e+30  ;;  %v387_v13 = vpack.c.b8 %v386_v62, %v386_v62  ;;  %v361_v14 = vunpack.c.3.s8 %v1761_v37 }
  0xbe   :  { %v221_v25 = vpop.permute.xlu1 %220  ;;  %494 = vmax.xlane.f32.xlu0 %v1749_v23  ;;  %490 = vmax.xlane.f32.xlu1 %v1751_v24  ;;  %v211_v26 = vpop.permute.xlu0 %210  ;;  %v384_v27 = vpack.c.b16 %v357_v2, %v357_v2  ;;  %vm407_vm8 = vnez %v389_v11  ;;  %vm452_vm10 = vcmp.ne.s32.totalorder %v436_v19, 0  ;;  %v310_v40 = vmul.f32 0.2, %v294_v28 }
  0xbf   :  { %v287_v29 = vadd.f32 %v1724_v54, %v211_v26  ;;  %v289_v35 = vadd.f32 %v1724_v54, %v221_v25  ;;  %vm406_vm9 = vnez %v387_v13  ;;  %v391_v2 = vpack.c.b8 %v390_v57, %v390_v57 }
  0xc0   :  { %v422_v39 = vsel %vm406_vm9, 16843009, %v1537_v20  ;;  %v385_v42 = vpack.c.b8 %v384_v27, %v384_v27  ;;  %v326_v56 = vmax.f32 %v294_v28, %v310_v40  ;;  %v1839_v27 = vld [vmem:[#allocation2] sm:$0xff]  ;;  %v1841_v28 = vld [vmem:[#allocation2 + $0x10] sm:$0xff]  ;;  %v1871_v40 = vld [vmem:[#allocation2 + $0x38] sm:$0xff] }
  0xc1   :  { %v303_v36 = vmul.f32 0.2, %v287_v29  ;;  %v305_v49 = vmul.f32 0.2, %v289_v35  ;;  %v438_v53 = vunpack.c.0.s8 %v422_v39  ;;  %vm408_vm3 = vnez %v391_v2 }
  0xc2   :  { %vm405_vm13 = vnez %v385_v42  ;;  %v1875_v42 = vld [vmem:[#allocation2 + $0x30] sm:$0xff] }
  0xc3   :  { %v319_v41 = vmax.f32 %v287_v29, %v303_v36  ;;  %v321_v1 = vmax.f32 %v289_v35, %v305_v49  ;;  %v392_v29 = vpack.c.b16 %v361_v14, %v361_v14  ;;  %v423_v36 = vsel %vm407_vm8, 16843009, %v1537_v20 }
  0xc4   :  { %vm454_vm2 = vcmp.ne.s32.totalorder %v438_v53, 0  ;;  %v1894_v53 = vld [vmem:[#allocation2 + $0x50] sm:$0xff] }
  0xc5   :  { %v1770_v50 = vsel %vm443_vm15, %v319_v41, -1e+30  ;;  %v1790_v12 = vsel %vm1774_vm1, %v321_v1, -1e+30  ;;  %v261_v41 = vpop.permute.xlu2 %260  ;;  %v393_v43 = vpack.c.b8 %v392_v29, %v392_v29  ;;  %vm450_vm15 = vcmp.ne.s32.totalorder %v434_v48, 0 }
  0xc6   :  { %v241_v51 = vpop.permute.xlu1 %240  ;;  %498 = vmax.xlane.f32.xlu1 %v1763_v38  ;;  %492 = vmax.xlane.f32.xlu2 %v1770_v50  ;;  %v236_v52 = vpop.permute.xlu0 %235  ;;  %v297_v58 = vadd.f32 %v1724_v54, %v261_v41  ;;  %v1818_v1 = vsel %vm450_vm15, %v326_v56, -1e+30  ;;  %v1873_v41 = vld [vmem:[#allocation2 + $0x18] sm:$0xff] }
  0xc7   :  { %v293_v59 = vadd.f32 %v1724_v54, %v241_v51  ;;  %v292_v60 = vadd.f32 %v1724_v54, %v236_v52  ;;  %v439_v52 = vunpack.c.0.s8 %v423_v36  ;;  %vm409_vm14 = vnez %v393_v43 }
  0xc8   :  { %v313_v3 = vmul.f32 0.2, %v297_v58 }
  0xc9   :  { %v309_v63 = vmul.f32 0.2, %v293_v59  ;;  %v308_v0 = vmul.f32 0.2, %v292_v60  ;;  %vm455_vm1 = vcmp.ne.s32.totalorder %v439_v52, 0 }
  0xca   :  { %v329_v14 = vmax.f32 %v297_v58, %v313_v3 }
  0xcb   :  { %v325_v6 = vmax.f32 %v293_v59, %v309_v63  ;;  %v324_v7 = vmax.f32 %v292_v60, %v308_v0  ;;  %v421_v63 = vsel %vm405_vm13, 16843009, %v1537_v20  ;;  %v425_v0 = vsel %vm409_vm14, 16843009, %v1537_v20 }
  0xcc   :  { %v437_v8 = vunpack.c.0.s8 %v421_v63  ;;  %v441_v9 = vunpack.c.0.s8 %v425_v0  ;;  %v1915_v63 = vld [vmem:[#allocation2 + $0x40] sm:$0xff] }
  0xcd   :  { %v1786_v15 = vsel %vm449_vm5, %v325_v6, -1e+30  ;;  %v1792_v16 = vsel %vm448_vm6, %v324_v7, -1e+30  ;;  %v276_v6 = vpop.permute.xlu2 %275  ;;  %v1917_v0 = vld [vmem:[#allocation2 + $0x60] sm:$0xff] }
  0xce   :  { %v256_v17 = vpop.permute.xlu1 %255  ;;  %504 = vmax.xlane.f32.xlu1 %v1786_v15  ;;  %496 = vmax.xlane.f32.xlu2 %v1790_v12  ;;  %v251_v18 = vpop.permute.xlu0 %250  ;;  %v300_v11 = vadd.f32 %v1724_v54, %v276_v6  ;;  %vm453_vm4 = vcmp.ne.s32.totalorder %v437_v8, 0  ;;  %vm457_vm5 = vcmp.ne.s32.totalorder %v441_v9, 0 }
  0xcf   :  { %v296_v25 = vadd.f32 %v1724_v54, %v256_v17  ;;  %502 = vmax.xlane.f32.xlu0 %v1792_v16  ;;  %v295_v26 = vadd.f32 %v1724_v54, %v251_v18  ;;  %v424_v18 = vsel %vm408_vm3, 16843009, %v1537_v20  ;;  %v1830_v21 = vsel %vm453_vm4, %v329_v14, -1e+30  ;;  %v1943_v14 = vld [vmem:[#allocation2 + $0x78] sm:$0xff] }
  0xd0   :  { %v316_v19 = vmul.f32 0.2, %v300_v11 }
  0xd1   :  { %v312_v30 = vmul.f32 0.2, %v296_v25  ;;  %v311_v31 = vmul.f32 0.2, %v295_v26 }
  0xd3   :  { %v328_v34 = vmax.f32 %v296_v25, %v312_v30  ;;  %v327_v35 = vmax.f32 %v295_v26, %v311_v31  ;;  %v440_v25 = vunpack.c.0.s8 %v424_v18  ;;  %v332_v26 = vmax.f32 %v300_v11, %v316_v19 }
  0xd5   :  { %v1804_v45 = vsel %vm452_vm10, %v328_v34, -1e+30  ;;  %v1808_v47 = vsel %vm451_vm12, %v327_v35, -1e+30  ;;  %vm456_vm6 = vcmp.ne.s32.totalorder %v440_v25, 0 }
  0xd6   :  { %v271_v49 = vpop.permute.xlu1 %270  ;;  %510 = vmax.xlane.f32.xlu1 %v1804_v45  ;;  %500 = vmax.xlane.f32.xlu2 %v1806_v46  ;;  %v266_v51 = vpop.permute.xlu0 %265 }
  0xd7   :  { %v299_v55 = vadd.f32 %v1724_v54, %v271_v49  ;;  %508 = vmax.xlane.f32.xlu0 %v1808_v47  ;;  %v298_v37 = vadd.f32 %v1724_v54, %v266_v51 }
  0xd9   :  { %v315_v59 = vmul.f32 0.2, %v299_v55  ;;  %v314_v60 = vmul.f32 0.2, %v298_v37 }
  0xdb   :  { %v331_v61 = vmax.f32 %v299_v55, %v315_v59  ;;  %v330_v62 = vmax.f32 %v298_v37, %v314_v60  ;;  %v1896_v55 = vld [vmem:[#allocation2 + $0x28] sm:$0xff] }
  0xdc   :  { %v1898_v37 = vld [vmem:[#allocation2 + $0x48] sm:$0xff] }
  0xdd   :  { %v1820_v4 = vsel %vm455_vm1, %v331_v61, -1e+30  ;;  %v1822_v5 = vsel %vm454_vm2, %v330_v62, -1e+30  ;;  %v1913_v62 = vld [vmem:[#allocation2 + $0x68] sm:$0xff] }
  0xde   :  { %516 = vmax.xlane.f32.xlu1 %v1820_v4  ;;  %506 = vmax.xlane.f32.xlu2 %v1818_v1  ;;  %v281_v7 = vpop.permute.xlu0 %280 }
  0xdf   :  { %514 = vmax.xlane.f32.xlu0 %v1822_v5  ;;  %v301_v10 = vadd.f32 %v1724_v54, %v281_v7  ;;  %v1836_v54 = vsel %vm456_vm6, %v332_v26, -1e+30 }
  0xe1   :  { %v317_v13 = vmul.f32 0.2, %v301_v10 }
  0xe3   :  { %v333_v17 = vmax.f32 %v301_v10, %v317_v13  ;;  %v1941_v13 = vld [vmem:[#allocation2 + $0x58] sm:$0xff] }
  0xe5   :  { %v1832_v22 = vsel %vm457_vm5, %v333_v17, -1e+30 }
  0xe6   :  { %512 = vmax.xlane.f32.xlu2 %v1830_v21 }
  0xe7   :  { %520 = vmax.xlane.f32.xlu0 %v1832_v22 }
  0xee   :  { %518 = vmax.xlane.f32.xlu2 %v1836_v54 }
 0x131   :  { %v491_v20 = vpop.xlane.xlu1 %490  ;;  %v495_v29 = vpop.xlane.xlu0 %494 }
 0x132   :  { %v1844_v30 = vmax.f32 %v1839_v27, %v491_v20  ;;  %v1847_v31 = vmax.f32 %v1841_v28, %v495_v29 }
 0x134   :  { %1076 = vst.msk [vmem:[#allocation2] sm:$0xff] %vm131_vm0, %v1844_v30  ;;  %588 = vperm.xlu1 %1432, %v1844_v30   ;;  %598 = vperm.xlu0 %1431, %v1847_v31   ;;  %v540_v11 = vsub.f32 %v1841_v28, %v1847_v31  ;;  %v538_v20 = vsub.f32 %v1839_v27, %v1844_v30  ;;  %v1966_v30 = vld [vmem:[#allocation2 + $0x70] sm:$0xff] }
 0x135   :  { %1078 = vst.msk [vmem:[#allocation2 + $0x10] sm:$0xff] %vm131_vm0, %v1847_v31 }
 0x136   :  { %v558_v18 = vmul.f32 1.442695, %v540_v11  ;;  %v554_v31 = vmul.f32 1.442695, %v538_v20 }
 0x138   :  { %1435 = vpow2.f32 %v558_v18  ;;  %v1354_v18 = vld [vmem:[#allocation7 + $0x30] sm:$0xff] }
 0x139   :  { %v499_v34 = vpop.xlane.xlu1 %498  ;;  %v493_v35 = vpop.xlane.xlu2 %492  ;;  %1437 = vpow2.f32 %v554_v31 }
 0x13a   :  { %v1860_v36 = vmax.f32 %v1855_v32, %v499_v34  ;;  %v1863_v39 = vmax.f32 %v1857_v33, %v493_v35 }
 0x13c   :  { %1080 = vst.msk [vmem:[#allocation2 + $0x20] sm:$0xff] %vm131_vm0, %v1860_v36  ;;  %593 = vperm.xlu2 %1433, %v1863_v39   ;;  %608 = vperm.xlu0 %1431, %v1860_v36   ;;  %v539_v28 = vsub.f32 %v1857_v33, %v1863_v39  ;;  %v542_v27 = vsub.f32 %v1855_v32, %v1860_v36 }
 0x13d   :  { %1077 = vst.msk [vmem:[#allocation2 + $0x8] sm:$0xff] %vm131_vm0, %v1863_v39 }
 0x13e   :  { %v556_v34 = vmul.f32 1.442695, %v539_v28  ;;  %v1971_v39 = vpop.eup %1435 }
 0x140   :  { %1439 = vpow2.f32 %v556_v34  ;;  %v1351_v34 = vld [vmem:[#allocation7 + $0x18] sm:$0xff] }
 0x141   :  { %v505_v43 = vpop.xlane.xlu1 %504  ;;  %v497_v44 = vpop.xlane.xlu2 %496 }
 0x142   :  { %v1878_v48 = vmax.f32 %v1871_v40, %v505_v43  ;;  %v1881_v49 = vmax.f32 %v1873_v41, %v497_v44  ;;  %v503_v51 = vpop.xlane.xlu0 %502  ;;  %v562_v43 = vmul.f32 1.442695, %v542_v27 }
 0x143   :  { %v1884_v52 = vmax.f32 %v1875_v42, %v503_v51 }
 0x144   :  { %1083 = vst.msk [vmem:[#allocation2 + $0x38] sm:$0xff] %vm131_vm0, %v1878_v48  ;;  %603 = vperm.xlu1 %1432, %v1881_v49   ;;  %623 = vperm.xlu0 %1431, %v1878_v48   ;;  %v541_v44 = vsub.f32 %v1873_v41, %v1881_v49  ;;  %1441 = vpow2.f32 %v562_v43  ;;  %v545_v36 = vsub.f32 %v1871_v40, %v1878_v48  ;;  %v1348_v43 = vld [vmem:[#allocation7] sm:$0xff] }
 0x145   :  { %1079 = vst.msk [vmem:[#allocation2 + $0x18] sm:$0xff] %vm131_vm0, %v1881_v49 }
 0x146   :  { %1082 = vst.msk [vmem:[#allocation2 + $0x30] sm:$0xff] %vm131_vm0, %v1884_v52  ;;  %v560_v41 = vmul.f32 1.442695, %v541_v44 }
 0x148   :  { %1443 = vpow2.f32 %v560_v41 }
 0x149   :  { %v511_v56 = vpop.xlane.xlu1 %510  ;;  %v501_v57 = vpop.xlane.xlu2 %500 }
 0x14a   :  { %v1901_v58 = vmax.f32 %v1894_v53, %v511_v56  ;;  %v527_v59 = vmax.f32 %v1896_v55, %v501_v57  ;;  %v509_v60 = vpop.xlane.xlu0 %508  ;;  %v1985_v56 = vpop.eup %1437  ;;  %v568_v57 = vmul.f32 1.442695, %v545_v36 }
 0x14b   :  { %v1905_v61 = vmax.f32 %v1898_v37, %v509_v60  ;;  %v1987_v60 = vpop.eup %1439 }
 0x14c   :  { %1086 = vst.msk [vmem:[#allocation2 + $0x50] sm:$0xff] %vm131_vm0, %v1901_v58  ;;  %613 = vperm.xlu2 %1433, %v527_v59   ;;  %618 = vperm.xlu1 %1432, %v1884_v52   ;;  %v543_v32 = vsub.f32 %v1896_v55, %v527_v59  ;;  %v1355_v55 = vld [vmem:[#allocation7 + $0x38] sm:$0xff]  ;;  %v548_v48 = vsub.f32 %v1894_v53, %v1901_v58 }
 0x14d   :  { %1081 = vst.msk [vmem:[#allocation2 + $0x28] sm:$0xff] %vm131_vm0, %v527_v59  ;;  %995 = vmatpush.bf16.msra.mxu0 %v1355_v55  ;;  %1403 = vmatpush.bf16.msra.mxu1 %v1355_v55 }
 0x14e   :  { %1085 = vst.msk [vmem:[#allocation2 + $0x48] sm:$0xff] %vm131_vm0, %v1905_v61  ;;  %v564_v49 = vmul.f32 1.442695, %v543_v32  ;;  %1404 = vmatpush.bf16.msra.mxu2 %v1355_v55  ;;  %1405 = vmatpush.bf16.msra.mxu3 %v1355_v55 }
 0x150   :  { %1445 = vpow2.f32 %v564_v49 }
 0x151   :  { %v517_v2 = vpop.xlane.xlu1 %516  ;;  %v507_v3 = vpop.xlane.xlu2 %506  ;;  %1447 = vpow2.f32 %v568_v57  ;;  %996 = vmatpush.bf16.msra.mxu0 %v1354_v18  ;;  %1406 = vmatpush.bf16.msra.mxu1 %v1354_v18 }
 0x152   :  { %v1920_v6 = vmax.f32 %v1913_v62, %v517_v2  ;;  %v1923_v7 = vmax.f32 %v1915_v63, %v507_v3  ;;  %v515_v8 = vpop.xlane.xlu0 %514  ;;  %v1989_v2 = vpop.eup %1441  ;;  %v544_v3 = vsub.f32 %v1875_v42, %v1884_v52  ;;  %1407 = vmatpush.bf16.msra.mxu2 %v1354_v18  ;;  %1408 = vmatpush.bf16.msra.mxu3 %v1354_v18 }
 0x153   :  { %v1926_v9 = vmax.f32 %v1917_v0, %v515_v8  ;;  %v2000_v59 = vpop.eup %1443  ;;  %v574_v8 = vmul.f32 1.442695, %v548_v48 }
 0x154   :  { %v551_v10 = vsub.f32 %v1913_v62, %v1920_v6  ;;  %1089 = vst.msk [vmem:[#allocation2 + $0x68] sm:$0xff] %vm131_vm0, %v1920_v6  ;;  %628 = vperm.xlu2 %1433, %v1923_v7   ;;  %633 = vperm.xlu1 %1432, %v1905_v61   ;;  %v546_v40 = vsub.f32 %v1915_v63, %v1923_v7  ;;  %v566_v42 = vmul.f32 1.442695, %v544_v3 }
 0x155   :  { %1084 = vst.msk [vmem:[#allocation2 + $0x40] sm:$0xff] %vm131_vm0, %v1923_v7  ;;  %648 = vperm.xlu0 %1431, %v1926_v9   ;;  %v547_v63 = vsub.f32 %v1898_v37, %v1905_v61  ;;  %v1353_v37 = vld [vmem:[#allocation7 + $0x28] sm:$0xff] }
 0x156   :  { %1088 = vst.msk [vmem:[#allocation2 + $0x60] sm:$0xff] %vm131_vm0, %v1926_v9  ;;  %v570_v52 = vmul.f32 1.442695, %v546_v40  ;;  %v2002_v11 = vpop.eup %1445  ;;  %1449 = vpow2.f32 %v566_v42  ;;  %997 = vmatpush.bf16.msra.mxu0 %v1353_v37  ;;  %1409 = vmatpush.bf16.msra.mxu1 %v1353_v37 }
 0x157   :  { %1410 = vmatpush.bf16.msra.mxu2 %v1353_v37  ;;  %1411 = vmatpush.bf16.msra.mxu3 %v1353_v37 }
 0x158   :  { %1451 = vpow2.f32 %v570_v52 }
 0x159   :  { %v513_v17 = vpop.xlane.xlu2 %512  ;;  %1453 = vpow2.f32 %v574_v8 }
 0x15a   :  { %v1946_v19 = vmax.f32 %v1941_v13, %v513_v17  ;;  %v521_v25 = vpop.xlane.xlu0 %520  ;;  %v2004_v17 = vpop.eup %1447 }
 0x15b   :  { %v1949_v26 = vmax.f32 %v1943_v14, %v521_v25 }
 0x15c   :  { %1087 = vst.msk [vmem:[#allocation2 + $0x58] sm:$0xff] %vm131_vm0, %v1946_v19  ;;  %653 = vperm.xlu2 %1433, %v1920_v6   ;;  %638 = vperm.xlu1 %1432, %v1901_v58   ;;  %v549_v53 = vsub.f32 %v1941_v13, %v1946_v19  ;;  %v572_v58 = vmul.f32 1.442695, %v547_v63  ;;  %v2013_v25 = vpop.eup %1449  ;;  %v550_v13 = vsub.f32 %v1917_v0, %v1926_v9  ;;  %v1350_v0 = vld [vmem:[#allocation7 + $0x10] sm:$0xff] }
 0x15d   :  { %v553_v29 = vsub.f32 %v1943_v14, %v1949_v26  ;;  %1091 = vst.msk [vmem:[#allocation2 + $0x78] sm:$0xff] %vm131_vm0, %v1949_v26  ;;  %643 = vperm.xlu0 %1431, %v1946_v19   ;;  %v1352_v19 = vld [vmem:[#allocation7 + $0x20] sm:$0xff] }
 0x15e   :  { %v576_v7 = vmul.f32 1.442695, %v549_v53  ;;  %v2015_v20 = vpop.eup %1451  ;;  %1455 = vpow2.f32 %v572_v58  ;;  %v578_v28 = vmul.f32 1.442695, %v550_v13  ;;  %998 = vmatpush.bf16.msra.mxu0 %v1352_v19  ;;  %1412 = vmatpush.bf16.msra.mxu1 %v1352_v19 }
 0x15f   :  { %v2017_v61 = vpop.eup %1453  ;;  %1413 = vmatpush.bf16.msra.mxu2 %v1352_v19  ;;  %1414 = vmatpush.bf16.msra.mxu3 %v1352_v19 }
 0x160   :  { %1457 = vpow2.f32 %v576_v7 }
 0x161   :  { %v519_v35 = vpop.xlane.xlu2 %518  ;;  %1459 = vpow2.f32 %v578_v28 }
 0x162   :  { %v1969_v33 = vmax.f32 %v1966_v30, %v519_v35  ;;  %999 = vmatpush.bf16.msra.mxu0 %v1351_v34  ;;  %1415 = vmatpush.bf16.msra.mxu1 %v1351_v34  ;;  %v1349_v35 = vld [vmem:[#allocation7 + $0x8] sm:$0xff] }
 0x163   :  { %1416 = vmatpush.bf16.msra.mxu2 %v1351_v34  ;;  %1417 = vmatpush.bf16.msra.mxu3 %v1351_v34 }
 0x164   :  { %v552_v51 = vsub.f32 %v1966_v30, %v1969_v33  ;;  %1090 = vst.msk [vmem:[#allocation2 + $0x70] sm:$0xff] %vm131_vm0, %v1969_v33  ;;  %658 = vperm.xlu2 %1433, %v1969_v33   ;;  %663 = vperm.xlu1 %1432, %v1949_v26   ;;  %v2024_v27 = vpop.eup %1455 }
 0x165   :  { %839 = vperm.xlu0 %1431, %v1971_v39  }
 0x166   :  { %v2026_v31 = vpop.eup %1457  ;;  %1000 = vmatpush.bf16.msra.mxu0 %v1350_v0  ;;  %1418 = vmatpush.bf16.msra.mxu1 %v1350_v0 }
 0x167   :  { %v2030_v9 = vpop.eup %1459  ;;  %1419 = vmatpush.bf16.msra.mxu2 %v1350_v0  ;;  %1420 = vmatpush.bf16.msra.mxu3 %v1350_v0 }
 0x16a   :  { %1001 = vmatpush.bf16.msra.mxu0 %v1349_v35  ;;  %1421 = vmatpush.bf16.msra.mxu1 %v1349_v35 }
 0x16b   :  { %1422 = vmatpush.bf16.msra.mxu2 %v1349_v35  ;;  %1423 = vmatpush.bf16.msra.mxu3 %v1349_v35 }
 0x16c   :  { %829 = vperm.xlu2 %1433, %v1985_v56   ;;  %834 = vperm.xlu1 %1432, %v1987_v60  }
 0x16d   :  { %849 = vperm.xlu0 %1431, %v1989_v2  }
 0x16e   :  { %1002 = vmatpush.bf16.msra.mxu0 %v1348_v43  ;;  %1424 = vmatpush.bf16.msra.mxu1 %v1348_v43 }
 0x16f   :  { %1425 = vmatpush.bf16.msra.mxu2 %v1348_v43  ;;  %1426 = vmatpush.bf16.msra.mxu3 %v1348_v43 }
 0x174   :  { %844 = vperm.xlu2 %1433, %v2000_v59   ;;  %854 = vperm.xlu1 %1432, %v2002_v11  }
 0x175   :  { %864 = vperm.xlu0 %1431, %v2004_v17  }
 0x17c   :  { %859 = vperm.xlu2 %1433, %v2013_v25   ;;  %869 = vperm.xlu1 %1432, %v2015_v20  }
 0x17d   :  { %879 = vperm.xlu0 %1431, %v2017_v61  }
 0x184   :  { %874 = vperm.xlu2 %1433, %v2024_v27   ;;  %884 = vperm.xlu1 %1432, %v2026_v31  }
 0x18c   :  { %889 = vperm.xlu2 %1433, %v2030_v9  }
 0x196   :  { %v594_v44 = vpop.permute.xlu2 %593 }
 0x197   :  { %v667_v32 = vsub.f32 %v1770_v50, %v594_v44 }
 0x199   :  { %v684_v36 = vmul.f32 1.442695, %v667_v32 }
 0x19b   :  { %1461 = vpow2.f32 %v684_v36 }
 0x1a1   :  { %v1462_v63 = vpop.eup %1461 }
 0x1a6   :  { %v589_v41 = vpop.permute.xlu1 %588  ;;  %v599_v57 = vpop.permute.xlu0 %598 }
 0x1a7   :  { %v666_v49 = vsub.f32 %v1751_v24, %v589_v41  ;;  %v614_v3 = vpop.permute.xlu2 %613  ;;  %v668_v55 = vsub.f32 %v1749_v23, %v599_v57 }
 0x1a8   :  { %v671_v42 = vsub.f32 %v1806_v46, %v614_v3 }
 0x1a9   :  { %v682_v40 = vmul.f32 1.442695, %v666_v49  ;;  %v686_v48 = vmul.f32 1.442695, %v668_v55 }
 0x1aa   :  { %v692_v52 = vmul.f32 1.442695, %v671_v42 }
 0x1ab   :  { %1463 = vpow2.f32 %v682_v40 }
 0x1ac   :  { %1465 = vpow2.f32 %v686_v48 }
 0x1ad   :  { %1467 = vpow2.f32 %v692_v52 }
 0x1ae   :  { %v609_v8 = vpop.permute.xlu0 %608 }
 0x1af   :  { %v670_v50 = vsub.f32 %v1763_v38, %v609_v8  ;;  %v629_v58 = vpop.permute.xlu2 %628 }
 0x1b0   :  { %v674_v23 = vsub.f32 %v1818_v1, %v629_v58 }
 0x1b1   :  { %v1464_v53 = vpop.eup %1463  ;;  %v690_v7 = vmul.f32 1.442695, %v670_v50 }
 0x1b2   :  { %746 = vadd.xlane.f32.xlu0 %v1464_v53  ;;  %v923_v24 = vpack.c.bf16 %v1462_v63, %v1464_v53  ;;  %v1466_v18 = vpop.eup %1465  ;;  %v698_v28 = vmul.f32 1.442695, %v674_v23 }
 0x1b3   :  { %1469 = vpow2.f32 %v690_v7  ;;  %750 = vadd.xlane.f32.xlu1 %v1466_v18  ;;  %v1468_v38 = vpop.eup %1467 }
 0x1b4   :  { %1003 = vmatmul.bf16.vlgmr.msra.gmra.mxu0 %v923_v24 }
 0x1b5   :  { %748 = vadd.xlane.f32.xlu2 %v1462_v63 }
 0x1b6   :  { %v604_v46 = vpop.permute.xlu1 %603  ;;  %v624_v13 = vpop.permute.xlu0 %623 }
 0x1b7   :  { %v669_v37 = vsub.f32 %v1790_v12, %v604_v46  ;;  %v673_v19 = vsub.f32 %v1786_v15, %v624_v13  ;;  %v654_v44 = vpop.permute.xlu2 %653 }
 0x1b8   :  { %v679_v15 = vsub.f32 %v1820_v4, %v654_v44  ;;  %v582_v44 = vmul.f32 1.442695, %v552_v51 }
 0x1b9   :  { %v688_v34 = vmul.f32 1.442695, %v669_v37  ;;  %v1470_v0 = vpop.eup %1469  ;;  %v696_v35 = vmul.f32 1.442695, %v673_v19 }
 0x1ba   :  { %v925_v43 = vpack.c.bf16 %v1468_v38, %v1470_v0  ;;  %v708_v3 = vmul.f32 1.442695, %v679_v15 }
 0x1bb   :  { %1471 = vpow2.f32 %v688_v34  ;;  %756 = vadd.xlane.f32.xlu1 %v1468_v38 }
 0x1bc   :  { %1473 = vpow2.f32 %v698_v28  ;;  %1013 = vmatmul.bf16.vlgmr.msra.gmra.mxu1 %v925_v43 }
 0x1bd   :  { %754 = vadd.xlane.f32.xlu2 %v1470_v0  ;;  %1475 = vpow2.f32 %v696_v35 }
 0x1be   :  { %v619_v1 = vpop.permute.xlu1 %618 }
 0x1bf   :  { %v672_v32 = vsub.f32 %v1792_v16, %v619_v1  ;;  %v659_v50 = vpop.permute.xlu2 %658  ;;  %v584_v1 = vmul.f32 1.442695, %v553_v29 }
 0x1c0   :  { %v680_v23 = vsub.f32 %v1836_v54, %v659_v50 }
 0x1c1   :  { %v1472_v12 = vpop.eup %1471  ;;  %v694_v36 = vmul.f32 1.442695, %v672_v32 }
 0x1c2   :  { %752 = vadd.xlane.f32.xlu0 %v1472_v12  ;;  %v924_v41 = vpack.c.bf16 %v1472_v12, %v1466_v18  ;;  %v1474_v49 = vpop.eup %1473  ;;  %v710_v19 = vmul.f32 1.442695, %v680_v23 }
 0x1c3   :  { %v1476_v57 = vpop.eup %1475  ;;  %1477 = vpow2.f32 %v694_v36  ;;  %762 = vadd.xlane.f32.xlu1 %v1474_v49 }
 0x1c4   :  { %1008 = vmatmul.bf16.gmra.mxu0 %v924_v41  ;;  %1479 = vpow2.f32 %v708_v3  ;;  %v714_v3 = vld [vmem:[#allocation3] sm:$0xff] }
 0x1c5   :  { %760 = vadd.xlane.f32.xlu2 %v1476_v57 }
 0x1c6   :  { %v634_v55 = vpop.permute.xlu1 %633 }
 0x1c7   :  { %v675_v40 = vsub.f32 %v1808_v47, %v634_v55  ;;  %v649_v48 = vpop.permute.xlu0 %648  ;;  %v830_v12 = vpop.permute.xlu2 %829  ;;  %v716_v55 = vld [vmem:[#allocation3 + $0x10] sm:$0xff] }
 0x1c8   :  { %v678_v42 = vsub.f32 %v1822_v5, %v649_v48  ;;  %v715_v48 = vld [vmem:[#allocation3 + $0x8] sm:$0xff] }
 0x1c9   :  { %v700_v16 = vmul.f32 1.442695, %v675_v40  ;;  %v1478_v52 = vpop.eup %1477  ;;  %v730_v40 = vmul.f32 %v1985_v56, %v714_v3  ;;  %v811_v56 = vld [vmem:[#allocation4 + $0x30] sm:$0xff] }
 0x1ca   :  { %v706_v8 = vmul.f32 1.442695, %v678_v42  ;;  %758 = vadd.xlane.f32.xlu0 %v1478_v52  ;;  %v926_v4 = vpack.c.bf16 %v1476_v57, %v1478_v52  ;;  %v1480_v7 = vpop.eup %1479 }
 0x1cb   :  { %1481 = vpow2.f32 %v700_v16  ;;  %v732_v16 = vmul.f32 %v1971_v39, %v716_v55  ;;  %v720_v55 = vld [vmem:[#allocation3 + $0x30] sm:$0xff] }
 0x1cc   :  { %1483 = vpow2.f32 %v706_v8  ;;  %1018 = vmatmul.bf16.gmra.mxu1 %v926_v4  ;;  %v731_v4 = vmul.f32 %v1987_v60, %v715_v48 }
 0x1ce   :  { %v639_v63 = vpop.permute.xlu1 %638 }
 0x1cf   :  { %v676_v53 = vsub.f32 %v1804_v45, %v639_v63  ;;  %v644_v58 = vpop.permute.xlu0 %643  ;;  %v2069_v14 = vpop.permute.xlu2 %844 }
 0x1d0   :  { %v677_v47 = vsub.f32 %v1830_v21, %v644_v58  ;;  %v719_v58 = vld [vmem:[#allocation3 + $0x28] sm:$0xff] }
 0x1d1   :  { %v1482_v24 = vpop.eup %1481  ;;  %v702_v18 = vmul.f32 1.442695, %v676_v53 }
 0x1d2   :  { %v1484_v5 = vpop.eup %1483  ;;  %v704_v46 = vmul.f32 1.442695, %v677_v47  ;;  %v927_v37 = vpack.c.bf16 %v1482_v24, %v1474_v49  ;;  %764 = vadd.xlane.f32.xlu0 %v1482_v24  ;;  %v735_v47 = vmul.f32 %v2002_v11, %v719_v58  ;;  %v812_v11 = vld [vmem:[#allocation4] sm:$0xff] }
 0x1d3   :  { %1485 = vpow2.f32 %v702_v18  ;;  %v929_v13 = vpack.c.bf16 %v1480_v7, %v1484_v5  ;;  %v907_v18 = vmul.f32 %v830_v12, %v811_v56 }
 0x1d4   :  { %1487 = vpow2.f32 %v704_v46  ;;  %1023 = vmatmul.bf16.vlgmr.msra.gmra.mxu2 %v927_v37  ;;  %v717_v37 = vld [vmem:[#allocation3 + $0x18] sm:$0xff] }
 0x1d5   :  { %1033 = vmatmul.bf16.vlgmr.msra.gmra.mxu3 %v929_v13  ;;  %1489 = vpow2.f32 %v710_v19  ;;  %v722_v19 = vld [vmem:[#allocation3 + $0x40] sm:$0xff] }
 0x1d6   :  { %v664_v38 = vpop.permute.xlu1 %663 }
 0x1d7   :  { %v681_v45 = vsub.f32 %v1832_v22, %v664_v38  ;;  %v580_v22 = vmul.f32 1.442695, %v551_v10  ;;  %v2067_v6 = vpop.permute.xlu0 %839  ;;  %v2073_v30 = vpop.permute.xlu2 %859  ;;  %v733_v38 = vmul.f32 %v2000_v59, %v717_v37 }
 0x1d9   :  { %v1486_v28 = vpop.eup %1485  ;;  %v712_v34 = vmul.f32 1.442695, %v681_v45  ;;  %v721_v45 = vld [vmem:[#allocation3 + $0x38] sm:$0xff] }
 0x1da   :  { %v1488_v21 = vpop.eup %1487  ;;  %766 = vadd.xlane.f32.xlu2 %v1486_v28  ;;  %770 = vadd.xlane.f32.xlu0 %v1484_v5 }
 0x1db   :  { %1491 = vpow2.f32 %v712_v34  ;;  %768 = vadd.xlane.f32.xlu1 %v1488_v21  ;;  %v1490_v54 = vpop.eup %1489  ;;  %v928_v35 = vpack.c.bf16 %v1488_v21, %v1486_v28  ;;  %v815_v34 = vld [vmem:[#allocation4 + $0x50] sm:$0xff] }
 0x1dc   :  { %1493 = vpow2.f32 %v580_v22 }
 0x1dd   :  { %1495 = vpow2.f32 %v584_v1 }
 0x1de   :  { %1497 = vpow2.f32 %v582_v44  ;;  %v835_v10 = vpop.permute.xlu1 %834 }
 0x1df   :  { %v850_v26 = vpop.permute.xlu0 %849  ;;  %v2079_v15 = vpop.permute.xlu2 %874 }
 0x1e0   :  { %v911_v1 = vmul.f32 %v850_v26, %v815_v34  ;;  %v727_v34 = vld [vmem:[#allocation3 + $0x68] sm:$0xff] }
 0x1e1   :  { %v1492_v0 = vpop.eup %1491 }
 0x1e2   :  { %772 = vadd.xlane.f32.xlu2 %v1480_v7  ;;  %v930_v43 = vpack.c.bf16 %v1492_v0, %v1490_v54  ;;  %776 = vadd.xlane.f32.xlu0 %v1492_v0  ;;  %v2058_v32 = vpop.eup %1493  ;;  %v718_v7 = vld [vmem:[#allocation3 + $0x20] sm:$0xff]  ;;  %v737_v0 = vmul.f32 %v2004_v17, %v721_v45  ;;  %v736_v17 = vmul.f32 %v2013_v25, %v720_v55  ;;  %v817_v25 = vld [vmem:[#allocation4 + $0x8] sm:$0xff] }
 0x1e3   :  { %774 = vadd.xlane.f32.xlu1 %v1490_v54  ;;  %v2061_v36 = vpop.eup %1495  ;;  %v734_v39 = vmul.f32 %v1989_v2, %v718_v7  ;;  %v738_v2 = vmul.f32 %v2015_v20, %v722_v19 }
 0x1e4   :  { %1028 = vmatmul.bf16.gmra.mxu2 %v928_v35  ;;  %v2064_v62 = vpop.eup %1497  ;;  %v908_v35 = vmul.f32 %v835_v10, %v812_v11  ;;  %v816_v10 = vld [vmem:[#allocation4 + $0x68] sm:$0xff] }
 0x1e5   :  { %1038 = vmatmul.bf16.gmra.mxu3 %v930_v43 }
 0x1e6   :  { %v2071_v29 = vpop.permute.xlu1 %854 }
 0x1e7   :  { %v2075_v33 = vpop.permute.xlu0 %864  ;;  %v2085_v57 = vpop.permute.xlu2 %889 }
 0x1ee   :  { %v2077_v51 = vpop.permute.xlu1 %869 }
 0x1ef   :  { %v2081_v41 = vpop.permute.xlu0 %879 }
 0x1f6   :  { %894 = vperm.xlu0 %1431, %v2058_v32   ;;  %v2083_v49 = vpop.permute.xlu1 %884 }
 0x1fa   :  { %904 = vperm.xlu2 %1433, %v2061_v36  }
 0x1fc   :  { %899 = vperm.xlu1 %1432, %v2064_v62  }
 0x225   :  { %v747_v42 = vpop.xlane.xlu0 %746 }
 0x226   :  { %v778_v52 = vadd.f32 %v747_v42, %v730_v40  ;;  %v751_v8 = vpop.xlane.xlu1 %750  ;;  %v813_v40 = vld [vmem:[#allocation4 + $0x58] sm:$0xff] }
 0x227   :  { %v780_v63 = vadd.f32 %v751_v8, %v732_v16  ;;  %v909_v26 = vmul.f32 %v2067_v6, %v813_v40  ;;  %v912_v16 = vmul.f32 %v2071_v29, %v816_v10  ;;  %v913_v6 = vmul.f32 %v2073_v30, %v817_v25 }
 0x228   :  { %795 = vst.msk [vmem:[#allocation3] sm:$0xff] %vm131_vm0, %v778_v52  ;;  %v749_v50 = vpop.xlane.xlu2 %748 }
 0x229   :  { %v779_v53 = vadd.f32 %v749_v50, %v731_v4  ;;  %797 = vst.msk [vmem:[#allocation3 + $0x10] sm:$0xff] %vm131_vm0, %v780_v63  ;;  %v723_v63 = vld [vmem:[#allocation3 + $0x48] sm:$0xff] }
 0x22a   :  { %v739_v58 = vmul.f32 %v2024_v27, %v723_v63 }
 0x22b   :  { %796 = vst.msk [vmem:[#allocation3 + $0x8] sm:$0xff] %vm131_vm0, %v779_v53  ;;  %v814_v53 = vld [vmem:[#allocation4 + $0x18] sm:$0xff] }
 0x22e   :  { %v757_v24 = vpop.xlane.xlu1 %756 }
 0x22f   :  { %v783_v5 = vadd.f32 %v757_v24, %v735_v47  ;;  %v910_v47 = vmul.f32 %v2069_v14, %v814_v53  ;;  %v724_v24 = vld [vmem:[#allocation3 + $0x50] sm:$0xff]  ;;  %v826_v53 = vld [vmem:[#allocation4 + $0x28] sm:$0xff] }
 0x230   :  { %v755_v60 = vpop.xlane.xlu2 %754 }
 0x231   :  { %v782_v23 = vadd.f32 %v755_v60, %v734_v39  ;;  %v1004_v46 = vpop.f32.mrf.mxu0  ;;  %800 = vst.msk [vmem:[#allocation3 + $0x28] sm:$0xff] %vm131_vm0, %v783_v5  ;;  %v725_v5 = vld [vmem:[#allocation3 + $0x58] sm:$0xff]  ;;  %v726_v60 = vld [vmem:[#allocation3 + $0x60] sm:$0xff] }
 0x232   :  { %v1044_v13 = vadd.f32 %v1004_v46, %v907_v18  ;;  %v740_v46 = vmul.f32 %v2017_v61, %v724_v24  ;;  %v741_v37 = vmul.f32 %v2026_v31, %v725_v5  ;;  %v742_v14 = vmul.f32 %v2030_v9, %v726_v60  ;;  %v729_v31 = vld [vmem:[#allocation3 + $0x78] sm:$0xff] }
 0x233   :  { %799 = vst.msk [vmem:[#allocation3 + $0x20] sm:$0xff] %vm131_vm0, %v782_v23 }
 0x234   :  { %1060 = vst [vmem:[#allocation4 + $0x30] sm:$0xff] %v1044_v13  ;;  %v818_v13 = vld [vmem:[#allocation4 + $0x48] sm:$0xff] }
 0x235   :  { %v753_v28 = vpop.xlane.xlu0 %752 }
 0x236   :  { %v781_v21 = vadd.f32 %v753_v28, %v733_v38  ;;  %v763_v54 = vpop.xlane.xlu1 %762  ;;  %v914_v28 = vmul.f32 %v2075_v33, %v818_v13 }
 0x237   :  { %v786_v43 = vadd.f32 %v763_v54, %v738_v2  ;;  %v728_v2 = vld [vmem:[#allocation3 + $0x70] sm:$0xff]  ;;  %v823_v54 = vld [vmem:[#allocation4 + $0x60] sm:$0xff] }
 0x238   :  { %798 = vst.msk [vmem:[#allocation3 + $0x18] sm:$0xff] %vm131_vm0, %v781_v21  ;;  %v761_v22 = vpop.xlane.xlu2 %760  ;;  %v819_v21 = vld [vmem:[#allocation4 + $0x40] sm:$0xff] }
 0x239   :  { %v785_v44 = vadd.f32 %v761_v22, %v737_v0  ;;  %v1006_v12 = vpop.f32.mrf.mxu0  ;;  %803 = vst.msk [vmem:[#allocation3 + $0x40] sm:$0xff] %vm131_vm0, %v786_v43  ;;  %v1014_v3 = vpop.f32.mrf.mxu1  ;;  %v743_v0 = vmul.f32 %v2058_v32, %v727_v34  ;;  %v744_v43 = vmul.f32 %v2064_v62, %v728_v2  ;;  %v745_v22 = vmul.f32 %v2061_v36, %v729_v31  ;;  %v820_v36 = vld [vmem:[#allocation4 + $0x20] sm:$0xff] }
 0x23a   :  { %v1045_v59 = vadd.f32 %v1006_v12, %v908_v35  ;;  %v1048_v20 = vadd.f32 %v1014_v3, %v911_v1  ;;  %v915_v33 = vmul.f32 %v2077_v51, %v819_v21  ;;  %v916_v62 = vmul.f32 %v2079_v15, %v820_v36 }
 0x23b   :  { %802 = vst.msk [vmem:[#allocation3 + $0x38] sm:$0xff] %vm131_vm0, %v785_v44 }
 0x23c   :  { %1061 = vst [vmem:[#allocation4] sm:$0xff] %v1045_v59  ;;  %v919_v59 = vmul.f32 %v2085_v57, %v823_v54 }
 0x23d   :  { %1064 = vst [vmem:[#allocation4 + $0x50] sm:$0xff] %v1048_v20  ;;  %v759_v48 = vpop.xlane.xlu0 %758 }
 0x23e   :  { %v784_v42 = vadd.f32 %v759_v48, %v736_v17  ;;  %v821_v48 = vld [vmem:[#allocation4 + $0x10] sm:$0xff] }
 0x240   :  { %801 = vst.msk [vmem:[#allocation3 + $0x30] sm:$0xff] %vm131_vm0, %v784_v42  ;;  %v917_v42 = vmul.f32 %v2081_v41, %v821_v48 }
 0x241   :  { %v1009_v52 = vpop.f32.mrf.mxu0  ;;  %v1016_v4 = vpop.f32.mrf.mxu1 }
 0x242   :  { %v1046_v8 = vadd.f32 %v1009_v52, %v909_v26  ;;  %v1049_v50 = vadd.f32 %v1016_v4, %v912_v16  ;;  %v824_v16 = vld [vmem:[#allocation4 + $0x70] sm:$0xff] }
 0x244   :  { %1062 = vst [vmem:[#allocation4 + $0x58] sm:$0xff] %v1046_v8 }
 0x245   :  { %1065 = vst [vmem:[#allocation4 + $0x68] sm:$0xff] %v1049_v50  ;;  %v765_v7 = vpop.xlane.xlu0 %764  ;;  %v822_v50 = vld [vmem:[#allocation4 + $0x38] sm:$0xff] }
 0x246   :  { %v787_v56 = vadd.f32 %v765_v7, %v739_v58  ;;  %v825_v7 = vld [vmem:[#allocation4 + $0x78] sm:$0xff]  ;;  %v918_v15 = vmul.f32 %v2083_v49, %v822_v50 }
 0x248   :  { %804 = vst.msk [vmem:[#allocation3 + $0x48] sm:$0xff] %vm131_vm0, %v787_v56 }
 0x249   :  { %v1011_v29 = vpop.f32.mrf.mxu0  ;;  %v1019_v18 = vpop.f32.mrf.mxu1 }
 0x24a   :  { %v1047_v39 = vadd.f32 %v1011_v29, %v910_v47  ;;  %v1050_v23 = vadd.f32 %v1019_v18, %v913_v6 }
 0x24c   :  { %1063 = vst [vmem:[#allocation4 + $0x18] sm:$0xff] %v1047_v39 }
 0x24d   :  { %1066 = vst [vmem:[#allocation4 + $0x8] sm:$0xff] %v1050_v23  ;;  %v767_v27 = vpop.xlane.xlu2 %766  ;;  %v771_v38 = vpop.xlane.xlu0 %770 }
 0x24e   :  { %v788_v30 = vadd.f32 %v767_v27, %v740_v46  ;;  %v769_v19 = vpop.xlane.xlu1 %768  ;;  %v790_v11 = vadd.f32 %v771_v38, %v742_v14 }
 0x24f   :  { %v789_v45 = vadd.f32 %v769_v19, %v741_v37 }
 0x250   :  { %805 = vst.msk [vmem:[#allocation3 + $0x50] sm:$0xff] %vm131_vm0, %v788_v30 }
 0x251   :  { %806 = vst.msk [vmem:[#allocation3 + $0x58] sm:$0xff] %vm131_vm0, %v789_v45  ;;  %v1021_v61 = vpop.f32.mrf.mxu1 }
 0x252   :  { %807 = vst.msk [vmem:[#allocation3 + $0x60] sm:$0xff] %vm131_vm0, %v790_v11  ;;  %v1051_v9 = vadd.f32 %v1021_v61, %v914_v28 }
 0x254   :  { %1067 = vst [vmem:[#allocation4 + $0x48] sm:$0xff] %v1051_v9 }
 0x255   :  { %v773_v35 = vpop.xlane.xlu2 %772  ;;  %v777_v12 = vpop.xlane.xlu0 %776 }
 0x256   :  { %v791_v1 = vadd.f32 %v773_v35, %v743_v0  ;;  %v775_v44 = vpop.xlane.xlu1 %774  ;;  %v793_v55 = vadd.f32 %v777_v12, %v745_v22 }
 0x257   :  { %v792_v3 = vadd.f32 %v775_v44, %v744_v43  ;;  %v1024_v20 = vpop.f32.mrf.mxu2 }
 0x258   :  { %808 = vst.msk [vmem:[#allocation3 + $0x68] sm:$0xff] %vm131_vm0, %v791_v1  ;;  %v1052_v40 = vadd.f32 %v1024_v20, %v915_v33  ;;  %v1034_v32 = vpop.f32.mrf.mxu3 }
 0x259   :  { %809 = vst.msk [vmem:[#allocation3 + $0x70] sm:$0xff] %vm131_vm0, %v792_v3  ;;  %v1056_v17 = vadd.f32 %v1034_v32, %v919_v59 }
 0x25a   :  { %810 = vst.msk [vmem:[#allocation3 + $0x78] sm:$0xff] %vm131_vm0, %v793_v55 }
 0x25b   :  { %1068 = vst [vmem:[#allocation4 + $0x40] sm:$0xff] %v1052_v40 }
 0x25c   :  { %1072 = vst [vmem:[#allocation4 + $0x60] sm:$0xff] %v1056_v17 }
 0x25d   :  { %v905_v58 = vpop.permute.xlu2 %904 }
 0x25e   :  { %v922_v47 = vmul.f32 %v905_v58, %v826_v53 }
 0x25f   :  { %v1026_v51 = vpop.f32.mrf.mxu2 }
 0x260   :  { %v1053_v10 = vadd.f32 %v1026_v51, %v916_v62  ;;  %v1036_v57 = vpop.f32.mrf.mxu3 }
 0x262   :  { %1069 = vst [vmem:[#allocation4 + $0x20] sm:$0xff] %v1053_v10 }
 0x267   :  { %v1029_v26 = vpop.f32.mrf.mxu2 }
 0x268   :  { %v1054_v52 = vadd.f32 %v1029_v26, %v917_v42  ;;  %v1039_v8 = vpop.f32.mrf.mxu3  ;;  %v895_v4 = vpop.permute.xlu0 %894 }
 0x269   :  { %v920_v63 = vmul.f32 %v895_v4, %v824_v16 }
 0x26a   :  { %1070 = vst [vmem:[#allocation4 + $0x10] sm:$0xff] %v1054_v52 }
 0x26b   :  { %v1057_v25 = vadd.f32 %v1036_v57, %v920_v63 }
 0x26d   :  { %1073 = vst [vmem:[#allocation4 + $0x70] sm:$0xff] %v1057_v25 }
 0x26e   :  { %v900_v56 = vpop.permute.xlu1 %899 }
 0x26f   :  { %v921_v6 = vmul.f32 %v900_v56, %v825_v7  ;;  %v1031_v29 = vpop.f32.mrf.mxu2 }
 0x270   :  { %v1055_v41 = vadd.f32 %v1031_v29, %v918_v15  ;;  %v1041_v24 = vpop.f32.mrf.mxu3 }
 0x271   :  { %v1058_v39 = vadd.f32 %v1039_v8, %v921_v6  ;;  %v1059_v18 = vadd.f32 %v1041_v24, %v922_v47 }
 0x272   :  { %1071 = vst [vmem:[#allocation4 + $0x38] sm:$0xff] %v1055_v41 }
 0x273   :  { %1074 = vst [vmem:[#allocation4 + $0x78] sm:$0xff] %v1058_v39 }
 0x274   :  { %1075 = vst [vmem:[#allocation4 + $0x28] sm:$0xff] %v1059_v18 }
 0x275 PF:  { %v1099_v5 = vld [vmem:[#allocation3 + $0x20] sm:$0xff]  ;;  %v1097_v60 = vld [vmem:[#allocation3 + $0x10] sm:$0xff]  ;;  %v1538_v46 = vmov 0   ;;  %v1100_v49 = vld [vmem:[#allocation3 + $0x28] sm:$0xff] }
 0x276   :  { %v1095_v23 = vld [vmem:[#allocation3] sm:$0xff]  ;;  %1501 = vset.pattern.permute.xlu2 %v1538_v46  ;;  %1500 = vset.pattern.permute.xlu1 %v1538_v46  ;;  %1503 = vrcp.f32 %v1099_v5  ;;  %v1098_v27 = vld [vmem:[#allocation3 + $0x18] sm:$0xff]  ;;  %v1096_v37 = vld [vmem:[#allocation3 + $0x8] sm:$0xff] }
 0x277   :  { %1499 = vset.pattern.permute.xlu0 %v1538_v46  ;;  %1505 = vrcp.f32 %v1097_v60  ;;  %v1103_v19 = vld [vmem:[#allocation3 + $0x40] sm:$0xff]  ;;  %v1102_v45 = vld [vmem:[#allocation3 + $0x38] sm:$0xff]  ;;  %v1101_v28 = vld [vmem:[#allocation3 + $0x30] sm:$0xff] }
 0x278   :  { %1507 = vrcp.f32 %v1095_v23  ;;  %v1106_v61 = vld [vmem:[#allocation3 + $0x58] sm:$0xff]  ;;  %v1105_v31 = vld [vmem:[#allocation3 + $0x50] sm:$0xff]  ;;  %v1104_v9 = vld [vmem:[#allocation3 + $0x48] sm:$0xff] }
 0x279   :  { %1509 = vrcp.f32 %v1100_v49  ;;  %v1109_v0 = vld [vmem:[#allocation3 + $0x70] sm:$0xff]  ;;  %v1108_v43 = vld [vmem:[#allocation3 + $0x68] sm:$0xff]  ;;  %v1107_v33 = vld [vmem:[#allocation3 + $0x60] sm:$0xff] }
 0x27a   :  { %1511 = vrcp.f32 %v1098_v27  ;;  %v1110_v59 = vld [vmem:[#allocation3 + $0x78] sm:$0xff]  ;;  %v1131_v20 = vld [vmem:[#allocation4 + $0x50] sm:$0xff]  ;;  %v2132_v17 = vld [vmem:[%s2179_s5] ss:$0 sm:$0xff] }
 0x27b   :  { %1513 = vrcp.f32 %v1096_v37  ;;  %v1132_v36 = vld [vmem:[#allocation4 + $0x68] sm:$0xff]  ;;  %v1129_v16 = vld [vmem:[#allocation4 + $0x58] sm:$0xff]  ;;  %v1127_v63 = vld [vmem:[#allocation4 + $0x30] sm:$0xff] }
 0x27c   :  { %v1504_v14 = vpop.eup %1503  ;;  %1515 = vrcp.f32 %v1103_v19  ;;  %v1130_v53 = vld [vmem:[#allocation4 + $0x18] sm:$0xff]  ;;  %v1128_v25 = vld [vmem:[#allocation4] sm:$0xff]  ;;  %v1134_v23 = vld [vmem:[#allocation4 + $0x48] sm:$0xff] }
 0x27d   :  { %v1506_v13 = vpop.eup %1505  ;;  %1165 = vperm.xlu2 %1501, %v1504_v14   ;;  %1517 = vrcp.f32 %v1102_v45  ;;  %v1133_v49 = vld [vmem:[#allocation4 + $0x8] sm:$0xff] }
 0x27e   :  { %v1508_v30 = vpop.eup %1507  ;;  %1155 = vperm.xlu1 %1500, %v1506_v13   ;;  %1519 = vrcp.f32 %v1101_v28 }
 0x27f   :  { %1145 = vperm.xlu0 %1499, %v1508_v30   ;;  %v1510_v38 = vpop.eup %1509  ;;  %1521 = vrcp.f32 %v1106_v61  ;;  %v1138_v30 = vld [vmem:[#allocation4 + $0x38] sm:$0xff] }
 0x280   :  { %v1512_v11 = vpop.eup %1511  ;;  %1523 = vrcp.f32 %v1105_v31 }
 0x281   :  { %v1514_v34 = vpop.eup %1513  ;;  %1525 = vrcp.f32 %v1104_v9  ;;  %v1136_v9 = vld [vmem:[#allocation4 + $0x20] sm:$0xff] }
 0x282   :  { %v1516_v2 = vpop.eup %1515  ;;  %1527 = vrcp.f32 %v1109_v0 }
 0x283   :  { %v1518_v21 = vpop.eup %1517  ;;  %1529 = vrcp.f32 %v1108_v43 }
 0x284   :  { %v1520_v54 = vpop.eup %1519  ;;  %1531 = vrcp.f32 %v1107_v33 }
 0x285   :  { %1170 = vperm.xlu2 %1501, %v1510_v38   ;;  %v1522_v35 = vpop.eup %1521  ;;  %1533 = vrcp.f32 %v1110_v59  ;;  %v1135_v38 = vld [vmem:[#allocation4 + $0x40] sm:$0xff] }
 0x286   :  { %1160 = vperm.xlu1 %1500, %v1512_v11   ;;  %v1524_v22 = vpop.eup %1523 }
 0x287   :  { %1150 = vperm.xlu0 %1499, %v1514_v34   ;;  %v1526_v1 = vpop.eup %1525 }
 0x288   :  { %v1528_v44 = vpop.eup %1527 }
 0x289   :  { %v1530_v12 = vpop.eup %1529 }
 0x28a   :  { %v1532_v3 = vpop.eup %1531 }
 0x28b   :  { %v1534_v55 = vpop.eup %1533 }
 0x28d   :  { %1185 = vperm.xlu2 %1501, %v1516_v2  }
 0x28e   :  { %1180 = vperm.xlu1 %1500, %v1518_v21   ;;  %v1137_v21 = vld [vmem:[#allocation4 + $0x10] sm:$0xff] }
 0x28f   :  { %1175 = vperm.xlu0 %1499, %v1520_v54  }
 0x295   :  { %1200 = vperm.xlu2 %1501, %v1522_v35  }
 0x296   :  { %1195 = vperm.xlu1 %1500, %v1524_v22  }
 0x297   :  { %1190 = vperm.xlu0 %1499, %v1526_v1  }
 0x29d   :  { %1215 = vperm.xlu2 %1501, %v1528_v44  }
 0x29e   :  { %1210 = vperm.xlu1 %1500, %v1530_v12  }
 0x29f   :  { %1205 = vperm.xlu0 %1499, %v1532_v3  }
 0x2a7   :  { %1220 = vperm.xlu0 %1499, %v1534_v55  }
 0x2d7   :  { %v1166_v40 = vpop.permute.xlu2 %1165 }
 0x2d8   :  { %v1227_v32 = vmul.f32 %v1166_v40, %v1131_v20  ;;  %v1140_v40 = vld [vmem:[#allocation4 + $0x70] sm:$0xff] }
 0x2da   :  { %v1247_v62 = vadd.f32 %v2132_v17, %v1227_v32 }
 0x2dc   :  { %v1263_v57 = vmax.f32 %v1247_v62, 0.0 }
 0x2df   :  { %v1171_v51 = vpop.permute.xlu2 %1170 }
 0x2e0   :  { %v1228_v10 = vmul.f32 %v1171_v51, %v1132_v36  ;;  %v1139_v36 = vld [vmem:[#allocation4 + $0x60] sm:$0xff] }
 0x2e2   :  { %v1248_v48 = vadd.f32 %v2132_v17, %v1228_v10 }
 0x2e4   :  { %v1264_v42 = vmax.f32 %v1248_v48, 0.0 }
 0x2e6   :  { %v1369_v26 = vpack.c.bf16 %v1264_v42, %v1263_v57  ;;  %v1141_v42 = vld [vmem:[#allocation4 + $0x78] sm:$0xff] }
 0x2e7   :  { %v1186_v47 = vpop.permute.xlu2 %1185 }
 0x2e8   :  { %1397 = vst [vmem:[%s2180_s6 + $0x10] sm:$0xff] %v1369_v26   ;;  %v1231_v2 = vmul.f32 %v1186_v47, %v1135_v38 }
 0x2ea   :  { %v1251_v33 = vadd.f32 %v2132_v17, %v1231_v2 }
 0x2ec   :  { %v1267_v55 = vmax.f32 %v1251_v33, 0.0 }
 0x2ef   :  { %v1201_v11 = vpop.permute.xlu2 %1200 }
 0x2f0   :  { %v1156_v52 = vpop.permute.xlu1 %1155  ;;  %v1234_v34 = vmul.f32 %v1201_v11, %v1138_v30 }
 0x2f1   :  { %v1146_v8 = vpop.permute.xlu0 %1145  ;;  %v1225_v4 = vmul.f32 %v1156_v52, %v1129_v16 }
 0x2f2   :  { %v1223_v50 = vmul.f32 %v1146_v8, %v1127_v63  ;;  %v1254_v35 = vadd.f32 %v2132_v17, %v1234_v34 }
 0x2f3   :  { %v1245_v58 = vadd.f32 %v2132_v17, %v1225_v4 }
 0x2f4   :  { %v1243_v6 = vadd.f32 %v2132_v17, %v1223_v50  ;;  %v1270_v59 = vmax.f32 %v1254_v35, 0.0  ;;  %v1142_v50 = vld [vmem:[#allocation4 + $0x28] sm:$0xff] }
 0x2f5   :  { %v1261_v41 = vmax.f32 %v1245_v58, 0.0 }
 0x2f6   :  { %v1259_v5 = vmax.f32 %v1243_v6, 0.0 }
 0x2f7   :  { %v1216_v26 = vpop.permute.xlu2 %1215 }
 0x2f8   :  { %v1161_v7 = vpop.permute.xlu1 %1160  ;;  %v1237_v4 = vmul.f32 %v1216_v26, %v1141_v42 }
 0x2f9   :  { %v1226_v15 = vmul.f32 %v1161_v7, %v1130_v53  ;;  %v1151_v56 = vpop.permute.xlu0 %1150 }
 0x2fa   :  { %v1224_v29 = vmul.f32 %v1151_v56, %v1128_v25  ;;  %v1257_v25 = vadd.f32 %v2132_v17, %v1237_v4 }
 0x2fb   :  { %v1246_v24 = vadd.f32 %v2132_v17, %v1226_v15 }
 0x2fc   :  { %v1244_v39 = vadd.f32 %v2132_v17, %v1224_v29  ;;  %v1273_v56 = vmax.f32 %v1257_v25, 0.0 }
 0x2fd   :  { %v1262_v18 = vmax.f32 %v1246_v24, 0.0 }
 0x2fe   :  { %v1260_v60 = vmax.f32 %v1244_v39, 0.0 }
 0x2ff   :  { %v1364_v46 = vpack.c.bf16 %v1262_v18, %v1261_v41 }
 0x300   :  { %v1359_v27 = vpack.c.bf16 %v1260_v60, %v1259_v5  ;;  %v1181_v37 = vpop.permute.xlu1 %1180 }
 0x301   :  { %1396 = vst [vmem:[%s2180_s6 + $0x8] sm:$0xff] %v1364_v46   ;;  %v1230_v14 = vmul.f32 %v1181_v37, %v1134_v23  ;;  %v1176_v13 = vpop.permute.xlu0 %1175 }
 0x302   :  { %1360 = vst [vmem:[%s2180_s6] sm:$0xff] %v1359_v27   ;;  %v1229_v19 = vmul.f32 %v1176_v13, %v1133_v49 }
 0x303   :  { %v1250_v45 = vadd.f32 %v2132_v17, %v1230_v14 }
 0x304   :  { %v1249_v28 = vadd.f32 %v2132_v17, %v1229_v19 }
 0x305   :  { %v1266_v61 = vmax.f32 %v1250_v45, 0.0 }
 0x306   :  { %v1265_v31 = vmax.f32 %v1249_v28, 0.0 }
 0x308   :  { %v1374_v54 = vpack.c.bf16 %v1266_v61, %v1265_v31  ;;  %v1196_v0 = vpop.permute.xlu1 %1195 }
 0x309   :  { %v1233_v43 = vmul.f32 %v1196_v0, %v1137_v21  ;;  %v1191_v22 = vpop.permute.xlu0 %1190 }
 0x30a   :  { %1398 = vst [vmem:[%s2180_s6 + $0x18] sm:$0xff] %v1374_v54   ;;  %v1232_v1 = vmul.f32 %v1191_v22, %v1136_v9 }
 0x30b   :  { %v1253_v44 = vadd.f32 %v2132_v17, %v1233_v43 }
 0x30c   :  { %v1252_v12 = vadd.f32 %v2132_v17, %v1232_v1 }
 0x30d   :  { %v1269_v3 = vmax.f32 %v1253_v44, 0.0 }
 0x30e   :  { %v1268_v20 = vmax.f32 %v1252_v12, 0.0 }
 0x30f   :  { %v1384_v32 = vpack.c.bf16 %v1270_v59, %v1269_v3 }
 0x310   :  { %v1379_v62 = vpack.c.bf16 %v1268_v20, %v1267_v55  ;;  %v1211_v51 = vpop.permute.xlu1 %1210 }
 0x311   :  { %1400 = vst [vmem:[%s2180_s6 + $0x28] sm:$0xff] %v1384_v32   ;;  %v1236_v10 = vmul.f32 %v1211_v51, %v1140_v40  ;;  %v1206_v57 = vpop.permute.xlu0 %1205 }
 0x312   :  { %1399 = vst [vmem:[%s2180_s6 + $0x20] sm:$0xff] %v1379_v62   ;;  %v1235_v48 = vmul.f32 %v1206_v57, %v1139_v36 }
 0x313   :  { %v1256_v16 = vadd.f32 %v2132_v17, %v1236_v10 }
 0x314   :  { %v1255_v52 = vadd.f32 %v2132_v17, %v1235_v48 }
 0x315   :  { %v1272_v8 = vmax.f32 %v1256_v16, 0.0 }
 0x316   :  { %v1271_v63 = vmax.f32 %v1255_v52, 0.0 }
 0x318   :  { %v1389_v53 = vpack.c.bf16 %v1272_v8, %v1271_v63 }
 0x319   :  { %v1221_v58 = vpop.permute.xlu0 %1220 }
 0x31a   :  { %1401 = vst [vmem:[%s2180_s6 + $0x30] sm:$0xff] %v1389_v53   ;;  %v1238_v7 = vmul.f32 %v1221_v58, %v1142_v50 }
 0x31c   :  { %v1258_v15 = vadd.f32 %v2132_v17, %v1238_v7 }
 0x31e   :  { %v1274_v47 = vmax.f32 %v1258_v15, 0.0 }
 0x320   :  { %v1394_v6 = vpack.c.bf16 %v1274_v47, %v1273_v56 }
 0x322   :  { %1402 = vst [vmem:[%s2180_s6 + $0x38] sm:$0xff] %v1394_v6  }

// kernel: gat_forward.11
= control target key start
LH: loop header
LB: loop body
LE: loop exit
PB: predicated region body
PF: predicated region fallthrough
CT: control target
= control target key end

     0   :  { %vm131_vm0 = vcmask 7168   ;;  %v1456_v16 = vmov -1e+30   ;;  %v1457_v17 = vmov 0.0   ;;  %s2119_s0 = inlined_call_operand.<no memory space> [shape: s32[1], index: 0, kind: input, shape index: {}]   ;;  %s2120_s1 = inlined_call_operand.vmem [shape: s8[128,128], index: 1, kind: input, shape index: {}]   ;;  %s2121_s2 = inlined_call_operand.vmem [shape: f32[128,1], index: 2, kind: input, shape index: {}]   ;;  %s2122_s3 = inlined_call_operand.vmem [shape: f32[1,128], index: 3, kind: input, shape index: {}]   ;;  %s2123_s4 = inlined_call_operand.vmem [shape: bf16[128,256], index: 4, kind: input, shape index: {}]   ;;  %s2124_s5 = inlined_call_operand.vmem [shape: f32[1,128], index: 5, kind: input, shape index: {}]   ;;  %s2125_s6 = inlined_call_operand.vmem [shape: f32[128,128], index: 6, kind: output, shape index: {}]  }
   0x1   :  { %v36_v0 = vld [vmem:[%s2123_s4] sm:$0xf]  ;;  %v38_v1 = vld [vmem:[%s2123_s4 + $0x8] sm:$0xf]  ;;  %v40_v2 = vld [vmem:[%s2123_s4 + $0x10] sm:$0xf] }
   0x2   :  { %37 = vst [vmem:[#allocation7] sm:$0xf] %v36_v0  ;;  %v42_v3 = vld [vmem:[%s2123_s4 + $0x18] sm:$0xf]  ;;  %v44_v4 = vld [vmem:[%s2123_s4 + $0x20] sm:$0xf] }
   0x3   :  { %39 = vst [vmem:[#allocation7 + $0x4] sm:$0xf] %v38_v1  ;;  %v46_v5 = vld [vmem:[%s2123_s4 + $0x28] sm:$0xf]  ;;  %v48_v6 = vld [vmem:[%s2123_s4 + $0x30] sm:$0xf] }
   0x4   :  { %41 = vst [vmem:[#allocation7 + $0x8] sm:$0xf] %v40_v2  ;;  %v50_v7 = vld [vmem:[%s2123_s4 + $0x38] sm:$0xf]  ;;  %v52_v8 = vld [vmem:[%s2123_s4 + $0x40] sm:$0xf] }
   0x5   :  { %43 = vst [vmem:[#allocation7 + $0xc] sm:$0xf] %v42_v3  ;;  %v54_v9 = vld [vmem:[%s2123_s4 + $0x48] sm:$0xf]  ;;  %v56_v10 = vld [vmem:[%s2123_s4 + $0x50] sm:$0xf] }
   0x6   :  { %45 = vst [vmem:[#allocation7 + $0x10] sm:$0xf] %v44_v4  ;;  %v58_v11 = vld [vmem:[%s2123_s4 + $0x58] sm:$0xf]  ;;  %v60_v12 = vld [vmem:[%s2123_s4 + $0x60] sm:$0xf] }
   0x7   :  { %47 = vst [vmem:[#allocation7 + $0x14] sm:$0xf] %v46_v5  ;;  %v62_v13 = vld [vmem:[%s2123_s4 + $0x68] sm:$0xf]  ;;  %v64_v14 = vld [vmem:[%s2123_s4 + $0x70] sm:$0xf] }
   0x8   :  { %49 = vst [vmem:[#allocation7 + $0x18] sm:$0xf] %v48_v6  ;;  %v66_v15 = vld [vmem:[%s2123_s4 + $0x78] sm:$0xf]  ;;  %p1283_p0 = scmp.eq.s32.totalorder %s2119_s0, 0 }
   0x9   :  { %51 = vst [vmem:[#allocation7 + $0x1c] sm:$0xf] %v50_v7 }
   0xa   :  { %53 = vst [vmem:[#allocation7 + $0x20] sm:$0xf] %v52_v8 }
   0xb   :  { %55 = vst [vmem:[#allocation7 + $0x24] sm:$0xf] %v54_v9 }
   0xc   :  { %57 = vst [vmem:[#allocation7 + $0x28] sm:$0xf] %v56_v10 }
   0xd   :  { %59 = vst [vmem:[#allocation7 + $0x2c] sm:$0xf] %v58_v11 }
   0xe   :  { %61 = vst [vmem:[#allocation7 + $0x30] sm:$0xf] %v60_v12 }
   0xf   :  { %63 = vst [vmem:[#allocation7 + $0x34] sm:$0xf] %v62_v13 }
  0x10   :  { %65 = vst [vmem:[#allocation7 + $0x38] sm:$0xf] %v64_v14 }
  0x11   :  { %67 = vst [vmem:[#allocation7 + $0x3c] sm:$0xf] %v66_v15 }
  0x12   :  { %132 = vst.msk [vmem:[#allocation2] sm:$0xff] %vm131_vm0, %v1456_v16 }
  0x13   :  { %133 = vst.msk [vmem:[#allocation2 + $0x8] sm:$0xff] %vm131_vm0, %v1456_v16 }
  0x14   :  { %134 = vst.msk [vmem:[#allocation2 + $0x10] sm:$0xff] %vm131_vm0, %v1456_v16 }
  0x15   :  { %135 = vst.msk [vmem:[#allocation2 + $0x18] sm:$0xff] %vm131_vm0, %v1456_v16 }
  0x16   :  { %136 = vst.msk [vmem:[#allocation2 + $0x20] sm:$0xff] %vm131_vm0, %v1456_v16 }
  0x17   :  { %137 = vst.msk [vmem:[#allocation2 + $0x28] sm:$0xff] %vm131_vm0, %v1456_v16 }
  0x18   :  { %138 = vst.msk [vmem:[#allocation2 + $0x30] sm:$0xff] %vm131_vm0, %v1456_v16 }
  0x19   :  { %139 = vst.msk [vmem:[#allocation2 + $0x38] sm:$0xff] %vm131_vm0, %v1456_v16 }
  0x1a   :  { %140 = vst.msk [vmem:[#allocation2 + $0x40] sm:$0xff] %vm131_vm0, %v1456_v16 }
  0x1b   :  { %141 = vst.msk [vmem:[#allocation2 + $0x48] sm:$0xff] %vm131_vm0, %v1456_v16 }
  0x1c   :  { %142 = vst.msk [vmem:[#allocation2 + $0x50] sm:$0xff] %vm131_vm0, %v1456_v16 }
  0x1d   :  { %143 = vst.msk [vmem:[#allocation2 + $0x58] sm:$0xff] %vm131_vm0, %v1456_v16 }
  0x1e   :  { %144 = vst.msk [vmem:[#allocation2 + $0x60] sm:$0xff] %vm131_vm0, %v1456_v16 }
  0x1f   :  { %145 = vst.msk [vmem:[#allocation2 + $0x68] sm:$0xff] %vm131_vm0, %v1456_v16 }
  0x20   :  { %146 = vst.msk [vmem:[#allocation2 + $0x70] sm:$0xff] %vm131_vm0, %v1456_v16 }
  0x21   :  { %147 = vst.msk [vmem:[#allocation2 + $0x78] sm:$0xff] %vm131_vm0, %v1456_v16 }
  0x22   :  { %148 = vst.msk [vmem:[#allocation3] sm:$0xff] %vm131_vm0, %v1457_v17 }
  0x23   :  { %149 = vst.msk [vmem:[#allocation3 + $0x8] sm:$0xff] %vm131_vm0, %v1457_v17 }
  0x24   :  { %150 = vst.msk [vmem:[#allocation3 + $0x10] sm:$0xff] %vm131_vm0, %v1457_v17 }
  0x25   :  { %151 = vst.msk [vmem:[#allocation3 + $0x18] sm:$0xff] %vm131_vm0, %v1457_v17 }
  0x26   :  { %152 = vst.msk [vmem:[#allocation3 + $0x20] sm:$0xff] %vm131_vm0, %v1457_v17 }
  0x27   :  { %153 = vst.msk [vmem:[#allocation3 + $0x28] sm:$0xff] %vm131_vm0, %v1457_v17 }
  0x28   :  { %154 = vst.msk [vmem:[#allocation3 + $0x30] sm:$0xff] %vm131_vm0, %v1457_v17 }
  0x29   :  { %155 = vst.msk [vmem:[#allocation3 + $0x38] sm:$0xff] %vm131_vm0, %v1457_v17 }
  0x2a   :  { %156 = vst.msk [vmem:[#allocation3 + $0x40] sm:$0xff] %vm131_vm0, %v1457_v17 }
  0x2b   :  { %157 = vst.msk [vmem:[#allocation3 + $0x48] sm:$0xff] %vm131_vm0, %v1457_v17 }
  0x2c   :  { %158 = vst.msk [vmem:[#allocation3 + $0x50] sm:$0xff] %vm131_vm0, %v1457_v17 }
  0x2d   :  { %159 = vst.msk [vmem:[#allocation3 + $0x58] sm:$0xff] %vm131_vm0, %v1457_v17 }
  0x2e   :  { %160 = vst.msk [vmem:[#allocation3 + $0x60] sm:$0xff] %vm131_vm0, %v1457_v17 }
  0x2f   :  { %161 = vst.msk [vmem:[#allocation3 + $0x68] sm:$0xff] %vm131_vm0, %v1457_v17 }
  0x30   :  { %162 = vst.msk [vmem:[#allocation3 + $0x70] sm:$0xff] %vm131_vm0, %v1457_v17 }
  0x31   :  { %163 = vst.msk [vmem:[#allocation3 + $0x78] sm:$0xff] %vm131_vm0, %v1457_v17 }
  0x32   :  { %164 = vst [vmem:[#allocation4 + $0x30] sm:$0xff] %v1457_v17 }
  0x33   :  { %165 = vst [vmem:[#allocation4] sm:$0xff] %v1457_v17 }
  0x34   :  { %166 = vst [vmem:[#allocation4 + $0x58] sm:$0xff] %v1457_v17 }
  0x35   :  { %167 = vst [vmem:[#allocation4 + $0x18] sm:$0xff] %v1457_v17 }
  0x36   :  { %168 = vst [vmem:[#allocation4 + $0x50] sm:$0xff] %v1457_v17 }
  0x37   :  { %169 = vst [vmem:[#allocation4 + $0x68] sm:$0xff] %v1457_v17 }
  0x38   :  { %170 = vst [vmem:[#allocation4 + $0x8] sm:$0xff] %v1457_v17 }
  0x39   :  { %171 = vst [vmem:[#allocation4 + $0x48] sm:$0xff] %v1457_v17 }
  0x3a   :  { %172 = vst [vmem:[#allocation4 + $0x40] sm:$0xff] %v1457_v17 }
  0x3b   :  { %173 = vst [vmem:[#allocation4 + $0x20] sm:$0xff] %v1457_v17 }
  0x3c   :  { %174 = vst [vmem:[#allocation4 + $0x10] sm:$0xff] %v1457_v17 }
  0x3d   :  { %175 = vst [vmem:[#allocation4 + $0x38] sm:$0xff] %v1457_v17  ;;  %185 = sbr.rel (%p1283_p0) target bundleno = 629 (0x275), region = 70 }
  0x3e   :  { %176 = vst [vmem:[#allocation4 + $0x60] sm:$0xff] %v1457_v17 }
  0x3f   :  { %177 = vst [vmem:[#allocation4 + $0x70] sm:$0xff] %v1457_v17 }
  0x40   :  { %178 = vst [vmem:[#allocation4 + $0x78] sm:$0xff] %v1457_v17 }
  0x41   :  { %179 = vst [vmem:[#allocation4 + $0x28] sm:$0xff] %v1457_v17 }
  0x42   :  { %v188_v18 = vld [vmem:[%s2121_s2 + $0x10] sm:$0xff]  ;;  %v186_v19 = vld [vmem:[%s2121_s2] sm:$0xff]  ;;  %v1458_v20 = vmov 0   ;;  %v189_v22 = vld [vmem:[%s2121_s2 + $0x18] sm:$0xff] }
  0x43   :  { %1353 = vset.pattern.permute.xlu1 %v1458_v20  ;;  %1352 = vset.pattern.permute.xlu0 %v1458_v20  ;;  %v190_v21 = vld [vmem:[%s2121_s2 + $0x20] sm:$0xff]  ;;  %v187_v23 = vld [vmem:[%s2121_s2 + $0x8] sm:$0xff]  ;;  %v193_v25 = vld [vmem:[%s2121_s2 + $0x38] sm:$0xff] }
  0x44   :  { %215 = vperm.xlu1 %1353, %v188_v18   ;;  %205 = vperm.xlu0 %1352, %v186_v19   ;;  %v191_v24 = vld [vmem:[%s2121_s2 + $0x28] sm:$0xff]  ;;  %v192_v26 = vld [vmem:[%s2121_s2 + $0x30] sm:$0xff]  ;;  %v194_v27 = vld [vmem:[%s2121_s2 + $0x40] sm:$0xff] }
  0x45   :  { %1354 = vset.pattern.permute.xlu2 %v1458_v20  ;;  %v196_v28 = vld [vmem:[%s2121_s2 + $0x50] sm:$0xff]  ;;  %v195_v29 = vld [vmem:[%s2121_s2 + $0x48] sm:$0xff]  ;;  %v197_v30 = vld [vmem:[%s2121_s2 + $0x58] sm:$0xff] }
  0x46   :  { %225 = vperm.xlu2 %1354, %v190_v21   ;;  %v199_v31 = vld [vmem:[%s2121_s2 + $0x68] sm:$0xff]  ;;  %v198_v32 = vld [vmem:[%s2121_s2 + $0x60] sm:$0xff]  ;;  %v200_v33 = vld [vmem:[%s2121_s2 + $0x70] sm:$0xff] }
  0x47   :  { %v201_v34 = vld [vmem:[%s2121_s2 + $0x78] sm:$0xff]  ;;  %v334_v35 = vld [vmem:[%s2120_s1] sm:$0xff]  ;;  %v335_v37 = vld [vmem:[%s2120_s1 + $0x8] sm:$0xff] }
  0x48   :  { %vm338_vm1 = vnez %v334_v35  ;;  %vm339_vm2 = vnez %v335_v37  ;;  %v1645_v54 = vld [vmem:[%s2122_s3] ss:$0 sm:$0xff]  ;;  %v336_v58 = vld [vmem:[%s2120_s1 + $0x10] sm:$0xff]  ;;  %v337_v17 = vld [vmem:[%s2120_s1 + $0x18] sm:$0xff] }
  0x49   :  { %v342_v36 = vsel %vm338_vm1, 16843009, %v1458_v20  ;;  %v1637_v40 = vsel %vm339_vm2, 16843009, %v1458_v20  ;;  %vm340_vm7 = vnez %v336_v58  ;;  %vm341_vm11 = vnez %v337_v17 }
  0x4a   :  { %v348_v38 = vunpack.c.2.s8 %v342_v36  ;;  %v346_v39 = vunpack.c.0.s8 %v342_v36  ;;  %v350_v43 = vunpack.c.0.s8 %v1637_v40  ;;  %v347_v46 = vunpack.c.1.s8 %v342_v36 }
  0x4b   :  { %v349_v48 = vunpack.c.3.s8 %v342_v36  ;;  %v353_v56 = vunpack.c.3.s8 %v1637_v40  ;;  %v352_v57 = vunpack.c.2.s8 %v1637_v40  ;;  %v1662_v12 = vsel %vm340_vm7, 16843009, %v1458_v20 }
  0x4c   :  { %220 = vperm.xlu1 %1353, %v189_v22   ;;  %210 = vperm.xlu0 %1352, %v187_v23   ;;  %v366_v41 = vpack.c.b16 %v348_v38, %v348_v38  ;;  %v362_v42 = vpack.c.b16 %v346_v39, %v346_v39  ;;  %v370_v47 = vpack.c.b16 %v350_v43, %v350_v43  ;;  %v351_v16 = vunpack.c.1.s8 %v1637_v40 }
  0x4d   :  { %v364_v49 = vpack.c.b16 %v347_v46, %v347_v46  ;;  %v368_v53 = vpack.c.b16 %v349_v48, %v349_v48  ;;  %v376_v5 = vpack.c.b16 %v353_v56, %v353_v56  ;;  %v374_v6 = vpack.c.b16 %v352_v57, %v352_v57 }
  0x4e   :  { %230 = vperm.xlu2 %1354, %v191_v24   ;;  %v367_v44 = vpack.c.b8 %v366_v41, %v366_v41  ;;  %v363_v45 = vpack.c.b8 %v362_v42, %v362_v42  ;;  %v371_v50 = vpack.c.b8 %v370_v47, %v370_v47  ;;  %v356_v21 = vunpack.c.2.s8 %v1662_v12 }
  0x4f   :  { %v365_v55 = vpack.c.b8 %v364_v49, %v364_v49  ;;  %v369_v1 = vpack.c.b8 %v368_v53, %v368_v53  ;;  %v377_v18 = vpack.c.b8 %v376_v5, %v376_v5  ;;  %v375_v19 = vpack.c.b8 %v374_v6, %v374_v6 }
  0x50   :  { %vm396_vm3 = vnez %v367_v44  ;;  %vm394_vm4 = vnez %v363_v45  ;;  %vm398_vm5 = vnez %v371_v50  ;;  %v355_v22 = vunpack.c.1.s8 %v1662_v12 }
  0x51   :  { %v412_v51 = vsel %vm396_vm3, 16843009, %v1458_v20  ;;  %v410_v52 = vsel %vm394_vm4, 16843009, %v1458_v20  ;;  %vm395_vm6 = vnez %v365_v55  ;;  %v414_v4 = vsel %vm398_vm5, 16843009, %v1458_v20 }
  0x52   :  { %v428_v60 = vunpack.c.0.s8 %v412_v51  ;;  %v426_v61 = vunpack.c.0.s8 %v410_v52  ;;  %v411_v10 = vsel %vm395_vm6, 16843009, %v1458_v20  ;;  %vm1657_vm10 = vnez %v369_v1 }
  0x53   :  { %v430_v15 = vunpack.c.0.s8 %v414_v4  ;;  %vm401_vm13 = vnez %v377_v18  ;;  %vm400_vm14 = vnez %v375_v19  ;;  %v1682_v37 = vsel %vm341_vm11, 16843009, %v1458_v20 }
  0x54   :  { %240 = vperm.xlu1 %1353, %v193_v25   ;;  %235 = vperm.xlu0 %1352, %v192_v26   ;;  %vm444_vm8 = vcmp.ne.s32.totalorder %v428_v60, 0  ;;  %vm442_vm9 = vcmp.ne.s32.totalorder %v426_v61, 0  ;;  %v354_v40 = vunpack.c.0.s8 %v1662_v12  ;;  %v417_v42 = vsel %vm401_vm13, 16843009, %v1458_v20 }
  0x55   :  { %vm446_vm12 = vcmp.ne.s32.totalorder %v430_v15, 0  ;;  %v416_v43 = vsel %vm400_vm14, 16843009, %v1458_v20  ;;  %v359_v47 = vunpack.c.1.s8 %v1682_v37  ;;  %v358_v48 = vunpack.c.0.s8 %v1682_v37 }
  0x56   :  { %245 = vperm.xlu2 %1354, %v194_v27   ;;  %v433_v53 = vunpack.c.0.s8 %v417_v42  ;;  %v432_v56 = vunpack.c.0.s8 %v416_v43  ;;  %v378_v57 = vpack.c.b16 %v354_v40, %v354_v40 }
  0x57   :  { %v388_v61 = vpack.c.b16 %v359_v47, %v359_v47 }
  0x58   :  { %vm449_vm5 = vcmp.ne.s32.totalorder %v433_v53, 0  ;;  %vm448_vm6 = vcmp.ne.s32.totalorder %v432_v56, 0  ;;  %v379_v5 = vpack.c.b8 %v378_v57, %v378_v57 }
  0x59   :  { %v389_v11 = vpack.c.b8 %v388_v61, %v388_v61 }
  0x5a   :  { %vm402_vm7 = vnez %v379_v5 }
  0x5c   :  { %255 = vperm.xlu1 %1353, %v196_v28   ;;  %250 = vperm.xlu0 %1352, %v195_v29   ;;  %v427_v28 = vunpack.c.0.s8 %v411_v10 }
  0x5e   :  { %260 = vperm.xlu2 %1354, %v197_v30   ;;  %v413_v30 = vsel %vm1657_vm10, 16843009, %v1458_v20  ;;  %vm443_vm15 = vcmp.ne.s32.totalorder %v427_v28, 0 }
  0x5f   :  { %v429_v39 = vunpack.c.0.s8 %v413_v30 }
  0x61   :  { %vm1695_vm1 = vcmp.ne.s32.totalorder %v429_v39, 0 }
  0x64   :  { %270 = vperm.xlu1 %1353, %v199_v31   ;;  %265 = vperm.xlu0 %1352, %v198_v32   ;;  %v372_v31 = vpack.c.b16 %v351_v16, %v351_v16 }
  0x66   :  { %275 = vperm.xlu2 %1354, %v200_v33   ;;  %v382_v33 = vpack.c.b16 %v356_v21, %v356_v21  ;;  %v373_v44 = vpack.c.b8 %v372_v31, %v372_v31 }
  0x68   :  { %v383_v45 = vpack.c.b8 %v382_v33, %v382_v33  ;;  %vm399_vm2 = vnez %v373_v44  ;;  %v418_v33 = vsel %vm402_vm7, 16843009, %v1458_v20  ;;  %v360_v44 = vunpack.c.2.s8 %v1682_v37 }
  0x69   :  { %v415_v4 = vsel %vm399_vm2, 16843009, %v1458_v20 }
  0x6a   :  { %vm404_vm3 = vnez %v383_v45  ;;  %v431_v21 = vunpack.c.0.s8 %v415_v4  ;;  %v390_v57 = vpack.c.b16 %v360_v44, %v360_v44 }
  0x6c   :  { %280 = vperm.xlu0 %1352, %v201_v34   ;;  %v380_v34 = vpack.c.b16 %v355_v22, %v355_v22  ;;  %vm447_vm11 = vcmp.ne.s32.totalorder %v431_v21, 0 }
  0x6e   :  { %v381_v46 = vpack.c.b8 %v380_v34, %v380_v34 }
  0x70   :  { %vm403_vm4 = vnez %v381_v46 }
  0xa0   :  { %v226_v59 = vpop.permute.xlu2 %225 }
  0xa1   :  { %v290_v62 = vadd.f32 %v1645_v54, %v226_v59 }
  0xa3   :  { %v306_v9 = vmul.f32 0.2, %v290_v62 }
  0xa5   :  { %v322_v27 = vmax.f32 %v290_v62, %v306_v9  ;;  %v386_v62 = vpack.c.b16 %v358_v48, %v358_v48  ;;  %v419_v9 = vsel %vm403_vm4, 16843009, %v1458_v20  ;;  %v434_v48 = vunpack.c.0.s8 %v418_v33  ;;  %v1778_v33 = vld [vmem:[#allocation2 + $0x8] sm:$0xff] }
  0xa6   :  { %v435_v22 = vunpack.c.0.s8 %v419_v9 }
  0xa7   :  { %v1684_v38 = vsel %vm446_vm12, %v322_v27, -1e+30 }
  0xa8   :  { %v231_v32 = vpop.permute.xlu2 %230  ;;  %vm451_vm12 = vcmp.ne.s32.totalorder %v435_v22, 0 }
  0xa9   :  { %v291_v58 = vadd.f32 %v1645_v54, %v231_v32 }
  0xab   :  { %v307_v10 = vmul.f32 0.2, %v291_v58 }
  0xad   :  { %v323_v32 = vmax.f32 %v291_v58, %v307_v10 }
  0xaf   :  { %v1727_v46 = vsel %vm447_vm11, %v323_v32, -1e+30  ;;  %v1776_v32 = vld [vmem:[#allocation2 + $0x20] sm:$0xff] }
  0xb6   :  { %v216_v63 = vpop.permute.xlu1 %215  ;;  %v206_v0 = vpop.permute.xlu0 %205 }
  0xb7   :  { %v288_v2 = vadd.f32 %v1645_v54, %v216_v63  ;;  %v286_v3 = vadd.f32 %v1645_v54, %v206_v0 }
  0xb9   :  { %v304_v7 = vmul.f32 0.2, %v288_v2  ;;  %v302_v8 = vmul.f32 0.2, %v286_v3 }
  0xbb   :  { %v320_v13 = vmax.f32 %v288_v2, %v304_v7  ;;  %v318_v14 = vmax.f32 %v286_v3, %v302_v8  ;;  %v357_v2 = vunpack.c.3.s8 %v1662_v12  ;;  %v246_v3 = vpop.permute.xlu2 %245  ;;  %v420_v8 = vsel %vm404_vm3, 16843009, %v1458_v20 }
  0xbc   :  { %v436_v19 = vunpack.c.0.s8 %v420_v8  ;;  %v294_v28 = vadd.f32 %v1645_v54, %v246_v3 }
  0xbd   :  { %v1670_v23 = vsel %vm444_vm8, %v320_v13, -1e+30  ;;  %v1672_v24 = vsel %vm442_vm9, %v318_v14, -1e+30  ;;  %v387_v13 = vpack.c.b8 %v386_v62, %v386_v62  ;;  %v361_v14 = vunpack.c.3.s8 %v1682_v37 }
  0xbe   :  { %v221_v25 = vpop.permute.xlu1 %220  ;;  %494 = vmax.xlane.f32.xlu0 %v1670_v23  ;;  %490 = vmax.xlane.f32.xlu1 %v1672_v24  ;;  %v211_v26 = vpop.permute.xlu0 %210  ;;  %v384_v27 = vpack.c.b16 %v357_v2, %v357_v2  ;;  %vm407_vm8 = vnez %v389_v11  ;;  %vm452_vm10 = vcmp.ne.s32.totalorder %v436_v19, 0  ;;  %v310_v40 = vmul.f32 0.2, %v294_v28 }
  0xbf   :  { %v287_v29 = vadd.f32 %v1645_v54, %v211_v26  ;;  %v289_v35 = vadd.f32 %v1645_v54, %v221_v25  ;;  %vm406_vm9 = vnez %v387_v13  ;;  %v391_v2 = vpack.c.b8 %v390_v57, %v390_v57 }
  0xc0   :  { %v422_v39 = vsel %vm406_vm9, 16843009, %v1458_v20  ;;  %v385_v42 = vpack.c.b8 %v384_v27, %v384_v27  ;;  %v326_v56 = vmax.f32 %v294_v28, %v310_v40  ;;  %v1760_v27 = vld [vmem:[#allocation2] sm:$0xff]  ;;  %v1762_v28 = vld [vmem:[#allocation2 + $0x10] sm:$0xff]  ;;  %v1792_v40 = vld [vmem:[#allocation2 + $0x38] sm:$0xff] }
  0xc1   :  { %v303_v36 = vmul.f32 0.2, %v287_v29  ;;  %v305_v49 = vmul.f32 0.2, %v289_v35  ;;  %v438_v53 = vunpack.c.0.s8 %v422_v39  ;;  %vm408_vm3 = vnez %v391_v2 }
  0xc2   :  { %vm405_vm13 = vnez %v385_v42  ;;  %v1796_v42 = vld [vmem:[#allocation2 + $0x30] sm:$0xff] }
  0xc3   :  { %v319_v41 = vmax.f32 %v287_v29, %v303_v36  ;;  %v321_v1 = vmax.f32 %v289_v35, %v305_v49  ;;  %v392_v29 = vpack.c.b16 %v361_v14, %v361_v14  ;;  %v423_v36 = vsel %vm407_vm8, 16843009, %v1458_v20 }
  0xc4   :  { %vm454_vm2 = vcmp.ne.s32.totalorder %v438_v53, 0  ;;  %v1815_v53 = vld [vmem:[#allocation2 + $0x50] sm:$0xff] }
  0xc5   :  { %v1691_v50 = vsel %vm443_vm15, %v319_v41, -1e+30  ;;  %v1711_v12 = vsel %vm1695_vm1, %v321_v1, -1e+30  ;;  %v261_v41 = vpop.permute.xlu2 %260  ;;  %v393_v43 = vpack.c.b8 %v392_v29, %v392_v29  ;;  %vm450_vm15 = vcmp.ne.s32.totalorder %v434_v48, 0 }
  0xc6   :  { %v241_v51 = vpop.permute.xlu1 %240  ;;  %498 = vmax.xlane.f32.xlu1 %v1684_v38  ;;  %492 = vmax.xlane.f32.xlu2 %v1691_v50  ;;  %v236_v52 = vpop.permute.xlu0 %235  ;;  %v297_v58 = vadd.f32 %v1645_v54, %v261_v41  ;;  %v1739_v1 = vsel %vm450_vm15, %v326_v56, -1e+30  ;;  %v1794_v41 = vld [vmem:[#allocation2 + $0x18] sm:$0xff] }
  0xc7   :  { %v293_v59 = vadd.f32 %v1645_v54, %v241_v51  ;;  %v292_v60 = vadd.f32 %v1645_v54, %v236_v52  ;;  %v439_v52 = vunpack.c.0.s8 %v423_v36  ;;  %vm409_vm14 = vnez %v393_v43 }
  0xc8   :  { %v313_v3 = vmul.f32 0.2, %v297_v58 }
  0xc9   :  { %v309_v63 = vmul.f32 0.2, %v293_v59  ;;  %v308_v0 = vmul.f32 0.2, %v292_v60  ;;  %vm455_vm1 = vcmp.ne.s32.totalorder %v439_v52, 0 }
  0xca   :  { %v329_v14 = vmax.f32 %v297_v58, %v313_v3 }
  0xcb   :  { %v325_v6 = vmax.f32 %v293_v59, %v309_v63  ;;  %v324_v7 = vmax.f32 %v292_v60, %v308_v0  ;;  %v421_v63 = vsel %vm405_vm13, 16843009, %v1458_v20  ;;  %v425_v0 = vsel %vm409_vm14, 16843009, %v1458_v20 }
  0xcc   :  { %v437_v8 = vunpack.c.0.s8 %v421_v63  ;;  %v441_v9 = vunpack.c.0.s8 %v425_v0  ;;  %v1836_v63 = vld [vmem:[#allocation2 + $0x40] sm:$0xff] }
  0xcd   :  { %v1707_v15 = vsel %vm449_vm5, %v325_v6, -1e+30  ;;  %v1713_v16 = vsel %vm448_vm6, %v324_v7, -1e+30  ;;  %v276_v6 = vpop.permute.xlu2 %275  ;;  %v1838_v0 = vld [vmem:[#allocation2 + $0x60] sm:$0xff] }
  0xce   :  { %v256_v17 = vpop.permute.xlu1 %255  ;;  %504 = vmax.xlane.f32.xlu1 %v1707_v15  ;;  %496 = vmax.xlane.f32.xlu2 %v1711_v12  ;;  %v251_v18 = vpop.permute.xlu0 %250  ;;  %v300_v11 = vadd.f32 %v1645_v54, %v276_v6  ;;  %vm453_vm4 = vcmp.ne.s32.totalorder %v437_v8, 0  ;;  %vm457_vm5 = vcmp.ne.s32.totalorder %v441_v9, 0 }
  0xcf   :  { %v296_v25 = vadd.f32 %v1645_v54, %v256_v17  ;;  %502 = vmax.xlane.f32.xlu0 %v1713_v16  ;;  %v295_v26 = vadd.f32 %v1645_v54, %v251_v18  ;;  %v424_v18 = vsel %vm408_vm3, 16843009, %v1458_v20  ;;  %v1751_v21 = vsel %vm453_vm4, %v329_v14, -1e+30  ;;  %v1864_v14 = vld [vmem:[#allocation2 + $0x78] sm:$0xff] }
  0xd0   :  { %v316_v19 = vmul.f32 0.2, %v300_v11 }
  0xd1   :  { %v312_v30 = vmul.f32 0.2, %v296_v25  ;;  %v311_v31 = vmul.f32 0.2, %v295_v26 }
  0xd3   :  { %v328_v34 = vmax.f32 %v296_v25, %v312_v30  ;;  %v327_v35 = vmax.f32 %v295_v26, %v311_v31  ;;  %v440_v25 = vunpack.c.0.s8 %v424_v18  ;;  %v332_v26 = vmax.f32 %v300_v11, %v316_v19 }
  0xd5   :  { %v1725_v45 = vsel %vm452_vm10, %v328_v34, -1e+30  ;;  %v1729_v47 = vsel %vm451_vm12, %v327_v35, -1e+30  ;;  %vm456_vm6 = vcmp.ne.s32.totalorder %v440_v25, 0 }
  0xd6   :  { %v271_v49 = vpop.permute.xlu1 %270  ;;  %510 = vmax.xlane.f32.xlu1 %v1725_v45  ;;  %500 = vmax.xlane.f32.xlu2 %v1727_v46  ;;  %v266_v51 = vpop.permute.xlu0 %265 }
  0xd7   :  { %v299_v55 = vadd.f32 %v1645_v54, %v271_v49  ;;  %508 = vmax.xlane.f32.xlu0 %v1729_v47  ;;  %v298_v37 = vadd.f32 %v1645_v54, %v266_v51 }
  0xd9   :  { %v315_v59 = vmul.f32 0.2, %v299_v55  ;;  %v314_v60 = vmul.f32 0.2, %v298_v37 }
  0xdb   :  { %v331_v61 = vmax.f32 %v299_v55, %v315_v59  ;;  %v330_v62 = vmax.f32 %v298_v37, %v314_v60  ;;  %v1817_v55 = vld [vmem:[#allocation2 + $0x28] sm:$0xff] }
  0xdc   :  { %v1819_v37 = vld [vmem:[#allocation2 + $0x48] sm:$0xff] }
  0xdd   :  { %v1741_v4 = vsel %vm455_vm1, %v331_v61, -1e+30  ;;  %v1743_v5 = vsel %vm454_vm2, %v330_v62, -1e+30  ;;  %v1834_v62 = vld [vmem:[#allocation2 + $0x68] sm:$0xff] }
  0xde   :  { %516 = vmax.xlane.f32.xlu1 %v1741_v4  ;;  %506 = vmax.xlane.f32.xlu2 %v1739_v1  ;;  %v281_v7 = vpop.permute.xlu0 %280 }
  0xdf   :  { %514 = vmax.xlane.f32.xlu0 %v1743_v5  ;;  %v301_v10 = vadd.f32 %v1645_v54, %v281_v7  ;;  %v1757_v54 = vsel %vm456_vm6, %v332_v26, -1e+30 }
  0xe1   :  { %v317_v13 = vmul.f32 0.2, %v301_v10 }
  0xe3   :  { %v333_v17 = vmax.f32 %v301_v10, %v317_v13  ;;  %v1862_v13 = vld [vmem:[#allocation2 + $0x58] sm:$0xff] }
  0xe5   :  { %v1753_v22 = vsel %vm457_vm5, %v333_v17, -1e+30 }
  0xe6   :  { %512 = vmax.xlane.f32.xlu2 %v1751_v21 }
  0xe7   :  { %520 = vmax.xlane.f32.xlu0 %v1753_v22 }
  0xee   :  { %518 = vmax.xlane.f32.xlu2 %v1757_v54 }
 0x131   :  { %v491_v20 = vpop.xlane.xlu1 %490  ;;  %v495_v29 = vpop.xlane.xlu0 %494 }
 0x132   :  { %v1765_v30 = vmax.f32 %v1760_v27, %v491_v20  ;;  %v1768_v31 = vmax.f32 %v1762_v28, %v495_v29 }
 0x134   :  { %1076 = vst.msk [vmem:[#allocation2] sm:$0xff] %vm131_vm0, %v1765_v30  ;;  %588 = vperm.xlu1 %1353, %v1765_v30   ;;  %598 = vperm.xlu0 %1352, %v1768_v31   ;;  %v540_v11 = vsub.f32 %v1762_v28, %v1768_v31  ;;  %v538_v20 = vsub.f32 %v1760_v27, %v1765_v30  ;;  %v1887_v30 = vld [vmem:[#allocation2 + $0x70] sm:$0xff] }
 0x135   :  { %1078 = vst.msk [vmem:[#allocation2 + $0x10] sm:$0xff] %vm131_vm0, %v1768_v31 }
 0x136   :  { %v558_v18 = vmul.f32 1.442695, %v540_v11  ;;  %v554_v31 = vmul.f32 1.442695, %v538_v20 }
 0x138   :  { %1356 = vpow2.f32 %v558_v18  ;;  %v1322_v18 = vld [vmem:[#allocation7 + $0x30] sm:$0xff] }
 0x139   :  { %v499_v34 = vpop.xlane.xlu1 %498  ;;  %v493_v35 = vpop.xlane.xlu2 %492  ;;  %1358 = vpow2.f32 %v554_v31 }
 0x13a   :  { %v1781_v36 = vmax.f32 %v1776_v32, %v499_v34  ;;  %v1784_v39 = vmax.f32 %v1778_v33, %v493_v35 }
 0x13c   :  { %1080 = vst.msk [vmem:[#allocation2 + $0x20] sm:$0xff] %vm131_vm0, %v1781_v36  ;;  %593 = vperm.xlu2 %1354, %v1784_v39   ;;  %608 = vperm.xlu0 %1352, %v1781_v36   ;;  %v539_v28 = vsub.f32 %v1778_v33, %v1784_v39  ;;  %v542_v27 = vsub.f32 %v1776_v32, %v1781_v36 }
 0x13d   :  { %1077 = vst.msk [vmem:[#allocation2 + $0x8] sm:$0xff] %vm131_vm0, %v1784_v39 }
 0x13e   :  { %v556_v34 = vmul.f32 1.442695, %v539_v28  ;;  %v1892_v39 = vpop.eup %1356 }
 0x140   :  { %1360 = vpow2.f32 %v556_v34  ;;  %v1319_v34 = vld [vmem:[#allocation7 + $0x18] sm:$0xff] }
 0x141   :  { %v505_v43 = vpop.xlane.xlu1 %504  ;;  %v497_v44 = vpop.xlane.xlu2 %496 }
 0x142   :  { %v1799_v48 = vmax.f32 %v1792_v40, %v505_v43  ;;  %v1802_v49 = vmax.f32 %v1794_v41, %v497_v44  ;;  %v503_v51 = vpop.xlane.xlu0 %502  ;;  %v562_v43 = vmul.f32 1.442695, %v542_v27 }
 0x143   :  { %v1805_v52 = vmax.f32 %v1796_v42, %v503_v51 }
 0x144   :  { %1083 = vst.msk [vmem:[#allocation2 + $0x38] sm:$0xff] %vm131_vm0, %v1799_v48  ;;  %603 = vperm.xlu1 %1353, %v1802_v49   ;;  %623 = vperm.xlu0 %1352, %v1799_v48   ;;  %v541_v44 = vsub.f32 %v1794_v41, %v1802_v49  ;;  %1362 = vpow2.f32 %v562_v43  ;;  %v545_v36 = vsub.f32 %v1792_v40, %v1799_v48  ;;  %v1316_v43 = vld [vmem:[#allocation7] sm:$0xff] }
 0x145   :  { %1079 = vst.msk [vmem:[#allocation2 + $0x18] sm:$0xff] %vm131_vm0, %v1802_v49 }
 0x146   :  { %1082 = vst.msk [vmem:[#allocation2 + $0x30] sm:$0xff] %vm131_vm0, %v1805_v52  ;;  %v560_v41 = vmul.f32 1.442695, %v541_v44 }
 0x148   :  { %1364 = vpow2.f32 %v560_v41 }
 0x149   :  { %v511_v56 = vpop.xlane.xlu1 %510  ;;  %v501_v57 = vpop.xlane.xlu2 %500 }
 0x14a   :  { %v1822_v58 = vmax.f32 %v1815_v53, %v511_v56  ;;  %v527_v59 = vmax.f32 %v1817_v55, %v501_v57  ;;  %v509_v60 = vpop.xlane.xlu0 %508  ;;  %v1906_v56 = vpop.eup %1358  ;;  %v568_v57 = vmul.f32 1.442695, %v545_v36 }
 0x14b   :  { %v1826_v61 = vmax.f32 %v1819_v37, %v509_v60  ;;  %v1908_v60 = vpop.eup %1360 }
 0x14c   :  { %1086 = vst.msk [vmem:[#allocation2 + $0x50] sm:$0xff] %vm131_vm0, %v1822_v58  ;;  %613 = vperm.xlu2 %1354, %v527_v59   ;;  %618 = vperm.xlu1 %1353, %v1805_v52   ;;  %v543_v32 = vsub.f32 %v1817_v55, %v527_v59  ;;  %v1323_v55 = vld [vmem:[#allocation7 + $0x38] sm:$0xff]  ;;  %v548_v48 = vsub.f32 %v1815_v53, %v1822_v58 }
 0x14d   :  { %1081 = vst.msk [vmem:[#allocation2 + $0x28] sm:$0xff] %vm131_vm0, %v527_v59  ;;  %995 = vmatpush.bf16.msra.mxu0 %v1323_v55  ;;  %1324 = vmatpush.bf16.msra.mxu1 %v1323_v55 }
 0x14e   :  { %1085 = vst.msk [vmem:[#allocation2 + $0x48] sm:$0xff] %vm131_vm0, %v1826_v61  ;;  %v564_v49 = vmul.f32 1.442695, %v543_v32  ;;  %1325 = vmatpush.bf16.msra.mxu2 %v1323_v55  ;;  %1326 = vmatpush.bf16.msra.mxu3 %v1323_v55 }
 0x150   :  { %1366 = vpow2.f32 %v564_v49 }
 0x151   :  { %v517_v2 = vpop.xlane.xlu1 %516  ;;  %v507_v3 = vpop.xlane.xlu2 %506  ;;  %1368 = vpow2.f32 %v568_v57  ;;  %996 = vmatpush.bf16.msra.mxu0 %v1322_v18  ;;  %1327 = vmatpush.bf16.msra.mxu1 %v1322_v18 }
 0x152   :  { %v1841_v6 = vmax.f32 %v1834_v62, %v517_v2  ;;  %v1844_v7 = vmax.f32 %v1836_v63, %v507_v3  ;;  %v515_v8 = vpop.xlane.xlu0 %514  ;;  %v1910_v2 = vpop.eup %1362  ;;  %v544_v3 = vsub.f32 %v1796_v42, %v1805_v52  ;;  %1328 = vmatpush.bf16.msra.mxu2 %v1322_v18  ;;  %1329 = vmatpush.bf16.msra.mxu3 %v1322_v18 }
 0x153   :  { %v1847_v9 = vmax.f32 %v1838_v0, %v515_v8  ;;  %v1921_v59 = vpop.eup %1364  ;;  %v574_v8 = vmul.f32 1.442695, %v548_v48 }
 0x154   :  { %v551_v10 = vsub.f32 %v1834_v62, %v1841_v6  ;;  %1089 = vst.msk [vmem:[#allocation2 + $0x68] sm:$0xff] %vm131_vm0, %v1841_v6  ;;  %628 = vperm.xlu2 %1354, %v1844_v7   ;;  %633 = vperm.xlu1 %1353, %v1826_v61   ;;  %v546_v40 = vsub.f32 %v1836_v63, %v1844_v7  ;;  %v566_v42 = vmul.f32 1.442695, %v544_v3 }
 0x155   :  { %1084 = vst.msk [vmem:[#allocation2 + $0x40] sm:$0xff] %vm131_vm0, %v1844_v7  ;;  %648 = vperm.xlu0 %1352, %v1847_v9   ;;  %v547_v63 = vsub.f32 %v1819_v37, %v1826_v61  ;;  %v1321_v37 = vld [vmem:[#allocation7 + $0x28] sm:$0xff] }
 0x156   :  { %1088 = vst.msk [vmem:[#allocation2 + $0x60] sm:$0xff] %vm131_vm0, %v1847_v9  ;;  %v570_v52 = vmul.f32 1.442695, %v546_v40  ;;  %v1923_v11 = vpop.eup %1366  ;;  %1370 = vpow2.f32 %v566_v42  ;;  %997 = vmatpush.bf16.msra.mxu0 %v1321_v37  ;;  %1330 = vmatpush.bf16.msra.mxu1 %v1321_v37 }
 0x157   :  { %1331 = vmatpush.bf16.msra.mxu2 %v1321_v37  ;;  %1332 = vmatpush.bf16.msra.mxu3 %v1321_v37 }
 0x158   :  { %1372 = vpow2.f32 %v570_v52 }
 0x159   :  { %v513_v17 = vpop.xlane.xlu2 %512  ;;  %1374 = vpow2.f32 %v574_v8 }
 0x15a   :  { %v1867_v19 = vmax.f32 %v1862_v13, %v513_v17  ;;  %v521_v25 = vpop.xlane.xlu0 %520  ;;  %v1925_v17 = vpop.eup %1368 }
 0x15b   :  { %v1870_v26 = vmax.f32 %v1864_v14, %v521_v25 }
 0x15c   :  { %1087 = vst.msk [vmem:[#allocation2 + $0x58] sm:$0xff] %vm131_vm0, %v1867_v19  ;;  %653 = vperm.xlu2 %1354, %v1841_v6   ;;  %638 = vperm.xlu1 %1353, %v1822_v58   ;;  %v549_v53 = vsub.f32 %v1862_v13, %v1867_v19  ;;  %v572_v58 = vmul.f32 1.442695, %v547_v63  ;;  %v1934_v25 = vpop.eup %1370  ;;  %v550_v13 = vsub.f32 %v1838_v0, %v1847_v9  ;;  %v1318_v0 = vld [vmem:[#allocation7 + $0x10] sm:$0xff] }
 0x15d   :  { %v553_v29 = vsub.f32 %v1864_v14, %v1870_v26  ;;  %1091 = vst.msk [vmem:[#allocation2 + $0x78] sm:$0xff] %vm131_vm0, %v1870_v26  ;;  %643 = vperm.xlu0 %1352, %v1867_v19   ;;  %v1320_v19 = vld [vmem:[#allocation7 + $0x20] sm:$0xff] }
 0x15e   :  { %v576_v7 = vmul.f32 1.442695, %v549_v53  ;;  %v1936_v20 = vpop.eup %1372  ;;  %1376 = vpow2.f32 %v572_v58  ;;  %v578_v28 = vmul.f32 1.442695, %v550_v13  ;;  %998 = vmatpush.bf16.msra.mxu0 %v1320_v19  ;;  %1333 = vmatpush.bf16.msra.mxu1 %v1320_v19 }
 0x15f   :  { %v1938_v61 = vpop.eup %1374  ;;  %1334 = vmatpush.bf16.msra.mxu2 %v1320_v19  ;;  %1335 = vmatpush.bf16.msra.mxu3 %v1320_v19 }
 0x160   :  { %1378 = vpow2.f32 %v576_v7 }
 0x161   :  { %v519_v35 = vpop.xlane.xlu2 %518  ;;  %1380 = vpow2.f32 %v578_v28 }
 0x162   :  { %v1890_v33 = vmax.f32 %v1887_v30, %v519_v35  ;;  %999 = vmatpush.bf16.msra.mxu0 %v1319_v34  ;;  %1336 = vmatpush.bf16.msra.mxu1 %v1319_v34  ;;  %v1317_v35 = vld [vmem:[#allocation7 + $0x8] sm:$0xff] }
 0x163   :  { %1337 = vmatpush.bf16.msra.mxu2 %v1319_v34  ;;  %1338 = vmatpush.bf16.msra.mxu3 %v1319_v34 }
 0x164   :  { %v552_v51 = vsub.f32 %v1887_v30, %v1890_v33  ;;  %1090 = vst.msk [vmem:[#allocation2 + $0x70] sm:$0xff] %vm131_vm0, %v1890_v33  ;;  %658 = vperm.xlu2 %1354, %v1890_v33   ;;  %663 = vperm.xlu1 %1353, %v1870_v26   ;;  %v1945_v27 = vpop.eup %1376 }
 0x165   :  { %839 = vperm.xlu0 %1352, %v1892_v39  }
 0x166   :  { %v1947_v31 = vpop.eup %1378  ;;  %1000 = vmatpush.bf16.msra.mxu0 %v1318_v0  ;;  %1339 = vmatpush.bf16.msra.mxu1 %v1318_v0 }
 0x167   :  { %v1951_v9 = vpop.eup %1380  ;;  %1340 = vmatpush.bf16.msra.mxu2 %v1318_v0  ;;  %1341 = vmatpush.bf16.msra.mxu3 %v1318_v0 }
 0x16a   :  { %1001 = vmatpush.bf16.msra.mxu0 %v1317_v35  ;;  %1342 = vmatpush.bf16.msra.mxu1 %v1317_v35 }
 0x16b   :  { %1343 = vmatpush.bf16.msra.mxu2 %v1317_v35  ;;  %1344 = vmatpush.bf16.msra.mxu3 %v1317_v35 }
 0x16c   :  { %829 = vperm.xlu2 %1354, %v1906_v56   ;;  %834 = vperm.xlu1 %1353, %v1908_v60  }
 0x16d   :  { %849 = vperm.xlu0 %1352, %v1910_v2  }
 0x16e   :  { %1002 = vmatpush.bf16.msra.mxu0 %v1316_v43  ;;  %1345 = vmatpush.bf16.msra.mxu1 %v1316_v43 }
 0x16f   :  { %1346 = vmatpush.bf16.msra.mxu2 %v1316_v43  ;;  %1347 = vmatpush.bf16.msra.mxu3 %v1316_v43 }
 0x174   :  { %844 = vperm.xlu2 %1354, %v1921_v59   ;;  %854 = vperm.xlu1 %1353, %v1923_v11  }
 0x175   :  { %864 = vperm.xlu0 %1352, %v1925_v17  }
 0x17c   :  { %859 = vperm.xlu2 %1354, %v1934_v25   ;;  %869 = vperm.xlu1 %1353, %v1936_v20  }
 0x17d   :  { %879 = vperm.xlu0 %1352, %v1938_v61  }
 0x184   :  { %874 = vperm.xlu2 %1354, %v1945_v27   ;;  %884 = vperm.xlu1 %1353, %v1947_v31  }
 0x18c   :  { %889 = vperm.xlu2 %1354, %v1951_v9  }
 0x196   :  { %v594_v44 = vpop.permute.xlu2 %593 }
 0x197   :  { %v667_v32 = vsub.f32 %v1691_v50, %v594_v44 }
 0x199   :  { %v684_v36 = vmul.f32 1.442695, %v667_v32 }
 0x19b   :  { %1382 = vpow2.f32 %v684_v36 }
 0x1a1   :  { %v1383_v63 = vpop.eup %1382 }
 0x1a6   :  { %v589_v41 = vpop.permute.xlu1 %588  ;;  %v599_v57 = vpop.permute.xlu0 %598 }
 0x1a7   :  { %v666_v49 = vsub.f32 %v1672_v24, %v589_v41  ;;  %v614_v3 = vpop.permute.xlu2 %613  ;;  %v668_v55 = vsub.f32 %v1670_v23, %v599_v57 }
 0x1a8   :  { %v671_v42 = vsub.f32 %v1727_v46, %v614_v3 }
 0x1a9   :  { %v682_v40 = vmul.f32 1.442695, %v666_v49  ;;  %v686_v48 = vmul.f32 1.442695, %v668_v55 }
 0x1aa   :  { %v692_v52 = vmul.f32 1.442695, %v671_v42 }
 0x1ab   :  { %1384 = vpow2.f32 %v682_v40 }
 0x1ac   :  { %1386 = vpow2.f32 %v686_v48 }
 0x1ad   :  { %1388 = vpow2.f32 %v692_v52 }
 0x1ae   :  { %v609_v8 = vpop.permute.xlu0 %608 }
 0x1af   :  { %v670_v50 = vsub.f32 %v1684_v38, %v609_v8  ;;  %v629_v58 = vpop.permute.xlu2 %628 }
 0x1b0   :  { %v674_v23 = vsub.f32 %v1739_v1, %v629_v58 }
 0x1b1   :  { %v1385_v53 = vpop.eup %1384  ;;  %v690_v7 = vmul.f32 1.442695, %v670_v50 }
 0x1b2   :  { %746 = vadd.xlane.f32.xlu0 %v1385_v53  ;;  %v923_v24 = vpack.c.bf16 %v1383_v63, %v1385_v53  ;;  %v1387_v18 = vpop.eup %1386  ;;  %v698_v28 = vmul.f32 1.442695, %v674_v23 }
 0x1b3   :  { %1390 = vpow2.f32 %v690_v7  ;;  %750 = vadd.xlane.f32.xlu1 %v1387_v18  ;;  %v1389_v38 = vpop.eup %1388 }
 0x1b4   :  { %1003 = vmatmul.bf16.vlgmr.msra.gmra.mxu0 %v923_v24 }
 0x1b5   :  { %748 = vadd.xlane.f32.xlu2 %v1383_v63 }
 0x1b6   :  { %v604_v46 = vpop.permute.xlu1 %603  ;;  %v624_v13 = vpop.permute.xlu0 %623 }
 0x1b7   :  { %v669_v37 = vsub.f32 %v1711_v12, %v604_v46  ;;  %v673_v19 = vsub.f32 %v1707_v15, %v624_v13  ;;  %v654_v44 = vpop.permute.xlu2 %653 }
 0x1b8   :  { %v679_v15 = vsub.f32 %v1741_v4, %v654_v44  ;;  %v582_v44 = vmul.f32 1.442695, %v552_v51 }
 0x1b9   :  { %v688_v34 = vmul.f32 1.442695, %v669_v37  ;;  %v1391_v0 = vpop.eup %1390  ;;  %v696_v35 = vmul.f32 1.442695, %v673_v19 }
 0x1ba   :  { %v925_v43 = vpack.c.bf16 %v1389_v38, %v1391_v0  ;;  %v708_v3 = vmul.f32 1.442695, %v679_v15 }
 0x1bb   :  { %1392 = vpow2.f32 %v688_v34  ;;  %756 = vadd.xlane.f32.xlu1 %v1389_v38 }
 0x1bc   :  { %1394 = vpow2.f32 %v698_v28  ;;  %1013 = vmatmul.bf16.vlgmr.msra.gmra.mxu1 %v925_v43 }
 0x1bd   :  { %754 = vadd.xlane.f32.xlu2 %v1391_v0  ;;  %1396 = vpow2.f32 %v696_v35 }
 0x1be   :  { %v619_v1 = vpop.permute.xlu1 %618 }
 0x1bf   :  { %v672_v32 = vsub.f32 %v1713_v16, %v619_v1  ;;  %v659_v50 = vpop.permute.xlu2 %658  ;;  %v584_v1 = vmul.f32 1.442695, %v553_v29 }
 0x1c0   :  { %v680_v23 = vsub.f32 %v1757_v54, %v659_v50 }
 0x1c1   :  { %v1393_v12 = vpop.eup %1392  ;;  %v694_v36 = vmul.f32 1.442695, %v672_v32 }
 0x1c2   :  { %752 = vadd.xlane.f32.xlu0 %v1393_v12  ;;  %v924_v41 = vpack.c.bf16 %v1393_v12, %v1387_v18  ;;  %v1395_v49 = vpop.eup %1394  ;;  %v710_v19 = vmul.f32 1.442695, %v680_v23 }
 0x1c3   :  { %v1397_v57 = vpop.eup %1396  ;;  %1398 = vpow2.f32 %v694_v36  ;;  %762 = vadd.xlane.f32.xlu1 %v1395_v49 }
 0x1c4   :  { %1008 = vmatmul.bf16.gmra.mxu0 %v924_v41  ;;  %1400 = vpow2.f32 %v708_v3  ;;  %v714_v3 = vld [vmem:[#allocation3] sm:$0xff] }
 0x1c5   :  { %760 = vadd.xlane.f32.xlu2 %v1397_v57 }
 0x1c6   :  { %v634_v55 = vpop.permute.xlu1 %633 }
 0x1c7   :  { %v675_v40 = vsub.f32 %v1729_v47, %v634_v55  ;;  %v649_v48 = vpop.permute.xlu0 %648  ;;  %v830_v12 = vpop.permute.xlu2 %829  ;;  %v716_v55 = vld [vmem:[#allocation3 + $0x10] sm:$0xff] }
 0x1c8   :  { %v678_v42 = vsub.f32 %v1743_v5, %v649_v48  ;;  %v715_v48 = vld [vmem:[#allocation3 + $0x8] sm:$0xff] }
 0x1c9   :  { %v700_v16 = vmul.f32 1.442695, %v675_v40  ;;  %v1399_v52 = vpop.eup %1398  ;;  %v730_v40 = vmul.f32 %v1906_v56, %v714_v3  ;;  %v811_v56 = vld [vmem:[#allocation4 + $0x30] sm:$0xff] }
 0x1ca   :  { %v706_v8 = vmul.f32 1.442695, %v678_v42  ;;  %758 = vadd.xlane.f32.xlu0 %v1399_v52  ;;  %v926_v4 = vpack.c.bf16 %v1397_v57, %v1399_v52  ;;  %v1401_v7 = vpop.eup %1400 }
 0x1cb   :  { %1402 = vpow2.f32 %v700_v16  ;;  %v732_v16 = vmul.f32 %v1892_v39, %v716_v55  ;;  %v720_v55 = vld [vmem:[#allocation3 + $0x30] sm:$0xff] }
 0x1cc   :  { %1404 = vpow2.f32 %v706_v8  ;;  %1018 = vmatmul.bf16.gmra.mxu1 %v926_v4  ;;  %v731_v4 = vmul.f32 %v1908_v60, %v715_v48 }
 0x1ce   :  { %v639_v63 = vpop.permute.xlu1 %638 }
 0x1cf   :  { %v676_v53 = vsub.f32 %v1725_v45, %v639_v63  ;;  %v644_v58 = vpop.permute.xlu0 %643  ;;  %v1990_v14 = vpop.permute.xlu2 %844 }
 0x1d0   :  { %v677_v47 = vsub.f32 %v1751_v21, %v644_v58  ;;  %v719_v58 = vld [vmem:[#allocation3 + $0x28] sm:$0xff] }
 0x1d1   :  { %v1403_v24 = vpop.eup %1402  ;;  %v702_v18 = vmul.f32 1.442695, %v676_v53 }
 0x1d2   :  { %v1405_v5 = vpop.eup %1404  ;;  %v704_v46 = vmul.f32 1.442695, %v677_v47  ;;  %v927_v37 = vpack.c.bf16 %v1403_v24, %v1395_v49  ;;  %764 = vadd.xlane.f32.xlu0 %v1403_v24  ;;  %v735_v47 = vmul.f32 %v1923_v11, %v719_v58  ;;  %v812_v11 = vld [vmem:[#allocation4] sm:$0xff] }
 0x1d3   :  { %1406 = vpow2.f32 %v702_v18  ;;  %v929_v13 = vpack.c.bf16 %v1401_v7, %v1405_v5  ;;  %v907_v18 = vmul.f32 %v830_v12, %v811_v56 }
 0x1d4   :  { %1408 = vpow2.f32 %v704_v46  ;;  %1023 = vmatmul.bf16.vlgmr.msra.gmra.mxu2 %v927_v37  ;;  %v717_v37 = vld [vmem:[#allocation3 + $0x18] sm:$0xff] }
 0x1d5   :  { %1033 = vmatmul.bf16.vlgmr.msra.gmra.mxu3 %v929_v13  ;;  %1410 = vpow2.f32 %v710_v19  ;;  %v722_v19 = vld [vmem:[#allocation3 + $0x40] sm:$0xff] }
 0x1d6   :  { %v664_v38 = vpop.permute.xlu1 %663 }
 0x1d7   :  { %v681_v45 = vsub.f32 %v1753_v22, %v664_v38  ;;  %v580_v22 = vmul.f32 1.442695, %v551_v10  ;;  %v1988_v6 = vpop.permute.xlu0 %839  ;;  %v1994_v30 = vpop.permute.xlu2 %859  ;;  %v733_v38 = vmul.f32 %v1921_v59, %v717_v37 }
 0x1d9   :  { %v1407_v28 = vpop.eup %1406  ;;  %v712_v34 = vmul.f32 1.442695, %v681_v45  ;;  %v721_v45 = vld [vmem:[#allocation3 + $0x38] sm:$0xff] }
 0x1da   :  { %v1409_v21 = vpop.eup %1408  ;;  %766 = vadd.xlane.f32.xlu2 %v1407_v28  ;;  %770 = vadd.xlane.f32.xlu0 %v1405_v5 }
 0x1db   :  { %1412 = vpow2.f32 %v712_v34  ;;  %768 = vadd.xlane.f32.xlu1 %v1409_v21  ;;  %v1411_v54 = vpop.eup %1410  ;;  %v928_v35 = vpack.c.bf16 %v1409_v21, %v1407_v28  ;;  %v815_v34 = vld [vmem:[#allocation4 + $0x50] sm:$0xff] }
 0x1dc   :  { %1414 = vpow2.f32 %v580_v22 }
 0x1dd   :  { %1416 = vpow2.f32 %v584_v1 }
 0x1de   :  { %1418 = vpow2.f32 %v582_v44  ;;  %v835_v10 = vpop.permute.xlu1 %834 }
 0x1df   :  { %v850_v26 = vpop.permute.xlu0 %849  ;;  %v2000_v15 = vpop.permute.xlu2 %874 }
 0x1e0   :  { %v911_v1 = vmul.f32 %v850_v26, %v815_v34  ;;  %v727_v34 = vld [vmem:[#allocation3 + $0x68] sm:$0xff] }
 0x1e1   :  { %v1413_v0 = vpop.eup %1412 }
 0x1e2   :  { %772 = vadd.xlane.f32.xlu2 %v1401_v7  ;;  %v930_v43 = vpack.c.bf16 %v1413_v0, %v1411_v54  ;;  %776 = vadd.xlane.f32.xlu0 %v1413_v0  ;;  %v1979_v32 = vpop.eup %1414  ;;  %v718_v7 = vld [vmem:[#allocation3 + $0x20] sm:$0xff]  ;;  %v737_v0 = vmul.f32 %v1925_v17, %v721_v45  ;;  %v736_v17 = vmul.f32 %v1934_v25, %v720_v55  ;;  %v817_v25 = vld [vmem:[#allocation4 + $0x8] sm:$0xff] }
 0x1e3   :  { %774 = vadd.xlane.f32.xlu1 %v1411_v54  ;;  %v1982_v36 = vpop.eup %1416  ;;  %v734_v39 = vmul.f32 %v1910_v2, %v718_v7  ;;  %v738_v2 = vmul.f32 %v1936_v20, %v722_v19 }
 0x1e4   :  { %1028 = vmatmul.bf16.gmra.mxu2 %v928_v35  ;;  %v1985_v62 = vpop.eup %1418  ;;  %v908_v35 = vmul.f32 %v835_v10, %v812_v11  ;;  %v816_v10 = vld [vmem:[#allocation4 + $0x68] sm:$0xff] }
 0x1e5   :  { %1038 = vmatmul.bf16.gmra.mxu3 %v930_v43 }
 0x1e6   :  { %v1992_v29 = vpop.permute.xlu1 %854 }
 0x1e7   :  { %v1996_v33 = vpop.permute.xlu0 %864  ;;  %v2006_v57 = vpop.permute.xlu2 %889 }
 0x1ee   :  { %v1998_v51 = vpop.permute.xlu1 %869 }
 0x1ef   :  { %v2002_v41 = vpop.permute.xlu0 %879 }
 0x1f6   :  { %894 = vperm.xlu0 %1352, %v1979_v32   ;;  %v2004_v49 = vpop.permute.xlu1 %884 }
 0x1fa   :  { %904 = vperm.xlu2 %1354, %v1982_v36  }
 0x1fc   :  { %899 = vperm.xlu1 %1353, %v1985_v62  }
 0x225   :  { %v747_v42 = vpop.xlane.xlu0 %746 }
 0x226   :  { %v778_v52 = vadd.f32 %v747_v42, %v730_v40  ;;  %v751_v8 = vpop.xlane.xlu1 %750  ;;  %v813_v40 = vld [vmem:[#allocation4 + $0x58] sm:$0xff] }
 0x227   :  { %v780_v63 = vadd.f32 %v751_v8, %v732_v16  ;;  %v909_v26 = vmul.f32 %v1988_v6, %v813_v40  ;;  %v912_v16 = vmul.f32 %v1992_v29, %v816_v10  ;;  %v913_v6 = vmul.f32 %v1994_v30, %v817_v25 }
 0x228   :  { %795 = vst.msk [vmem:[#allocation3] sm:$0xff] %vm131_vm0, %v778_v52  ;;  %v749_v50 = vpop.xlane.xlu2 %748 }
 0x229   :  { %v779_v53 = vadd.f32 %v749_v50, %v731_v4  ;;  %797 = vst.msk [vmem:[#allocation3 + $0x10] sm:$0xff] %vm131_vm0, %v780_v63  ;;  %v723_v63 = vld [vmem:[#allocation3 + $0x48] sm:$0xff] }
 0x22a   :  { %v739_v58 = vmul.f32 %v1945_v27, %v723_v63 }
 0x22b   :  { %796 = vst.msk [vmem:[#allocation3 + $0x8] sm:$0xff] %vm131_vm0, %v779_v53  ;;  %v814_v53 = vld [vmem:[#allocation4 + $0x18] sm:$0xff] }
 0x22e   :  { %v757_v24 = vpop.xlane.xlu1 %756 }
 0x22f   :  { %v783_v5 = vadd.f32 %v757_v24, %v735_v47  ;;  %v910_v47 = vmul.f32 %v1990_v14, %v814_v53  ;;  %v724_v24 = vld [vmem:[#allocation3 + $0x50] sm:$0xff]  ;;  %v826_v53 = vld [vmem:[#allocation4 + $0x28] sm:$0xff] }
 0x230   :  { %v755_v60 = vpop.xlane.xlu2 %754 }
 0x231   :  { %v782_v23 = vadd.f32 %v755_v60, %v734_v39  ;;  %v1004_v46 = vpop.f32.mrf.mxu0  ;;  %800 = vst.msk [vmem:[#allocation3 + $0x28] sm:$0xff] %vm131_vm0, %v783_v5  ;;  %v725_v5 = vld [vmem:[#allocation3 + $0x58] sm:$0xff]  ;;  %v726_v60 = vld [vmem:[#allocation3 + $0x60] sm:$0xff] }
 0x232   :  { %v1044_v13 = vadd.f32 %v1004_v46, %v907_v18  ;;  %v740_v46 = vmul.f32 %v1938_v61, %v724_v24  ;;  %v741_v37 = vmul.f32 %v1947_v31, %v725_v5  ;;  %v742_v14 = vmul.f32 %v1951_v9, %v726_v60  ;;  %v729_v31 = vld [vmem:[#allocation3 + $0x78] sm:$0xff] }
 0x233   :  { %799 = vst.msk [vmem:[#allocation3 + $0x20] sm:$0xff] %vm131_vm0, %v782_v23 }
 0x234   :  { %1060 = vst [vmem:[#allocation4 + $0x30] sm:$0xff] %v1044_v13  ;;  %v818_v13 = vld [vmem:[#allocation4 + $0x48] sm:$0xff] }
 0x235   :  { %v753_v28 = vpop.xlane.xlu0 %752 }
 0x236   :  { %v781_v21 = vadd.f32 %v753_v28, %v733_v38  ;;  %v763_v54 = vpop.xlane.xlu1 %762  ;;  %v914_v28 = vmul.f32 %v1996_v33, %v818_v13 }
 0x237   :  { %v786_v43 = vadd.f32 %v763_v54, %v738_v2  ;;  %v728_v2 = vld [vmem:[#allocation3 + $0x70] sm:$0xff]  ;;  %v823_v54 = vld [vmem:[#allocation4 + $0x60] sm:$0xff] }
 0x238   :  { %798 = vst.msk [vmem:[#allocation3 + $0x18] sm:$0xff] %vm131_vm0, %v781_v21  ;;  %v761_v22 = vpop.xlane.xlu2 %760  ;;  %v819_v21 = vld [vmem:[#allocation4 + $0x40] sm:$0xff] }
 0x239   :  { %v785_v44 = vadd.f32 %v761_v22, %v737_v0  ;;  %v1006_v12 = vpop.f32.mrf.mxu0  ;;  %803 = vst.msk [vmem:[#allocation3 + $0x40] sm:$0xff] %vm131_vm0, %v786_v43  ;;  %v1014_v3 = vpop.f32.mrf.mxu1  ;;  %v743_v0 = vmul.f32 %v1979_v32, %v727_v34  ;;  %v744_v43 = vmul.f32 %v1985_v62, %v728_v2  ;;  %v745_v22 = vmul.f32 %v1982_v36, %v729_v31  ;;  %v820_v36 = vld [vmem:[#allocation4 + $0x20] sm:$0xff] }
 0x23a   :  { %v1045_v59 = vadd.f32 %v1006_v12, %v908_v35  ;;  %v1048_v20 = vadd.f32 %v1014_v3, %v911_v1  ;;  %v915_v33 = vmul.f32 %v1998_v51, %v819_v21  ;;  %v916_v62 = vmul.f32 %v2000_v15, %v820_v36 }
 0x23b   :  { %802 = vst.msk [vmem:[#allocation3 + $0x38] sm:$0xff] %vm131_vm0, %v785_v44 }
 0x23c   :  { %1061 = vst [vmem:[#allocation4] sm:$0xff] %v1045_v59  ;;  %v919_v59 = vmul.f32 %v2006_v57, %v823_v54 }
 0x23d   :  { %1064 = vst [vmem:[#allocation4 + $0x50] sm:$0xff] %v1048_v20  ;;  %v759_v48 = vpop.xlane.xlu0 %758 }
 0x23e   :  { %v784_v42 = vadd.f32 %v759_v48, %v736_v17  ;;  %v821_v48 = vld [vmem:[#allocation4 + $0x10] sm:$0xff] }
 0x240   :  { %801 = vst.msk [vmem:[#allocation3 + $0x30] sm:$0xff] %vm131_vm0, %v784_v42  ;;  %v917_v42 = vmul.f32 %v2002_v41, %v821_v48 }
 0x241   :  { %v1009_v52 = vpop.f32.mrf.mxu0  ;;  %v1016_v4 = vpop.f32.mrf.mxu1 }
 0x242   :  { %v1046_v8 = vadd.f32 %v1009_v52, %v909_v26  ;;  %v1049_v50 = vadd.f32 %v1016_v4, %v912_v16  ;;  %v824_v16 = vld [vmem:[#allocation4 + $0x70] sm:$0xff] }
 0x244   :  { %1062 = vst [vmem:[#allocation4 + $0x58] sm:$0xff] %v1046_v8 }
 0x245   :  { %1065 = vst [vmem:[#allocation4 + $0x68] sm:$0xff] %v1049_v50  ;;  %v765_v7 = vpop.xlane.xlu0 %764  ;;  %v822_v50 = vld [vmem:[#allocation4 + $0x38] sm:$0xff] }
 0x246   :  { %v787_v56 = vadd.f32 %v765_v7, %v739_v58  ;;  %v825_v7 = vld [vmem:[#allocation4 + $0x78] sm:$0xff]  ;;  %v918_v15 = vmul.f32 %v2004_v49, %v822_v50 }
 0x248   :  { %804 = vst.msk [vmem:[#allocation3 + $0x48] sm:$0xff] %vm131_vm0, %v787_v56 }
 0x249   :  { %v1011_v29 = vpop.f32.mrf.mxu0  ;;  %v1019_v18 = vpop.f32.mrf.mxu1 }
 0x24a   :  { %v1047_v39 = vadd.f32 %v1011_v29, %v910_v47  ;;  %v1050_v23 = vadd.f32 %v1019_v18, %v913_v6 }
 0x24c   :  { %1063 = vst [vmem:[#allocation4 + $0x18] sm:$0xff] %v1047_v39 }
 0x24d   :  { %1066 = vst [vmem:[#allocation4 + $0x8] sm:$0xff] %v1050_v23  ;;  %v767_v27 = vpop.xlane.xlu2 %766  ;;  %v771_v38 = vpop.xlane.xlu0 %770 }
 0x24e   :  { %v788_v30 = vadd.f32 %v767_v27, %v740_v46  ;;  %v769_v19 = vpop.xlane.xlu1 %768  ;;  %v790_v11 = vadd.f32 %v771_v38, %v742_v14 }
 0x24f   :  { %v789_v45 = vadd.f32 %v769_v19, %v741_v37 }
 0x250   :  { %805 = vst.msk [vmem:[#allocation3 + $0x50] sm:$0xff] %vm131_vm0, %v788_v30 }
 0x251   :  { %806 = vst.msk [vmem:[#allocation3 + $0x58] sm:$0xff] %vm131_vm0, %v789_v45  ;;  %v1021_v61 = vpop.f32.mrf.mxu1 }
 0x252   :  { %807 = vst.msk [vmem:[#allocation3 + $0x60] sm:$0xff] %vm131_vm0, %v790_v11  ;;  %v1051_v9 = vadd.f32 %v1021_v61, %v914_v28 }
 0x254   :  { %1067 = vst [vmem:[#allocation4 + $0x48] sm:$0xff] %v1051_v9 }
 0x255   :  { %v773_v35 = vpop.xlane.xlu2 %772  ;;  %v777_v12 = vpop.xlane.xlu0 %776 }
 0x256   :  { %v791_v1 = vadd.f32 %v773_v35, %v743_v0  ;;  %v775_v44 = vpop.xlane.xlu1 %774  ;;  %v793_v55 = vadd.f32 %v777_v12, %v745_v22 }
 0x257   :  { %v792_v3 = vadd.f32 %v775_v44, %v744_v43  ;;  %v1024_v20 = vpop.f32.mrf.mxu2 }
 0x258   :  { %808 = vst.msk [vmem:[#allocation3 + $0x68] sm:$0xff] %vm131_vm0, %v791_v1  ;;  %v1052_v40 = vadd.f32 %v1024_v20, %v915_v33  ;;  %v1034_v32 = vpop.f32.mrf.mxu3 }
 0x259   :  { %809 = vst.msk [vmem:[#allocation3 + $0x70] sm:$0xff] %vm131_vm0, %v792_v3  ;;  %v1056_v17 = vadd.f32 %v1034_v32, %v919_v59 }
 0x25a   :  { %810 = vst.msk [vmem:[#allocation3 + $0x78] sm:$0xff] %vm131_vm0, %v793_v55 }
 0x25b   :  { %1068 = vst [vmem:[#allocation4 + $0x40] sm:$0xff] %v1052_v40 }
 0x25c   :  { %1072 = vst [vmem:[#allocation4 + $0x60] sm:$0xff] %v1056_v17 }
 0x25d   :  { %v905_v58 = vpop.permute.xlu2 %904 }
 0x25e   :  { %v922_v47 = vmul.f32 %v905_v58, %v826_v53 }
 0x25f   :  { %v1026_v51 = vpop.f32.mrf.mxu2 }
 0x260   :  { %v1053_v10 = vadd.f32 %v1026_v51, %v916_v62  ;;  %v1036_v57 = vpop.f32.mrf.mxu3 }
 0x262   :  { %1069 = vst [vmem:[#allocation4 + $0x20] sm:$0xff] %v1053_v10 }
 0x267   :  { %v1029_v26 = vpop.f32.mrf.mxu2 }
 0x268   :  { %v1054_v52 = vadd.f32 %v1029_v26, %v917_v42  ;;  %v1039_v8 = vpop.f32.mrf.mxu3  ;;  %v895_v4 = vpop.permute.xlu0 %894 }
 0x269   :  { %v920_v63 = vmul.f32 %v895_v4, %v824_v16 }
 0x26a   :  { %1070 = vst [vmem:[#allocation4 + $0x10] sm:$0xff] %v1054_v52 }
 0x26b   :  { %v1057_v25 = vadd.f32 %v1036_v57, %v920_v63 }
 0x26d   :  { %1073 = vst [vmem:[#allocation4 + $0x70] sm:$0xff] %v1057_v25 }
 0x26e   :  { %v900_v56 = vpop.permute.xlu1 %899 }
 0x26f   :  { %v921_v6 = vmul.f32 %v900_v56, %v825_v7  ;;  %v1031_v29 = vpop.f32.mrf.mxu2 }
 0x270   :  { %v1055_v41 = vadd.f32 %v1031_v29, %v918_v15  ;;  %v1041_v24 = vpop.f32.mrf.mxu3 }
 0x271   :  { %v1058_v39 = vadd.f32 %v1039_v8, %v921_v6  ;;  %v1059_v18 = vadd.f32 %v1041_v24, %v922_v47 }
 0x272   :  { %1071 = vst [vmem:[#allocation4 + $0x38] sm:$0xff] %v1055_v41 }
 0x273   :  { %1074 = vst [vmem:[#allocation4 + $0x78] sm:$0xff] %v1058_v39 }
 0x274   :  { %1075 = vst [vmem:[#allocation4 + $0x28] sm:$0xff] %v1059_v18 }
 0x275 PF:  { %v1099_v5 = vld [vmem:[#allocation3 + $0x20] sm:$0xff]  ;;  %v1097_v60 = vld [vmem:[#allocation3 + $0x10] sm:$0xff]  ;;  %v1459_v46 = vmov 0   ;;  %v1100_v49 = vld [vmem:[#allocation3 + $0x28] sm:$0xff] }
 0x276   :  { %v1095_v23 = vld [vmem:[#allocation3] sm:$0xff]  ;;  %1422 = vset.pattern.permute.xlu2 %v1459_v46  ;;  %1421 = vset.pattern.permute.xlu1 %v1459_v46  ;;  %1424 = vrcp.f32 %v1099_v5  ;;  %v1098_v27 = vld [vmem:[#allocation3 + $0x18] sm:$0xff]  ;;  %v1096_v37 = vld [vmem:[#allocation3 + $0x8] sm:$0xff] }
 0x277   :  { %1420 = vset.pattern.permute.xlu0 %v1459_v46  ;;  %1426 = vrcp.f32 %v1097_v60  ;;  %v1103_v19 = vld [vmem:[#allocation3 + $0x40] sm:$0xff]  ;;  %v1102_v45 = vld [vmem:[#allocation3 + $0x38] sm:$0xff]  ;;  %v1101_v28 = vld [vmem:[#allocation3 + $0x30] sm:$0xff] }
 0x278   :  { %1428 = vrcp.f32 %v1095_v23  ;;  %v1106_v61 = vld [vmem:[#allocation3 + $0x58] sm:$0xff]  ;;  %v1105_v31 = vld [vmem:[#allocation3 + $0x50] sm:$0xff]  ;;  %v1104_v9 = vld [vmem:[#allocation3 + $0x48] sm:$0xff] }
 0x279   :  { %1430 = vrcp.f32 %v1100_v49  ;;  %v1109_v0 = vld [vmem:[#allocation3 + $0x70] sm:$0xff]  ;;  %v1108_v43 = vld [vmem:[#allocation3 + $0x68] sm:$0xff]  ;;  %v1107_v33 = vld [vmem:[#allocation3 + $0x60] sm:$0xff] }
 0x27a   :  { %1432 = vrcp.f32 %v1098_v27  ;;  %v1110_v59 = vld [vmem:[#allocation3 + $0x78] sm:$0xff]  ;;  %v1131_v20 = vld [vmem:[#allocation4 + $0x50] sm:$0xff]  ;;  %v2053_v32 = vld [vmem:[%s2124_s5] ss:$0 sm:$0xff] }
 0x27b   :  { %1434 = vrcp.f32 %v1096_v37  ;;  %v1132_v62 = vld [vmem:[#allocation4 + $0x68] sm:$0xff]  ;;  %v1135_v48 = vld [vmem:[#allocation4 + $0x40] sm:$0xff]  ;;  %v1138_v52 = vld [vmem:[#allocation4 + $0x38] sm:$0xff] }
 0x27c   :  { %v1425_v14 = vpop.eup %1424  ;;  %1436 = vrcp.f32 %v1103_v19  ;;  %v1129_v8 = vld [vmem:[#allocation4 + $0x58] sm:$0xff]  ;;  %v1127_v63 = vld [vmem:[#allocation4 + $0x30] sm:$0xff]  ;;  %v1128_v24 = vld [vmem:[#allocation4] sm:$0xff] }
 0x27d   :  { %v1427_v13 = vpop.eup %1426  ;;  %1165 = vperm.xlu2 %1422, %v1425_v14   ;;  %1438 = vrcp.f32 %v1102_v45  ;;  %v1141_v6 = vld [vmem:[#allocation4 + $0x78] sm:$0xff]  ;;  %v1134_v37 = vld [vmem:[#allocation4 + $0x48] sm:$0xff] }
 0x27e   :  { %v1429_v30 = vpop.eup %1428  ;;  %1155 = vperm.xlu1 %1421, %v1427_v13   ;;  %1440 = vrcp.f32 %v1101_v28  ;;  %v1130_v29 = vld [vmem:[#allocation4 + $0x18] sm:$0xff]  ;;  %v1133_v14 = vld [vmem:[#allocation4 + $0x8] sm:$0xff]  ;;  %v1137_v28 = vld [vmem:[#allocation4 + $0x10] sm:$0xff] }
 0x27f   :  { %1145 = vperm.xlu0 %1420, %v1429_v30   ;;  %v1431_v38 = vpop.eup %1430  ;;  %1442 = vrcp.f32 %v1106_v61 }
 0x280   :  { %v1433_v11 = vpop.eup %1432  ;;  %1444 = vrcp.f32 %v1105_v31 }
 0x281   :  { %v1435_v34 = vpop.eup %1434  ;;  %1446 = vrcp.f32 %v1104_v9 }
 0x282   :  { %v1437_v2 = vpop.eup %1436  ;;  %1448 = vrcp.f32 %v1109_v0  ;;  %v1140_v0 = vld [vmem:[#allocation4 + $0x70] sm:$0xff] }
 0x283   :  { %v1439_v21 = vpop.eup %1438  ;;  %1450 = vrcp.f32 %v1108_v43 }
 0x284   :  { %v1441_v54 = vpop.eup %1440  ;;  %1452 = vrcp.f32 %v1107_v33 }
 0x285   :  { %1170 = vperm.xlu2 %1422, %v1431_v38   ;;  %v1443_v35 = vpop.eup %1442  ;;  %1454 = vrcp.f32 %v1110_v59  ;;  %v1142_v59 = vld [vmem:[#allocation4 + $0x28] sm:$0xff] }
 0x286   :  { %1160 = vperm.xlu1 %1421, %v1433_v11   ;;  %v1445_v22 = vpop.eup %1444 }
 0x287   :  { %1150 = vperm.xlu0 %1420, %v1435_v34   ;;  %v1447_v1 = vpop.eup %1446  ;;  %v1136_v34 = vld [vmem:[#allocation4 + $0x20] sm:$0xff] }
 0x288   :  { %v1449_v44 = vpop.eup %1448 }
 0x289   :  { %v1451_v12 = vpop.eup %1450 }
 0x28a   :  { %v1453_v3 = vpop.eup %1452 }
 0x28b   :  { %v1455_v55 = vpop.eup %1454 }
 0x28d   :  { %1185 = vperm.xlu2 %1422, %v1437_v2  }
 0x28e   :  { %1180 = vperm.xlu1 %1421, %v1439_v21  }
 0x28f   :  { %1175 = vperm.xlu0 %1420, %v1441_v54  }
 0x295   :  { %1200 = vperm.xlu2 %1422, %v1443_v35   ;;  %v1139_v35 = vld [vmem:[#allocation4 + $0x60] sm:$0xff] }
 0x296   :  { %1195 = vperm.xlu1 %1421, %v1445_v22  }
 0x297   :  { %1190 = vperm.xlu0 %1420, %v1447_v1  }
 0x29d   :  { %1215 = vperm.xlu2 %1422, %v1449_v44  }
 0x29e   :  { %1210 = vperm.xlu1 %1421, %v1451_v12  }
 0x29f   :  { %1205 = vperm.xlu0 %1420, %v1453_v3  }
 0x2a7   :  { %1220 = vperm.xlu0 %1420, %v1455_v55  }
 0x2d7   :  { %v1166_v40 = vpop.permute.xlu2 %1165 }
 0x2d8   :  { %v1227_v17 = vmul.f32 %v1166_v40, %v1131_v20 }
 0x2da   :  { %v1247_v36 = vadd.f32 %v2053_v32, %v1227_v17 }
 0x2dc   :  { %1263 = vst [vmem:[%s2125_s6 + $0x20] sm:$0xff] %v1247_v36 }
 0x2df   :  { %v1171_v51 = vpop.permute.xlu2 %1170 }
 0x2e0   :  { %v1228_v10 = vmul.f32 %v1171_v51, %v1132_v62 }
 0x2e2   :  { %v1248_v57 = vadd.f32 %v2053_v32, %v1228_v10 }
 0x2e4   :  { %1264 = vst [vmem:[%s2125_s6 + $0x28] sm:$0xff] %v1248_v57 }
 0x2e7   :  { %v1186_v42 = vpop.permute.xlu2 %1185 }
 0x2e8   :  { %v1231_v26 = vmul.f32 %v1186_v42, %v1135_v48 }
 0x2ea   :  { %v1251_v16 = vadd.f32 %v2053_v32, %v1231_v26 }
 0x2ec   :  { %1267 = vst [vmem:[%s2125_s6 + $0x40] sm:$0xff] %v1251_v16 }
 0x2ef   :  { %v1201_v4 = vpop.permute.xlu2 %1200 }
 0x2f0   :  { %v1234_v50 = vmul.f32 %v1201_v4, %v1138_v52  ;;  %v1156_v53 = vpop.permute.xlu1 %1155 }
 0x2f1   :  { %v1225_v58 = vmul.f32 %v1156_v53, %v1129_v8  ;;  %v1146_v25 = vpop.permute.xlu0 %1145 }
 0x2f2   :  { %v1254_v7 = vadd.f32 %v2053_v32, %v1234_v50  ;;  %v1223_v15 = vmul.f32 %v1146_v25, %v1127_v63 }
 0x2f3   :  { %v1245_v56 = vadd.f32 %v2053_v32, %v1225_v58 }
 0x2f4   :  { %1270 = vst [vmem:[%s2125_s6 + $0x58] sm:$0xff] %v1254_v7  ;;  %v1243_v47 = vadd.f32 %v2053_v32, %v1223_v15 }
 0x2f5   :  { %1261 = vst [vmem:[%s2125_s6 + $0x10] sm:$0xff] %v1245_v56 }
 0x2f6   :  { %1259 = vst [vmem:[%s2125_s6] sm:$0xff] %v1243_v47 }
 0x2f7   :  { %v1216_v41 = vpop.permute.xlu2 %1215 }
 0x2f8   :  { %v1237_v39 = vmul.f32 %v1216_v41, %v1141_v6  ;;  %v1161_v18 = vpop.permute.xlu1 %1160 }
 0x2f9   :  { %v1226_v5 = vmul.f32 %v1161_v18, %v1130_v29  ;;  %v1151_v60 = vpop.permute.xlu0 %1150 }
 0x2fa   :  { %v1257_v23 = vadd.f32 %v2053_v32, %v1237_v39  ;;  %v1224_v46 = vmul.f32 %v1151_v60, %v1128_v24 }
 0x2fb   :  { %v1246_v49 = vadd.f32 %v2053_v32, %v1226_v5 }
 0x2fc   :  { %1273 = vst [vmem:[%s2125_s6 + $0x70] sm:$0xff] %v1257_v23  ;;  %v1244_v27 = vadd.f32 %v2053_v32, %v1224_v46 }
 0x2fd   :  { %1262 = vst [vmem:[%s2125_s6 + $0x18] sm:$0xff] %v1246_v49 }
 0x2fe   :  { %1260 = vst [vmem:[%s2125_s6 + $0x8] sm:$0xff] %v1244_v27 }
 0x300   :  { %v1181_v13 = vpop.permute.xlu1 %1180 }
 0x301   :  { %v1230_v30 = vmul.f32 %v1181_v13, %v1134_v37  ;;  %v1176_v19 = vpop.permute.xlu0 %1175 }
 0x302   :  { %v1229_v38 = vmul.f32 %v1176_v19, %v1133_v14 }
 0x303   :  { %v1250_v45 = vadd.f32 %v2053_v32, %v1230_v30 }
 0x304   :  { %v1249_v11 = vadd.f32 %v2053_v32, %v1229_v38 }
 0x305   :  { %1266 = vst [vmem:[%s2125_s6 + $0x38] sm:$0xff] %v1250_v45 }
 0x306   :  { %1265 = vst [vmem:[%s2125_s6 + $0x30] sm:$0xff] %v1249_v11 }
 0x308   :  { %v1196_v61 = vpop.permute.xlu1 %1195 }
 0x309   :  { %v1233_v2 = vmul.f32 %v1196_v61, %v1137_v28  ;;  %v1191_v31 = vpop.permute.xlu0 %1190 }
 0x30a   :  { %v1232_v21 = vmul.f32 %v1191_v31, %v1136_v34 }
 0x30b   :  { %v1253_v9 = vadd.f32 %v2053_v32, %v1233_v2 }
 0x30c   :  { %v1252_v54 = vadd.f32 %v2053_v32, %v1232_v21 }
 0x30d   :  { %1269 = vst [vmem:[%s2125_s6 + $0x50] sm:$0xff] %v1253_v9 }
 0x30e   :  { %1268 = vst [vmem:[%s2125_s6 + $0x48] sm:$0xff] %v1252_v54 }
 0x310   :  { %v1211_v43 = vpop.permute.xlu1 %1210 }
 0x311   :  { %v1236_v22 = vmul.f32 %v1211_v43, %v1140_v0  ;;  %v1206_v33 = vpop.permute.xlu0 %1205 }
 0x312   :  { %v1235_v1 = vmul.f32 %v1206_v33, %v1139_v35 }
 0x313   :  { %v1256_v44 = vadd.f32 %v2053_v32, %v1236_v22 }
 0x314   :  { %v1255_v12 = vadd.f32 %v2053_v32, %v1235_v1 }
 0x315   :  { %1272 = vst [vmem:[%s2125_s6 + $0x68] sm:$0xff] %v1256_v44 }
 0x316   :  { %1271 = vst [vmem:[%s2125_s6 + $0x60] sm:$0xff] %v1255_v12 }
 0x319   :  { %v1221_v3 = vpop.permute.xlu0 %1220 }
 0x31a   :  { %v1238_v55 = vmul.f32 %v1221_v3, %v1142_v59 }
 0x31c   :  { %v1258_v20 = vadd.f32 %v2053_v32, %v1238_v55 }
 0x31e   :  { %1274 = vst [vmem:[%s2125_s6 + $0x78] sm:$0xff] %v1258_v20 }

</bundles_post_ra>
